<compile_context>
chip_gen: v7x
topology: tpu7x:2x2x1
jax: 0.10.0
libtpu: 0.0.40
codegen_flags: <defaults>
</compile_context>

<pallas_src>
import math
import functools

import jax
import jax.numpy as jnp
from jax import lax
from jax.experimental import pallas as pl
from jax.experimental.pallas import tpu as pltpu

F32 = jnp.float32
BF16 = jnp.bfloat16


# ----------------------------------------------------------------------------
# In-kernel building blocks (operate on loaded values)
# ----------------------------------------------------------------------------

def _matmul(x, w, b):
    """x (M,K) f32 @ w (K,N) bf16 + b (1,N) f32 -> (M,N) f32."""
    return jnp.dot(x.astype(BF16), w, preferred_element_type=F32) + b


def _add_layer_norm(x, res, gamma, beta, eps):
    """Residual add + the module's custom layer_norm:
       out = gamma * (y - mean) / sqrt(std + eps),  std = sqrt(var) (unbiased=False)."""
    y = x + res
    mean = jnp.mean(y, axis=-1, keepdims=True)
    var = jnp.mean((y - mean) ** 2, axis=-1, keepdims=True)
    std = jnp.sqrt(var)
    out = (y - mean) * lax.rsqrt(std + eps)
    return gamma * out + beta


def _mha(x_q, x_kv, mask, wq, bq, wkv, bkv, wo, bo, *, n_head, scale):
    """Multi-head attention for one batch element; all heads statically unrolled."""
    D = x_q.shape[-1]
    dh = D // n_head
    q = _matmul(x_q, wq, bq)            # (Sq, D)
    kv = _matmul(x_kv, wkv, bkv)        # (Sk, 2D)  (K and V fused)

    heads = []
    for h in range(n_head):
        lo = h * dh
        qh = q[:, lo:lo + dh]           # (Sq, dh)
        kh = kv[:, lo:lo + dh]          # (Sk, dh)
        vh = kv[:, D + lo:D + lo + dh]  # (Sk, dh)
        # score = q @ k.T * scale  (contract last dims directly, no transpose)
        s = lax.dot_general(qh.astype(BF16), kh.astype(BF16),
                            dimension_numbers=(((1,), (1,)), ((), ())),
                            preferred_element_type=F32) * scale
        s = jnp.where(mask == 0.0, -1000000.0, s)       # masked_fill semantics
        s = s - jnp.max(s, axis=-1, keepdims=True)
        e = jnp.exp(s)
        p = e * pl.reciprocal(jnp.sum(e, axis=-1, keepdims=True), approx=True)
        heads.append(jnp.dot(p.astype(BF16), vh.astype(BF16),
                             preferred_element_type=F32))       # (Sq, dh)
    concat = jnp.concatenate(heads, axis=-1)                    # (Sq, D)
    return _matmul(concat, wo, bo)                              # (Sq, D)


def _ffn(x, w1, b1, w2, b2):
    h = jnp.maximum(_matmul(x, w1, b1), 0.0)                    # ReLU in f32
    return _matmul(h, w2, b2)


# ----------------------------------------------------------------------------
# One fused kernel: encoder stack -> decoder stack -> vocab projection
# ----------------------------------------------------------------------------

def _transformer_kernel(
        src_ref, trg_ref, sm_ref, tm_ref, xm_ref,
        # encoder params, stacked with leading n_layer axis
        e_wq, e_bq, e_wkv, e_bkv, e_wo, e_bo, e_g1, e_be1,
        e_w1, e_bf1, e_w2, e_bf2, e_g2, e_be2,
        # decoder params, stacked with leading n_layer axis
        d_swq, d_sbq, d_swkv, d_sbkv, d_swo, d_sbo, d_g1, d_be1,
        d_cwq, d_cbq, d_cwkv, d_cbkv, d_cwo, d_cbo, d_g2, d_be2,
        d_w1, d_bf1, d_w2, d_bf2, d_g3, d_be3,
        # output projection
        fc_w, fc_b,
        o_ref, *, n_layer, n_head, scale, eps):
    # ---- encoder stack ----
    x = src_ref[...]                        # (Ss, D)
    src_mask = sm_ref[...]                  # (Ss, Ss)
    for l in range(n_layer):                # static unroll over layers
        attn = _mha(x, x, src_mask,
                    e_wq[l], e_bq[l], e_wkv[l], e_bkv[l], e_wo[l], e_bo[l],
                    n_head=n_head, scale=scale)
        x = _add_layer_norm(attn, x, e_g1[l], e_be1[l], eps)
        ff = _ffn(x, e_w1[l], e_bf1[l], e_w2[l], e_bf2[l])
        x = _add_layer_norm(ff, x, e_g2[l], e_be2[l], eps)
    enc = x                                 # (Ss, D)

    # ---- decoder stack ----
    y = trg_ref[...]                        # (St, D)
    trg_mask = tm_ref[...]                  # (St, St)
    xmask = xm_ref[...]                     # (St, Ss)
    for l in range(n_layer):
        attn = _mha(y, y, trg_mask,
                    d_swq[l], d_sbq[l], d_swkv[l], d_sbkv[l], d_swo[l], d_sbo[l],
                    n_head=n_head, scale=scale)
        y = _add_layer_norm(attn, y, d_g1[l], d_be1[l], eps)
        attn = _mha(y, enc, xmask,
                    d_cwq[l], d_cbq[l], d_cwkv[l], d_cbkv[l], d_cwo[l], d_cbo[l],
                    n_head=n_head, scale=scale)
        y = _add_layer_norm(attn, y, d_g2[l], d_be2[l], eps)
        ff = _ffn(y, d_w1[l], d_bf1[l], d_w2[l], d_bf2[l])
        y = _add_layer_norm(ff, y, d_g3[l], d_be3[l], eps)

    # ---- vocab projection (lane-dense, padded to 128) ----
    o_ref[...] = _matmul(y, fc_w[...], fc_b[...])


# ----------------------------------------------------------------------------
# Parameter init (mirrors shapes / init style of the PyTorch __init__)
# ----------------------------------------------------------------------------

def _init_linear_wb(key, d_in, d_out):
    k1, k2 = jax.random.split(key)
    bound = 1.0 / math.sqrt(d_in)
    w = jax.random.uniform(k1, (d_in, d_out), F32, -bound, bound)
    b = jax.random.uniform(k2, (d_out,), F32, -bound, bound)
    return w, b


def init_mha(key, d_model):
    ks = jax.random.split(key, 4)
    wq, bq = _init_linear_wb(ks[0], d_model, d_model)
    wk, bk = _init_linear_wb(ks[1], d_model, d_model)
    wv, bv = _init_linear_wb(ks[2], d_model, d_model)
    wo, bo = _init_linear_wb(ks[3], d_model, d_model)
    return {
        "wq": wq.astype(BF16), "bq": bq.reshape(1, -1),
        "wkv": jnp.concatenate([wk, wv], axis=1).astype(BF16),
        "bkv": jnp.concatenate([bk, bv]).reshape(1, -1),
        "wo": wo.astype(BF16), "bo": bo.reshape(1, -1),
    }


def _init_ffn(key, d_model, d_ff):
    k1, k2 = jax.random.split(key)
    w1, b1 = _init_linear_wb(k1, d_model, d_ff)
    w2, b2 = _init_linear_wb(k2, d_ff, d_model)
    return {"w1": w1.astype(BF16), "b1": b1.reshape(1, -1),
            "w2": w2.astype(BF16), "b2": b2.reshape(1, -1)}


def _ln_pair(d_model):
    return jnp.ones((1, d_model), F32), jnp.zeros((1, d_model), F32)


def init_encoder_layer(key, d_model, d_ff):
    k1, k2 = jax.random.split(key)
    g1, bt1 = _ln_pair(d_model)
    g2, bt2 = _ln_pair(d_model)
    return {**init_mha(k1, d_model),
            "g1": g1, "bt1": bt1,
            **_init_ffn(k2, d_model, d_ff),
            "g2": g2, "bt2": bt2}


def init_decoder_layer(key, d_model, d_ff):
    k1, k2, k3 = jax.random.split(key, 3)
    sa = init_mha(k1, d_model)
    ca = init_mha(k2, d_model)
    ffn = _init_ffn(k3, d_model, d_ff)
    g1, bt1 = _ln_pair(d_model)
    g2, bt2 = _ln_pair(d_model)
    g3, bt3 = _ln_pair(d_model)
    return {
        "swq": sa["wq"], "sbq": sa["bq"], "swkv": sa["wkv"], "sbkv": sa["bkv"],
        "swo": sa["wo"], "sbo": sa["bo"], "g1": g1, "bt1": bt1,
        "cwq": ca["wq"], "cbq": ca["bq"], "cwkv": ca["wkv"], "cbkv": ca["bkv"],
        "cwo": ca["wo"], "cbo": ca["bo"], "g2": g2, "bt2": bt2,
        **ffn, "g3": g3, "bt3": bt3,
    }


def make_pos_encoding(max_len, d_model):
    pos = jnp.arange(max_len, dtype=F32)[:, None]
    _2i = jnp.arange(0, d_model, 2, dtype=F32)
    angle = pos / jnp.power(10000.0, _2i / d_model)
    enc = jnp.zeros((max_len, d_model), F32)
    enc = enc.at[:, 0::2].set(jnp.sin(angle))
    enc = enc.at[:, 1::2].set(jnp.cos(angle))
    return enc


def init_embedding(key, vocab_size, d_model, max_len, pad_idx=1):
    tok = jax.random.normal(key, (vocab_size, d_model), F32)
    tok = tok.at[pad_idx].set(0.0)             # padding_idx=1
    return {"token": tok, "pos": make_pos_encoding(max_len, d_model)}


def init_out_proj(key, d_model, vocab):
    w, b = _init_linear_wb(key, d_model, vocab)
    vp = ((vocab + 127) // 128) * 128
    w_pad = jnp.zeros((d_model, vp), F32).at[:, :vocab].set(w).astype(BF16)
    b_pad = jnp.zeros((1, vp), F32).at[:, :vocab].set(b)
    return {"w": w_pad, "b": b_pad}


def init_transformer(key, enc_vocab, dec_vocab, max_len, d_model, d_ff, n_layer):
    keys = jax.random.split(key, 2 * n_layer + 3)
    enc_layers = [init_encoder_layer(keys[i], d_model, d_ff)
                  for i in range(n_layer)]
    dec_layers = [init_decoder_layer(keys[n_layer + i], d_model, d_ff)
                  for i in range(n_layer)]
    return {
        "enc_emb": init_embedding(keys[-3], enc_vocab, d_model, max_len),
        "dec_emb": init_embedding(keys[-2], dec_vocab, d_model, max_len),
        "enc_layers": enc_layers,
        "dec_layers": dec_layers,
        "fc": init_out_proj(keys[-1], d_model, dec_vocab),
    }


# ----------------------------------------------------------------------------
# Forward pass: embeddings + masks in JAX, one fused pallas_call for the rest
# ----------------------------------------------------------------------------

ENC_NAMES = ["wq", "bq", "wkv", "bkv", "wo", "bo", "g1", "bt1",
             "w1", "b1", "w2", "b2", "g2", "bt2"]
DEC_NAMES = ["swq", "sbq", "swkv", "sbkv", "swo", "sbo", "g1", "bt1",
             "cwq", "cbq", "cwkv", "cbkv", "cwo", "cbo", "g2", "bt2",
             "w1", "b1", "w2", "b2", "g3", "bt3"]


def _stack(layers, name):
    return jnp.stack([lp[name] for lp in layers], axis=0)


def embed(p, tokens):
    tok = jnp.take(p["token"], tokens, axis=0)            # (B, S, D)
    pos = p["pos"][: tokens.shape[1], :]                  # (S, D)
    return tok + pos       # TODO(synk): dropout treated as identity (eval mode)


def make_pad_mask(q_tok, k_tok, pad_q, pad_k):
    qm = (q_tok != pad_q)[:, :, None]                      # (B, Lq, 1)
    km = (k_tok != pad_k)[:, None, :]                      # (B, 1, Lk)
    return (qm & km).astype(F32)                           # 1.0 keep, 0.0 mask


def _batched_spec(shape):
    nd = len(shape)
    return pl.BlockSpec((None,) + tuple(shape[1:]),
                        lambda b, _nd=nd: (b,) + (0,) * (_nd - 1))


def _const_spec(arr):
    nd = arr.ndim
    return pl.BlockSpec(arr.shape, lambda b, _nd=nd: (0,) * _nd)


def transformer_forward(params, src, trg, *, src_pad_idx, trg_pad_idx,
                        n_head, n_layer, dec_vocab):
    B, Ss = src.shape
    St = trg.shape[1]
    D = params["enc_emb"]["token"].shape[1]

    # masks (1.0 keep / 0.0 mask), per the PyTorch reference
    src_pad_mask = make_pad_mask(src, src, src_pad_idx, src_pad_idx)    # (B,Ss,Ss)
    trg_pad_mask = make_pad_mask(trg, trg, trg_pad_idx, trg_pad_idx)    # (B,St,St)
    trg_seq_mask = jnp.tril(jnp.ones((St, St), F32))
    trg_mask = trg_pad_mask * trg_seq_mask                              # (B,St,St)
    src_trg_mask = make_pad_mask(trg, src, trg_pad_idx, src_pad_idx)    # (B,St,Ss)

    # embeddings (gather) in JAX
    x = embed(params["enc_emb"], src)                                   # (B,Ss,D)
    y = embed(params["dec_emb"], trg)                                   # (B,St,D)

    # stack per-layer parameters along a leading n_layer axis
    enc_p = [_stack(params["enc_layers"], n) for n in ENC_NAMES]
    dec_p = [_stack(params["dec_layers"], n) for n in DEC_NAMES]
    fc_w = params["fc"]["w"]
    fc_b = params["fc"]["b"]
    Vp = fc_w.shape[1]

    dh = D // n_head
    kern = functools.partial(_transformer_kernel, n_layer=n_layer,
                             n_head=n_head, scale=1.0 / math.sqrt(dh),
                             eps=1e-6)

    in_specs = ([_batched_spec(x.shape), _batched_spec(y.shape),
                 _batched_spec(src_pad_mask.shape),
                 _batched_spec(trg_mask.shape),
                 _batched_spec(src_trg_mask.shape)]
                + [_const_spec(p) for p in enc_p]
                + [_const_spec(p) for p in dec_p]
                + [_const_spec(fc_w), _const_spec(fc_b)])

    out = pl.pallas_call(
        kern,
        out_shape=jax.ShapeDtypeStruct((B, St, Vp), F32),
        grid=(B,),
        in_specs=in_specs,
        out_specs=pl.BlockSpec((None, St, Vp), lambda b: (b, 0, 0)),
        compiler_params=pltpu.CompilerParams(
            dimension_semantics=("parallel",)),
    )(x, y, src_pad_mask, trg_mask, src_trg_mask,
      *enc_p, *dec_p, fc_w, fc_b)

    return out[:, :, :dec_vocab]


# ----------------------------------------------------------------------------
# Main
# ----------------------------------------------------------------------------

if __name__ == "__main__":
    src_pad_idx = 1
    trg_pad_idx = 1
    enc_vocab_size = 50
    dec_vocab_size = 50
    max_len = 16
    d_model = 32
    n_head = 4
    d_ff = 64
    n_layer = 2
    batch = 2
    src_len = 8
    trg_len = 8

    key = jax.random.PRNGKey(0)
    k_param, k_src, k_trg = jax.random.split(key, 3)

    params = init_transformer(k_param, enc_vocab_size, dec_vocab_size,
                              max_len, d_model, d_ff, n_layer)

    src = jax.random.randint(k_src, (batch, src_len), 0, enc_vocab_size, jnp.int32)
    trg = jax.random.randint(k_trg, (batch, trg_len), 0, dec_vocab_size, jnp.int32)

    fwd = jax.jit(functools.partial(transformer_forward,
                                    src_pad_idx=src_pad_idx,
                                    trg_pad_idx=trg_pad_idx,
                                    n_head=n_head,
                                    n_layer=n_layer,
                                    dec_vocab=dec_vocab_size))
    out = fwd(params, src, trg)
    out = jax.block_until_ready(out)

    assert out.shape == (batch, trg_len, dec_vocab_size)
    assert bool(jnp.all(jnp.isfinite(out)))
    print("KERNEL_OK")
</pallas_src>

<mosaic_0001>
module attributes {stable_mosaic.version = 11 : i64} {
  func.func @_transformer_kernel(%arg0: i32, %arg1: memref<1x8x32xf32, #tpu.memory_space<vmem>>, %arg2: memref<1x8x32xf32, #tpu.memory_space<vmem>>, %arg3: memref<1x8x8xf32, #tpu.memory_space<vmem>>, %arg4: memref<1x8x8xf32, #tpu.memory_space<vmem>>, %arg5: memref<1x8x8xf32, #tpu.memory_space<vmem>>, %arg6: memref<2x32x32xbf16, #tpu.memory_space<vmem>>, %arg7: memref<2x1x32xf32, #tpu.memory_space<vmem>>, %arg8: memref<2x32x64xbf16, #tpu.memory_space<vmem>>, %arg9: memref<2x1x64xf32, #tpu.memory_space<vmem>>, %arg10: memref<2x32x32xbf16, #tpu.memory_space<vmem>>, %arg11: memref<2x1x32xf32, #tpu.memory_space<vmem>>, %arg12: memref<2x1x32xf32, #tpu.memory_space<vmem>>, %arg13: memref<2x1x32xf32, #tpu.memory_space<vmem>>, %arg14: memref<2x32x64xbf16, #tpu.memory_space<vmem>>, %arg15: memref<2x1x64xf32, #tpu.memory_space<vmem>>, %arg16: memref<2x64x32xbf16, #tpu.memory_space<vmem>>, %arg17: memref<2x1x32xf32, #tpu.memory_space<vmem>>, %arg18: memref<2x1x32xf32, #tpu.memory_space<vmem>>, %arg19: memref<2x1x32xf32, #tpu.memory_space<vmem>>, %arg20: memref<2x32x32xbf16, #tpu.memory_space<vmem>>, %arg21: memref<2x1x32xf32, #tpu.memory_space<vmem>>, %arg22: memref<2x32x64xbf16, #tpu.memory_space<vmem>>, %arg23: memref<2x1x64xf32, #tpu.memory_space<vmem>>, %arg24: memref<2x32x32xbf16, #tpu.memory_space<vmem>>, %arg25: memref<2x1x32xf32, #tpu.memory_space<vmem>>, %arg26: memref<2x1x32xf32, #tpu.memory_space<vmem>>, %arg27: memref<2x1x32xf32, #tpu.memory_space<vmem>>, %arg28: memref<2x32x32xbf16, #tpu.memory_space<vmem>>, %arg29: memref<2x1x32xf32, #tpu.memory_space<vmem>>, %arg30: memref<2x32x64xbf16, #tpu.memory_space<vmem>>, %arg31: memref<2x1x64xf32, #tpu.memory_space<vmem>>, %arg32: memref<2x32x32xbf16, #tpu.memory_space<vmem>>, %arg33: memref<2x1x32xf32, #tpu.memory_space<vmem>>, %arg34: memref<2x1x32xf32, #tpu.memory_space<vmem>>, %arg35: memref<2x1x32xf32, #tpu.memory_space<vmem>>, %arg36: memref<2x32x64xbf16, #tpu.memory_space<vmem>>, %arg37: memref<2x1x64xf32, #tpu.memory_space<vmem>>, %arg38: memref<2x64x32xbf16, #tpu.memory_space<vmem>>, %arg39: memref<2x1x32xf32, #tpu.memory_space<vmem>>, %arg40: memref<2x1x32xf32, #tpu.memory_space<vmem>>, %arg41: memref<2x1x32xf32, #tpu.memory_space<vmem>>, %arg42: memref<32x128xbf16, #tpu.memory_space<vmem>>, %arg43: memref<1x128xf32, #tpu.memory_space<vmem>>, %arg44: memref<1x8x128xf32, #tpu.memory_space<vmem>>) attributes {dimension_semantics = [#tpu.dimension_semantics<parallel>], iteration_bounds = array<i64: 2>, scalar_prefetch = 0 : i64, scratch_operands = 0 : i64, tpu.core_type = #tpu.core_type<tc>, window_params = [{transform_indices = @transform_0, window_bounds = array<i64: 1, 8, 32>}, {transform_indices = @transform_1, window_bounds = array<i64: 1, 8, 32>}, {transform_indices = @transform_2, window_bounds = array<i64: 1, 8, 8>}, {transform_indices = @transform_3, window_bounds = array<i64: 1, 8, 8>}, {transform_indices = @transform_4, window_bounds = array<i64: 1, 8, 8>}, {pipeline_mode = #tpu.pipeline_mode<synchronous>, transform_indices = @transform_5, window_bounds = array<i64: 2, 32, 32>}, {pipeline_mode = #tpu.pipeline_mode<synchronous>, transform_indices = @transform_6, window_bounds = array<i64: 2, 1, 32>}, {pipeline_mode = #tpu.pipeline_mode<synchronous>, transform_indices = @transform_7, window_bounds = array<i64: 2, 32, 64>}, {pipeline_mode = #tpu.pipeline_mode<synchronous>, transform_indices = @transform_8, window_bounds = array<i64: 2, 1, 64>}, {pipeline_mode = #tpu.pipeline_mode<synchronous>, transform_indices = @transform_9, window_bounds = array<i64: 2, 32, 32>}, {pipeline_mode = #tpu.pipeline_mode<synchronous>, transform_indices = @transform_10, window_bounds = array<i64: 2, 1, 32>}, {pipeline_mode = #tpu.pipeline_mode<synchronous>, transform_indices = @transform_11, window_bounds = array<i64: 2, 1, 32>}, {pipeline_mode = #tpu.pipeline_mode<synchronous>, transform_indices = @transform_12, window_bounds = array<i64: 2, 1, 32>}, {pipeline_mode = #tpu.pipeline_mode<synchronous>, transform_indices = @transform_13, window_bounds = array<i64: 2, 32, 64>}, {pipeline_mode = #tpu.pipeline_mode<synchronous>, transform_indices = @transform_14, window_bounds = array<i64: 2, 1, 64>}, {pipeline_mode = #tpu.pipeline_mode<synchronous>, transform_indices = @transform_15, window_bounds = array<i64: 2, 64, 32>}, {pipeline_mode = #tpu.pipeline_mode<synchronous>, transform_indices = @transform_16, window_bounds = array<i64: 2, 1, 32>}, {pipeline_mode = #tpu.pipeline_mode<synchronous>, transform_indices = @transform_17, window_bounds = array<i64: 2, 1, 32>}, {pipeline_mode = #tpu.pipeline_mode<synchronous>, transform_indices = @transform_18, window_bounds = array<i64: 2, 1, 32>}, {pipeline_mode = #tpu.pipeline_mode<synchronous>, transform_indices = @transform_19, window_bounds = array<i64: 2, 32, 32>}, {pipeline_mode = #tpu.pipeline_mode<synchronous>, transform_indices = @transform_20, window_bounds = array<i64: 2, 1, 32>}, {pipeline_mode = #tpu.pipeline_mode<synchronous>, transform_indices = @transform_21, window_bounds = array<i64: 2, 32, 64>}, {pipeline_mode = #tpu.pipeline_mode<synchronous>, transform_indices = @transform_22, window_bounds = array<i64: 2, 1, 64>}, {pipeline_mode = #tpu.pipeline_mode<synchronous>, transform_indices = @transform_23, window_bounds = array<i64: 2, 32, 32>}, {pipeline_mode = #tpu.pipeline_mode<synchronous>, transform_indices = @transform_24, window_bounds = array<i64: 2, 1, 32>}, {pipeline_mode = #tpu.pipeline_mode<synchronous>, transform_indices = @transform_25, window_bounds = array<i64: 2, 1, 32>}, {pipeline_mode = #tpu.pipeline_mode<synchronous>, transform_indices = @transform_26, window_bounds = array<i64: 2, 1, 32>}, {pipeline_mode = #tpu.pipeline_mode<synchronous>, transform_indices = @transform_27, window_bounds = array<i64: 2, 32, 32>}, {pipeline_mode = #tpu.pipeline_mode<synchronous>, transform_indices = @transform_28, window_bounds = array<i64: 2, 1, 32>}, {pipeline_mode = #tpu.pipeline_mode<synchronous>, transform_indices = @transform_29, window_bounds = array<i64: 2, 32, 64>}, {pipeline_mode = #tpu.pipeline_mode<synchronous>, transform_indices = @transform_30, window_bounds = array<i64: 2, 1, 64>}, {pipeline_mode = #tpu.pipeline_mode<synchronous>, transform_indices = @transform_31, window_bounds = array<i64: 2, 32, 32>}, {pipeline_mode = #tpu.pipeline_mode<synchronous>, transform_indices = @transform_32, window_bounds = array<i64: 2, 1, 32>}, {pipeline_mode = #tpu.pipeline_mode<synchronous>, transform_indices = @transform_33, window_bounds = array<i64: 2, 1, 32>}, {pipeline_mode = #tpu.pipeline_mode<synchronous>, transform_indices = @transform_34, window_bounds = array<i64: 2, 1, 32>}, {pipeline_mode = #tpu.pipeline_mode<synchronous>, transform_indices = @transform_35, window_bounds = array<i64: 2, 32, 64>}, {pipeline_mode = #tpu.pipeline_mode<synchronous>, transform_indices = @transform_36, window_bounds = array<i64: 2, 1, 64>}, {pipeline_mode = #tpu.pipeline_mode<synchronous>, transform_indices = @transform_37, window_bounds = array<i64: 2, 64, 32>}, {pipeline_mode = #tpu.pipeline_mode<synchronous>, transform_indices = @transform_38, window_bounds = array<i64: 2, 1, 32>}, {pipeline_mode = #tpu.pipeline_mode<synchronous>, transform_indices = @transform_39, window_bounds = array<i64: 2, 1, 32>}, {pipeline_mode = #tpu.pipeline_mode<synchronous>, transform_indices = @transform_40, window_bounds = array<i64: 2, 1, 32>}, {pipeline_mode = #tpu.pipeline_mode<synchronous>, transform_indices = @transform_41, window_bounds = array<i64: 32, 128>}, {pipeline_mode = #tpu.pipeline_mode<synchronous>, transform_indices = @transform_42, window_bounds = array<i64: 1, 128>}, {transform_indices = @transform_43, window_bounds = array<i64: 1, 8, 128>}]} {
    %c0 = arith.constant 0 : index
    %c0_0 = arith.constant 0 : index
    %c0_1 = arith.constant 0 : index
    %0 = vector.load %arg1[%c0, %c0_0, %c0_1] : memref<1x8x32xf32, #tpu.memory_space<vmem>>, vector<1x8x32xf32>
    %1 = vector.shape_cast %0 : vector<1x8x32xf32> to vector<8x32xf32>
    %c0_2 = arith.constant 0 : index
    %c0_3 = arith.constant 0 : index
    %c0_4 = arith.constant 0 : index
    %2 = vector.load %arg3[%c0_2, %c0_3, %c0_4] : memref<1x8x8xf32, #tpu.memory_space<vmem>>, vector<1x8x8xf32>
    %3 = vector.shape_cast %2 : vector<1x8x8xf32> to vector<8x8xf32>
    %c0_5 = arith.constant 0 : index
    %c0_6 = arith.constant 0 : index
    %c0_7 = arith.constant 0 : index
    %4 = vector.load %arg6[%c0_5, %c0_6, %c0_7] : memref<2x32x32xbf16, #tpu.memory_space<vmem>>, vector<1x32x32xbf16>
    %5 = vector.shape_cast %4 : vector<1x32x32xbf16> to vector<32x32xbf16>
    %c0_8 = arith.constant 0 : index
    %c0_9 = arith.constant 0 : index
    %c0_10 = arith.constant 0 : index
    %6 = vector.load %arg7[%c0_8, %c0_9, %c0_10] : memref<2x1x32xf32, #tpu.memory_space<vmem>>, vector<1x1x32xf32>
    %7 = vector.shape_cast %6 : vector<1x1x32xf32> to vector<1x32xf32>
    %c0_11 = arith.constant 0 : index
    %c0_12 = arith.constant 0 : index
    %c0_13 = arith.constant 0 : index
    %8 = vector.load %arg8[%c0_11, %c0_12, %c0_13] : memref<2x32x64xbf16, #tpu.memory_space<vmem>>, vector<1x32x64xbf16>
    %9 = vector.shape_cast %8 : vector<1x32x64xbf16> to vector<32x64xbf16>
    %c0_14 = arith.constant 0 : index
    %c0_15 = arith.constant 0 : index
    %c0_16 = arith.constant 0 : index
    %10 = vector.load %arg9[%c0_14, %c0_15, %c0_16] : memref<2x1x64xf32, #tpu.memory_space<vmem>>, vector<1x1x64xf32>
    %11 = vector.shape_cast %10 : vector<1x1x64xf32> to vector<1x64xf32>
    %c0_17 = arith.constant 0 : index
    %c0_18 = arith.constant 0 : index
    %c0_19 = arith.constant 0 : index
    %12 = vector.load %arg10[%c0_17, %c0_18, %c0_19] : memref<2x32x32xbf16, #tpu.memory_space<vmem>>, vector<1x32x32xbf16>
    %13 = vector.shape_cast %12 : vector<1x32x32xbf16> to vector<32x32xbf16>
    %c0_20 = arith.constant 0 : index
    %c0_21 = arith.constant 0 : index
    %c0_22 = arith.constant 0 : index
    %14 = vector.load %arg11[%c0_20, %c0_21, %c0_22] : memref<2x1x32xf32, #tpu.memory_space<vmem>>, vector<1x1x32xf32>
    %15 = vector.shape_cast %14 : vector<1x1x32xf32> to vector<1x32xf32>
    %16 = arith.truncf %1 : vector<8x32xf32> to vector<8x32xbf16>
    %cst = arith.constant dense<0.000000e+00> : vector<8x32xf32>
    %17 = tpu.matmul %16, %5, %cst {dimension_numbers = #tpu.dot_dimension_numbers<[1], [0], [0], [1], [0, 0, 1, 1], [], []>} : vector<8x32xbf16>, vector<32x32xbf16>, vector<8x32xf32> -> vector<8x32xf32>
    %18 = vector.broadcast %7 : vector<1x32xf32> to vector<8x32xf32>
    %19 = arith.addf %17, %18 : vector<8x32xf32>
    %20 = arith.truncf %1 : vector<8x32xf32> to vector<8x32xbf16>
    %cst_23 = arith.constant dense<0.000000e+00> : vector<8x64xf32>
    %21 = tpu.matmul %20, %9, %cst_23 {dimension_numbers = #tpu.dot_dimension_numbers<[1], [0], [0], [1], [0, 0, 1, 1], [], []>} : vector<8x32xbf16>, vector<32x64xbf16>, vector<8x64xf32> -> vector<8x64xf32>
    %22 = vector.broadcast %11 : vector<1x64xf32> to vector<8x64xf32>
    %23 = arith.addf %21, %22 : vector<8x64xf32>
    %24 = vector.extract_strided_slice %19 {offsets = [0, 0], sizes = [8, 8], strides = [1, 1]} : vector<8x32xf32> to vector<8x8xf32>
    %25 = vector.extract_strided_slice %23 {offsets = [0, 0], sizes = [8, 8], strides = [1, 1]} : vector<8x64xf32> to vector<8x8xf32>
    %26 = vector.extract_strided_slice %23 {offsets = [0, 32], sizes = [8, 8], strides = [1, 1]} : vector<8x64xf32> to vector<8x8xf32>
    %27 = arith.truncf %24 : vector<8x8xf32> to vector<8x8xbf16>
    %28 = arith.truncf %25 : vector<8x8xf32> to vector<8x8xbf16>
    %cst_24 = arith.constant dense<0.000000e+00> : vector<8x8xf32>
    %29 = tpu.matmul %27, %28, %cst_24 {dimension_numbers = #tpu.dot_dimension_numbers<[1], [1], [0], [0], [0, 0, 1, 0], [], []>} : vector<8x8xbf16>, vector<8x8xbf16>, vector<8x8xf32> -> vector<8x8xf32>
    %cst_25 = arith.constant 0.353553385 : f32
    %30 = vector.broadcast %cst_25 : f32 to vector<8x8xf32>
    %31 = arith.mulf %29, %30 : vector<8x8xf32>
    %cst_26 = arith.constant 0.000000e+00 : f32
    %32 = vector.broadcast %cst_26 : f32 to vector<8x8xf32>
    %33 = arith.cmpf oeq, %3, %32 : vector<8x8xf32>
    %cst_27 = arith.constant -1.000000e+06 : f32
    %34 = vector.broadcast %cst_27 : f32 to vector<8x8xf32>
    %35 = arith.select %33, %34, %31 : vector<8x8xi1>, vector<8x8xf32>
    %cst_28 = arith.constant dense<0xFF800000> : vector<8xf32>
    %36 = vector.multi_reduction <maximumf>, %35, %cst_28 [1] : vector<8x8xf32> to vector<8xf32>
    %37 = vector.shape_cast %36 : vector<8xf32> to vector<8x1xf32>
    %38 = vector.broadcast %37 : vector<8x1xf32> to vector<8x8xf32>
    %39 = arith.subf %35, %38 : vector<8x8xf32>
    %40 = math.exp %39 : vector<8x8xf32>
    %cst_29 = arith.constant dense<0.000000e+00> : vector<8xf32>
    %41 = vector.multi_reduction <add>, %40, %cst_29 [1] : vector<8x8xf32> to vector<8xf32>
    %42 = vector.shape_cast %41 : vector<8xf32> to vector<8x1xf32>
    %43 = tpu.reciprocal %42 {approx = true} : vector<8x1xf32> -> vector<8x1xf32>
    %44 = vector.broadcast %43 : vector<8x1xf32> to vector<8x8xf32>
    %45 = arith.mulf %40, %44 : vector<8x8xf32>
    %46 = arith.truncf %45 : vector<8x8xf32> to vector<8x8xbf16>
    %47 = arith.truncf %26 : vector<8x8xf32> to vector<8x8xbf16>
    %cst_30 = arith.constant dense<0.000000e+00> : vector<8x8xf32>
    %48 = tpu.matmul %46, %47, %cst_30 {dimension_numbers = #tpu.dot_dimension_numbers<[1], [0], [0], [1], [0, 0, 1, 1], [], []>} : vector<8x8xbf16>, vector<8x8xbf16>, vector<8x8xf32> -> vector<8x8xf32>
    %49 = vector.extract_strided_slice %19 {offsets = [0, 8], sizes = [8, 8], strides = [1, 1]} : vector<8x32xf32> to vector<8x8xf32>
    %50 = vector.extract_strided_slice %23 {offsets = [0, 8], sizes = [8, 8], strides = [1, 1]} : vector<8x64xf32> to vector<8x8xf32>
    %51 = vector.extract_strided_slice %23 {offsets = [0, 40], sizes = [8, 8], strides = [1, 1]} : vector<8x64xf32> to vector<8x8xf32>
    %52 = arith.truncf %49 : vector<8x8xf32> to vector<8x8xbf16>
    %53 = arith.truncf %50 : vector<8x8xf32> to vector<8x8xbf16>
    %cst_31 = arith.constant dense<0.000000e+00> : vector<8x8xf32>
    %54 = tpu.matmul %52, %53, %cst_31 {dimension_numbers = #tpu.dot_dimension_numbers<[1], [1], [0], [0], [0, 0, 1, 0], [], []>} : vector<8x8xbf16>, vector<8x8xbf16>, vector<8x8xf32> -> vector<8x8xf32>
    %cst_32 = arith.constant 0.353553385 : f32
    %55 = vector.broadcast %cst_32 : f32 to vector<8x8xf32>
    %56 = arith.mulf %54, %55 : vector<8x8xf32>
    %cst_33 = arith.constant 0.000000e+00 : f32
    %57 = vector.broadcast %cst_33 : f32 to vector<8x8xf32>
    %58 = arith.cmpf oeq, %3, %57 : vector<8x8xf32>
    %cst_34 = arith.constant -1.000000e+06 : f32
    %59 = vector.broadcast %cst_34 : f32 to vector<8x8xf32>
    %60 = arith.select %58, %59, %56 : vector<8x8xi1>, vector<8x8xf32>
    %cst_35 = arith.constant dense<0xFF800000> : vector<8xf32>
    %61 = vector.multi_reduction <maximumf>, %60, %cst_35 [1] : vector<8x8xf32> to vector<8xf32>
    %62 = vector.shape_cast %61 : vector<8xf32> to vector<8x1xf32>
    %63 = vector.broadcast %62 : vector<8x1xf32> to vector<8x8xf32>
    %64 = arith.subf %60, %63 : vector<8x8xf32>
    %65 = math.exp %64 : vector<8x8xf32>
    %cst_36 = arith.constant dense<0.000000e+00> : vector<8xf32>
    %66 = vector.multi_reduction <add>, %65, %cst_36 [1] : vector<8x8xf32> to vector<8xf32>
    %67 = vector.shape_cast %66 : vector<8xf32> to vector<8x1xf32>
    %68 = tpu.reciprocal %67 {approx = true} : vector<8x1xf32> -> vector<8x1xf32>
    %69 = vector.broadcast %68 : vector<8x1xf32> to vector<8x8xf32>
    %70 = arith.mulf %65, %69 : vector<8x8xf32>
    %71 = arith.truncf %70 : vector<8x8xf32> to vector<8x8xbf16>
    %72 = arith.truncf %51 : vector<8x8xf32> to vector<8x8xbf16>
    %cst_37 = arith.constant dense<0.000000e+00> : vector<8x8xf32>
    %73 = tpu.matmul %71, %72, %cst_37 {dimension_numbers = #tpu.dot_dimension_numbers<[1], [0], [0], [1], [0, 0, 1, 1], [], []>} : vector<8x8xbf16>, vector<8x8xbf16>, vector<8x8xf32> -> vector<8x8xf32>
    %74 = vector.extract_strided_slice %19 {offsets = [0, 16], sizes = [8, 8], strides = [1, 1]} : vector<8x32xf32> to vector<8x8xf32>
    %75 = vector.extract_strided_slice %23 {offsets = [0, 16], sizes = [8, 8], strides = [1, 1]} : vector<8x64xf32> to vector<8x8xf32>
    %76 = vector.extract_strided_slice %23 {offsets = [0, 48], sizes = [8, 8], strides = [1, 1]} : vector<8x64xf32> to vector<8x8xf32>
    %77 = arith.truncf %74 : vector<8x8xf32> to vector<8x8xbf16>
    %78 = arith.truncf %75 : vector<8x8xf32> to vector<8x8xbf16>
    %cst_38 = arith.constant dense<0.000000e+00> : vector<8x8xf32>
    %79 = tpu.matmul %77, %78, %cst_38 {dimension_numbers = #tpu.dot_dimension_numbers<[1], [1], [0], [0], [0, 0, 1, 0], [], []>} : vector<8x8xbf16>, vector<8x8xbf16>, vector<8x8xf32> -> vector<8x8xf32>
    %cst_39 = arith.constant 0.353553385 : f32
    %80 = vector.broadcast %cst_39 : f32 to vector<8x8xf32>
    %81 = arith.mulf %79, %80 : vector<8x8xf32>
    %cst_40 = arith.constant 0.000000e+00 : f32
    %82 = vector.broadcast %cst_40 : f32 to vector<8x8xf32>
    %83 = arith.cmpf oeq, %3, %82 : vector<8x8xf32>
    %cst_41 = arith.constant -1.000000e+06 : f32
    %84 = vector.broadcast %cst_41 : f32 to vector<8x8xf32>
    %85 = arith.select %83, %84, %81 : vector<8x8xi1>, vector<8x8xf32>
    %cst_42 = arith.constant dense<0xFF800000> : vector<8xf32>
    %86 = vector.multi_reduction <maximumf>, %85, %cst_42 [1] : vector<8x8xf32> to vector<8xf32>
    %87 = vector.shape_cast %86 : vector<8xf32> to vector<8x1xf32>
    %88 = vector.broadcast %87 : vector<8x1xf32> to vector<8x8xf32>
    %89 = arith.subf %85, %88 : vector<8x8xf32>
    %90 = math.exp %89 : vector<8x8xf32>
    %cst_43 = arith.constant dense<0.000000e+00> : vector<8xf32>
    %91 = vector.multi_reduction <add>, %90, %cst_43 [1] : vector<8x8xf32> to vector<8xf32>
    %92 = vector.shape_cast %91 : vector<8xf32> to vector<8x1xf32>
    %93 = tpu.reciprocal %92 {approx = true} : vector<8x1xf32> -> vector<8x1xf32>
    %94 = vector.broadcast %93 : vector<8x1xf32> to vector<8x8xf32>
    %95 = arith.mulf %90, %94 : vector<8x8xf32>
    %96 = arith.truncf %95 : vector<8x8xf32> to vector<8x8xbf16>
    %97 = arith.truncf %76 : vector<8x8xf32> to vector<8x8xbf16>
    %cst_44 = arith.constant dense<0.000000e+00> : vector<8x8xf32>
    %98 = tpu.matmul %96, %97, %cst_44 {dimension_numbers = #tpu.dot_dimension_numbers<[1], [0], [0], [1], [0, 0, 1, 1], [], []>} : vector<8x8xbf16>, vector<8x8xbf16>, vector<8x8xf32> -> vector<8x8xf32>
    %99 = vector.extract_strided_slice %19 {offsets = [0, 24], sizes = [8, 8], strides = [1, 1]} : vector<8x32xf32> to vector<8x8xf32>
    %100 = vector.extract_strided_slice %23 {offsets = [0, 24], sizes = [8, 8], strides = [1, 1]} : vector<8x64xf32> to vector<8x8xf32>
    %101 = vector.extract_strided_slice %23 {offsets = [0, 56], sizes = [8, 8], strides = [1, 1]} : vector<8x64xf32> to vector<8x8xf32>
    %102 = arith.truncf %99 : vector<8x8xf32> to vector<8x8xbf16>
    %103 = arith.truncf %100 : vector<8x8xf32> to vector<8x8xbf16>
    %cst_45 = arith.constant dense<0.000000e+00> : vector<8x8xf32>
    %104 = tpu.matmul %102, %103, %cst_45 {dimension_numbers = #tpu.dot_dimension_numbers<[1], [1], [0], [0], [0, 0, 1, 0], [], []>} : vector<8x8xbf16>, vector<8x8xbf16>, vector<8x8xf32> -> vector<8x8xf32>
    %cst_46 = arith.constant 0.353553385 : f32
    %105 = vector.broadcast %cst_46 : f32 to vector<8x8xf32>
    %106 = arith.mulf %104, %105 : vector<8x8xf32>
    %cst_47 = arith.constant 0.000000e+00 : f32
    %107 = vector.broadcast %cst_47 : f32 to vector<8x8xf32>
    %108 = arith.cmpf oeq, %3, %107 : vector<8x8xf32>
    %cst_48 = arith.constant -1.000000e+06 : f32
    %109 = vector.broadcast %cst_48 : f32 to vector<8x8xf32>
    %110 = arith.select %108, %109, %106 : vector<8x8xi1>, vector<8x8xf32>
    %cst_49 = arith.constant dense<0xFF800000> : vector<8xf32>
    %111 = vector.multi_reduction <maximumf>, %110, %cst_49 [1] : vector<8x8xf32> to vector<8xf32>
    %112 = vector.shape_cast %111 : vector<8xf32> to vector<8x1xf32>
    %113 = vector.broadcast %112 : vector<8x1xf32> to vector<8x8xf32>
    %114 = arith.subf %110, %113 : vector<8x8xf32>
    %115 = math.exp %114 : vector<8x8xf32>
    %cst_50 = arith.constant dense<0.000000e+00> : vector<8xf32>
    %116 = vector.multi_reduction <add>, %115, %cst_50 [1] : vector<8x8xf32> to vector<8xf32>
    %117 = vector.shape_cast %116 : vector<8xf32> to vector<8x1xf32>
    %118 = tpu.reciprocal %117 {approx = true} : vector<8x1xf32> -> vector<8x1xf32>
    %119 = vector.broadcast %118 : vector<8x1xf32> to vector<8x8xf32>
    %120 = arith.mulf %115, %119 : vector<8x8xf32>
    %121 = arith.truncf %120 : vector<8x8xf32> to vector<8x8xbf16>
    %122 = arith.truncf %101 : vector<8x8xf32> to vector<8x8xbf16>
    %cst_51 = arith.constant dense<0.000000e+00> : vector<8x8xf32>
    %123 = tpu.matmul %121, %122, %cst_51 {dimension_numbers = #tpu.dot_dimension_numbers<[1], [0], [0], [1], [0, 0, 1, 1], [], []>} : vector<8x8xbf16>, vector<8x8xbf16>, vector<8x8xf32> -> vector<8x8xf32>
    %124 = tpu.concatenate %48, %73, %98, %123 in 1 : vector<8x8xf32>, vector<8x8xf32>, vector<8x8xf32>, vector<8x8xf32> -> vector<8x32xf32>
    %125 = arith.truncf %124 : vector<8x32xf32> to vector<8x32xbf16>
    %cst_52 = arith.constant dense<0.000000e+00> : vector<8x32xf32>
    %126 = tpu.matmul %125, %13, %cst_52 {dimension_numbers = #tpu.dot_dimension_numbers<[1], [0], [0], [1], [0, 0, 1, 1], [], []>} : vector<8x32xbf16>, vector<32x32xbf16>, vector<8x32xf32> -> vector<8x32xf32>
    %127 = vector.broadcast %15 : vector<1x32xf32> to vector<8x32xf32>
    %128 = arith.addf %126, %127 : vector<8x32xf32>
    %c0_53 = arith.constant 0 : index
    %c0_54 = arith.constant 0 : index
    %c0_55 = arith.constant 0 : index
    %129 = vector.load %arg12[%c0_53, %c0_54, %c0_55] : memref<2x1x32xf32, #tpu.memory_space<vmem>>, vector<1x1x32xf32>
    %130 = vector.shape_cast %129 : vector<1x1x32xf32> to vector<1x32xf32>
    %c0_56 = arith.constant 0 : index
    %c0_57 = arith.constant 0 : index
    %c0_58 = arith.constant 0 : index
    %131 = vector.load %arg13[%c0_56, %c0_57, %c0_58] : memref<2x1x32xf32, #tpu.memory_space<vmem>>, vector<1x1x32xf32>
    %132 = vector.shape_cast %131 : vector<1x1x32xf32> to vector<1x32xf32>
    %133 = arith.addf %128, %1 : vector<8x32xf32>
    %cst_59 = arith.constant dense<0.000000e+00> : vector<8xf32>
    %134 = vector.multi_reduction <add>, %133, %cst_59 [1] : vector<8x32xf32> to vector<8xf32>
    %135 = vector.shape_cast %134 : vector<8xf32> to vector<8x1xf32>
    %cst_60 = arith.constant 3.200000e+01 : f32
    %136 = vector.broadcast %cst_60 : f32 to vector<8x1xf32>
    %137 = arith.divf %135, %136 : vector<8x1xf32>
    %138 = vector.broadcast %137 : vector<8x1xf32> to vector<8x32xf32>
    %139 = arith.subf %133, %138 : vector<8x32xf32>
    %140 = arith.mulf %139, %139 : vector<8x32xf32>
    %cst_61 = arith.constant dense<0.000000e+00> : vector<8xf32>
    %141 = vector.multi_reduction <add>, %140, %cst_61 [1] : vector<8x32xf32> to vector<8xf32>
    %142 = vector.shape_cast %141 : vector<8xf32> to vector<8x1xf32>
    %cst_62 = arith.constant 3.200000e+01 : f32
    %143 = vector.broadcast %cst_62 : f32 to vector<8x1xf32>
    %144 = arith.divf %142, %143 : vector<8x1xf32>
    %145 = math.sqrt %144 : vector<8x1xf32>
    %146 = vector.broadcast %137 : vector<8x1xf32> to vector<8x32xf32>
    %147 = arith.subf %133, %146 : vector<8x32xf32>
    %cst_63 = arith.constant 9.99999997E-7 : f32
    %148 = vector.broadcast %cst_63 : f32 to vector<8x1xf32>
    %149 = arith.addf %145, %148 : vector<8x1xf32>
    %150 = math.rsqrt %149 : vector<8x1xf32>
    %151 = vector.broadcast %150 : vector<8x1xf32> to vector<8x32xf32>
    %152 = arith.mulf %147, %151 : vector<8x32xf32>
    %153 = vector.broadcast %130 : vector<1x32xf32> to vector<8x32xf32>
    %154 = arith.mulf %153, %152 : vector<8x32xf32>
    %155 = vector.broadcast %132 : vector<1x32xf32> to vector<8x32xf32>
    %156 = arith.addf %154, %155 : vector<8x32xf32>
    %c0_64 = arith.constant 0 : index
    %c0_65 = arith.constant 0 : index
    %c0_66 = arith.constant 0 : index
    %157 = vector.load %arg14[%c0_64, %c0_65, %c0_66] : memref<2x32x64xbf16, #tpu.memory_space<vmem>>, vector<1x32x64xbf16>
    %158 = vector.shape_cast %157 : vector<1x32x64xbf16> to vector<32x64xbf16>
    %c0_67 = arith.constant 0 : index
    %c0_68 = arith.constant 0 : index
    %c0_69 = arith.constant 0 : index
    %159 = vector.load %arg15[%c0_67, %c0_68, %c0_69] : memref<2x1x64xf32, #tpu.memory_space<vmem>>, vector<1x1x64xf32>
    %160 = vector.shape_cast %159 : vector<1x1x64xf32> to vector<1x64xf32>
    %c0_70 = arith.constant 0 : index
    %c0_71 = arith.constant 0 : index
    %c0_72 = arith.constant 0 : index
    %161 = vector.load %arg16[%c0_70, %c0_71, %c0_72] : memref<2x64x32xbf16, #tpu.memory_space<vmem>>, vector<1x64x32xbf16>
    %162 = vector.shape_cast %161 : vector<1x64x32xbf16> to vector<64x32xbf16>
    %c0_73 = arith.constant 0 : index
    %c0_74 = arith.constant 0 : index
    %c0_75 = arith.constant 0 : index
    %163 = vector.load %arg17[%c0_73, %c0_74, %c0_75] : memref<2x1x32xf32, #tpu.memory_space<vmem>>, vector<1x1x32xf32>
    %164 = vector.shape_cast %163 : vector<1x1x32xf32> to vector<1x32xf32>
    %165 = arith.truncf %156 : vector<8x32xf32> to vector<8x32xbf16>
    %cst_76 = arith.constant dense<0.000000e+00> : vector<8x64xf32>
    %166 = tpu.matmul %165, %158, %cst_76 {dimension_numbers = #tpu.dot_dimension_numbers<[1], [0], [0], [1], [0, 0, 1, 1], [], []>} : vector<8x32xbf16>, vector<32x64xbf16>, vector<8x64xf32> -> vector<8x64xf32>
    %167 = vector.broadcast %160 : vector<1x64xf32> to vector<8x64xf32>
    %168 = arith.addf %166, %167 : vector<8x64xf32>
    %cst_77 = arith.constant 0.000000e+00 : f32
    %169 = vector.broadcast %cst_77 : f32 to vector<8x64xf32>
    %170 = arith.maximumf %168, %169 : vector<8x64xf32>
    %171 = arith.truncf %170 : vector<8x64xf32> to vector<8x64xbf16>
    %cst_78 = arith.constant dense<0.000000e+00> : vector<8x32xf32>
    %172 = tpu.matmul %171, %162, %cst_78 {dimension_numbers = #tpu.dot_dimension_numbers<[1], [0], [0], [1], [0, 0, 1, 1], [], []>} : vector<8x64xbf16>, vector<64x32xbf16>, vector<8x32xf32> -> vector<8x32xf32>
    %173 = vector.broadcast %164 : vector<1x32xf32> to vector<8x32xf32>
    %174 = arith.addf %172, %173 : vector<8x32xf32>
    %c0_79 = arith.constant 0 : index
    %c0_80 = arith.constant 0 : index
    %c0_81 = arith.constant 0 : index
    %175 = vector.load %arg18[%c0_79, %c0_80, %c0_81] : memref<2x1x32xf32, #tpu.memory_space<vmem>>, vector<1x1x32xf32>
    %176 = vector.shape_cast %175 : vector<1x1x32xf32> to vector<1x32xf32>
    %c0_82 = arith.constant 0 : index
    %c0_83 = arith.constant 0 : index
    %c0_84 = arith.constant 0 : index
    %177 = vector.load %arg19[%c0_82, %c0_83, %c0_84] : memref<2x1x32xf32, #tpu.memory_space<vmem>>, vector<1x1x32xf32>
    %178 = vector.shape_cast %177 : vector<1x1x32xf32> to vector<1x32xf32>
    %179 = arith.addf %174, %156 : vector<8x32xf32>
    %cst_85 = arith.constant dense<0.000000e+00> : vector<8xf32>
    %180 = vector.multi_reduction <add>, %179, %cst_85 [1] : vector<8x32xf32> to vector<8xf32>
    %181 = vector.shape_cast %180 : vector<8xf32> to vector<8x1xf32>
    %cst_86 = arith.constant 3.200000e+01 : f32
    %182 = vector.broadcast %cst_86 : f32 to vector<8x1xf32>
    %183 = arith.divf %181, %182 : vector<8x1xf32>
    %184 = vector.broadcast %183 : vector<8x1xf32> to vector<8x32xf32>
    %185 = arith.subf %179, %184 : vector<8x32xf32>
    %186 = arith.mulf %185, %185 : vector<8x32xf32>
    %cst_87 = arith.constant dense<0.000000e+00> : vector<8xf32>
    %187 = vector.multi_reduction <add>, %186, %cst_87 [1] : vector<8x32xf32> to vector<8xf32>
    %188 = vector.shape_cast %187 : vector<8xf32> to vector<8x1xf32>
    %cst_88 = arith.constant 3.200000e+01 : f32
    %189 = vector.broadcast %cst_88 : f32 to vector<8x1xf32>
    %190 = arith.divf %188, %189 : vector<8x1xf32>
    %191 = math.sqrt %190 : vector<8x1xf32>
    %192 = vector.broadcast %183 : vector<8x1xf32> to vector<8x32xf32>
    %193 = arith.subf %179, %192 : vector<8x32xf32>
    %cst_89 = arith.constant 9.99999997E-7 : f32
    %194 = vector.broadcast %cst_89 : f32 to vector<8x1xf32>
    %195 = arith.addf %191, %194 : vector<8x1xf32>
    %196 = math.rsqrt %195 : vector<8x1xf32>
    %197 = vector.broadcast %196 : vector<8x1xf32> to vector<8x32xf32>
    %198 = arith.mulf %193, %197 : vector<8x32xf32>
    %199 = vector.broadcast %176 : vector<1x32xf32> to vector<8x32xf32>
    %200 = arith.mulf %199, %198 : vector<8x32xf32>
    %201 = vector.broadcast %178 : vector<1x32xf32> to vector<8x32xf32>
    %202 = arith.addf %200, %201 : vector<8x32xf32>
    %c1 = arith.constant 1 : index
    %c0_90 = arith.constant 0 : index
    %c0_91 = arith.constant 0 : index
    %203 = vector.load %arg6[%c1, %c0_90, %c0_91] : memref<2x32x32xbf16, #tpu.memory_space<vmem>>, vector<1x32x32xbf16>
    %204 = vector.shape_cast %203 : vector<1x32x32xbf16> to vector<32x32xbf16>
    %c1_92 = arith.constant 1 : index
    %c0_93 = arith.constant 0 : index
    %c0_94 = arith.constant 0 : index
    %205 = vector.load %arg7[%c1_92, %c0_93, %c0_94] : memref<2x1x32xf32, #tpu.memory_space<vmem>>, vector<1x1x32xf32>
    %206 = vector.shape_cast %205 : vector<1x1x32xf32> to vector<1x32xf32>
    %c1_95 = arith.constant 1 : index
    %c0_96 = arith.constant 0 : index
    %c0_97 = arith.constant 0 : index
    %207 = vector.load %arg8[%c1_95, %c0_96, %c0_97] : memref<2x32x64xbf16, #tpu.memory_space<vmem>>, vector<1x32x64xbf16>
    %208 = vector.shape_cast %207 : vector<1x32x64xbf16> to vector<32x64xbf16>
    %c1_98 = arith.constant 1 : index
    %c0_99 = arith.constant 0 : index
    %c0_100 = arith.constant 0 : index
    %209 = vector.load %arg9[%c1_98, %c0_99, %c0_100] : memref<2x1x64xf32, #tpu.memory_space<vmem>>, vector<1x1x64xf32>
    %210 = vector.shape_cast %209 : vector<1x1x64xf32> to vector<1x64xf32>
    %c1_101 = arith.constant 1 : index
    %c0_102 = arith.constant 0 : index
    %c0_103 = arith.constant 0 : index
    %211 = vector.load %arg10[%c1_101, %c0_102, %c0_103] : memref<2x32x32xbf16, #tpu.memory_space<vmem>>, vector<1x32x32xbf16>
    %212 = vector.shape_cast %211 : vector<1x32x32xbf16> to vector<32x32xbf16>
    %c1_104 = arith.constant 1 : index
    %c0_105 = arith.constant 0 : index
    %c0_106 = arith.constant 0 : index
    %213 = vector.load %arg11[%c1_104, %c0_105, %c0_106] : memref<2x1x32xf32, #tpu.memory_space<vmem>>, vector<1x1x32xf32>
    %214 = vector.shape_cast %213 : vector<1x1x32xf32> to vector<1x32xf32>
    %215 = arith.truncf %202 : vector<8x32xf32> to vector<8x32xbf16>
    %cst_107 = arith.constant dense<0.000000e+00> : vector<8x32xf32>
    %216 = tpu.matmul %215, %204, %cst_107 {dimension_numbers = #tpu.dot_dimension_numbers<[1], [0], [0], [1], [0, 0, 1, 1], [], []>} : vector<8x32xbf16>, vector<32x32xbf16>, vector<8x32xf32> -> vector<8x32xf32>
    %217 = vector.broadcast %206 : vector<1x32xf32> to vector<8x32xf32>
    %218 = arith.addf %216, %217 : vector<8x32xf32>
    %219 = arith.truncf %202 : vector<8x32xf32> to vector<8x32xbf16>
    %cst_108 = arith.constant dense<0.000000e+00> : vector<8x64xf32>
    %220 = tpu.matmul %219, %208, %cst_108 {dimension_numbers = #tpu.dot_dimension_numbers<[1], [0], [0], [1], [0, 0, 1, 1], [], []>} : vector<8x32xbf16>, vector<32x64xbf16>, vector<8x64xf32> -> vector<8x64xf32>
    %221 = vector.broadcast %210 : vector<1x64xf32> to vector<8x64xf32>
    %222 = arith.addf %220, %221 : vector<8x64xf32>
    %223 = vector.extract_strided_slice %218 {offsets = [0, 0], sizes = [8, 8], strides = [1, 1]} : vector<8x32xf32> to vector<8x8xf32>
    %224 = vector.extract_strided_slice %222 {offsets = [0, 0], sizes = [8, 8], strides = [1, 1]} : vector<8x64xf32> to vector<8x8xf32>
    %225 = vector.extract_strided_slice %222 {offsets = [0, 32], sizes = [8, 8], strides = [1, 1]} : vector<8x64xf32> to vector<8x8xf32>
    %226 = arith.truncf %223 : vector<8x8xf32> to vector<8x8xbf16>
    %227 = arith.truncf %224 : vector<8x8xf32> to vector<8x8xbf16>
    %cst_109 = arith.constant dense<0.000000e+00> : vector<8x8xf32>
    %228 = tpu.matmul %226, %227, %cst_109 {dimension_numbers = #tpu.dot_dimension_numbers<[1], [1], [0], [0], [0, 0, 1, 0], [], []>} : vector<8x8xbf16>, vector<8x8xbf16>, vector<8x8xf32> -> vector<8x8xf32>
    %cst_110 = arith.constant 0.353553385 : f32
    %229 = vector.broadcast %cst_110 : f32 to vector<8x8xf32>
    %230 = arith.mulf %228, %229 : vector<8x8xf32>
    %cst_111 = arith.constant 0.000000e+00 : f32
    %231 = vector.broadcast %cst_111 : f32 to vector<8x8xf32>
    %232 = arith.cmpf oeq, %3, %231 : vector<8x8xf32>
    %cst_112 = arith.constant -1.000000e+06 : f32
    %233 = vector.broadcast %cst_112 : f32 to vector<8x8xf32>
    %234 = arith.select %232, %233, %230 : vector<8x8xi1>, vector<8x8xf32>
    %cst_113 = arith.constant dense<0xFF800000> : vector<8xf32>
    %235 = vector.multi_reduction <maximumf>, %234, %cst_113 [1] : vector<8x8xf32> to vector<8xf32>
    %236 = vector.shape_cast %235 : vector<8xf32> to vector<8x1xf32>
    %237 = vector.broadcast %236 : vector<8x1xf32> to vector<8x8xf32>
    %238 = arith.subf %234, %237 : vector<8x8xf32>
    %239 = math.exp %238 : vector<8x8xf32>
    %cst_114 = arith.constant dense<0.000000e+00> : vector<8xf32>
    %240 = vector.multi_reduction <add>, %239, %cst_114 [1] : vector<8x8xf32> to vector<8xf32>
    %241 = vector.shape_cast %240 : vector<8xf32> to vector<8x1xf32>
    %242 = tpu.reciprocal %241 {approx = true} : vector<8x1xf32> -> vector<8x1xf32>
    %243 = vector.broadcast %242 : vector<8x1xf32> to vector<8x8xf32>
    %244 = arith.mulf %239, %243 : vector<8x8xf32>
    %245 = arith.truncf %244 : vector<8x8xf32> to vector<8x8xbf16>
    %246 = arith.truncf %225 : vector<8x8xf32> to vector<8x8xbf16>
    %cst_115 = arith.constant dense<0.000000e+00> : vector<8x8xf32>
    %247 = tpu.matmul %245, %246, %cst_115 {dimension_numbers = #tpu.dot_dimension_numbers<[1], [0], [0], [1], [0, 0, 1, 1], [], []>} : vector<8x8xbf16>, vector<8x8xbf16>, vector<8x8xf32> -> vector<8x8xf32>
    %248 = vector.extract_strided_slice %218 {offsets = [0, 8], sizes = [8, 8], strides = [1, 1]} : vector<8x32xf32> to vector<8x8xf32>
    %249 = vector.extract_strided_slice %222 {offsets = [0, 8], sizes = [8, 8], strides = [1, 1]} : vector<8x64xf32> to vector<8x8xf32>
    %250 = vector.extract_strided_slice %222 {offsets = [0, 40], sizes = [8, 8], strides = [1, 1]} : vector<8x64xf32> to vector<8x8xf32>
    %251 = arith.truncf %248 : vector<8x8xf32> to vector<8x8xbf16>
    %252 = arith.truncf %249 : vector<8x8xf32> to vector<8x8xbf16>
    %cst_116 = arith.constant dense<0.000000e+00> : vector<8x8xf32>
    %253 = tpu.matmul %251, %252, %cst_116 {dimension_numbers = #tpu.dot_dimension_numbers<[1], [1], [0], [0], [0, 0, 1, 0], [], []>} : vector<8x8xbf16>, vector<8x8xbf16>, vector<8x8xf32> -> vector<8x8xf32>
    %cst_117 = arith.constant 0.353553385 : f32
    %254 = vector.broadcast %cst_117 : f32 to vector<8x8xf32>
    %255 = arith.mulf %253, %254 : vector<8x8xf32>
    %cst_118 = arith.constant 0.000000e+00 : f32
    %256 = vector.broadcast %cst_118 : f32 to vector<8x8xf32>
    %257 = arith.cmpf oeq, %3, %256 : vector<8x8xf32>
    %cst_119 = arith.constant -1.000000e+06 : f32
    %258 = vector.broadcast %cst_119 : f32 to vector<8x8xf32>
    %259 = arith.select %257, %258, %255 : vector<8x8xi1>, vector<8x8xf32>
    %cst_120 = arith.constant dense<0xFF800000> : vector<8xf32>
    %260 = vector.multi_reduction <maximumf>, %259, %cst_120 [1] : vector<8x8xf32> to vector<8xf32>
    %261 = vector.shape_cast %260 : vector<8xf32> to vector<8x1xf32>
    %262 = vector.broadcast %261 : vector<8x1xf32> to vector<8x8xf32>
    %263 = arith.subf %259, %262 : vector<8x8xf32>
    %264 = math.exp %263 : vector<8x8xf32>
    %cst_121 = arith.constant dense<0.000000e+00> : vector<8xf32>
    %265 = vector.multi_reduction <add>, %264, %cst_121 [1] : vector<8x8xf32> to vector<8xf32>
    %266 = vector.shape_cast %265 : vector<8xf32> to vector<8x1xf32>
    %267 = tpu.reciprocal %266 {approx = true} : vector<8x1xf32> -> vector<8x1xf32>
    %268 = vector.broadcast %267 : vector<8x1xf32> to vector<8x8xf32>
    %269 = arith.mulf %264, %268 : vector<8x8xf32>
    %270 = arith.truncf %269 : vector<8x8xf32> to vector<8x8xbf16>
    %271 = arith.truncf %250 : vector<8x8xf32> to vector<8x8xbf16>
    %cst_122 = arith.constant dense<0.000000e+00> : vector<8x8xf32>
    %272 = tpu.matmul %270, %271, %cst_122 {dimension_numbers = #tpu.dot_dimension_numbers<[1], [0], [0], [1], [0, 0, 1, 1], [], []>} : vector<8x8xbf16>, vector<8x8xbf16>, vector<8x8xf32> -> vector<8x8xf32>
    %273 = vector.extract_strided_slice %218 {offsets = [0, 16], sizes = [8, 8], strides = [1, 1]} : vector<8x32xf32> to vector<8x8xf32>
    %274 = vector.extract_strided_slice %222 {offsets = [0, 16], sizes = [8, 8], strides = [1, 1]} : vector<8x64xf32> to vector<8x8xf32>
    %275 = vector.extract_strided_slice %222 {offsets = [0, 48], sizes = [8, 8], strides = [1, 1]} : vector<8x64xf32> to vector<8x8xf32>
    %276 = arith.truncf %273 : vector<8x8xf32> to vector<8x8xbf16>
    %277 = arith.truncf %274 : vector<8x8xf32> to vector<8x8xbf16>
    %cst_123 = arith.constant dense<0.000000e+00> : vector<8x8xf32>
    %278 = tpu.matmul %276, %277, %cst_123 {dimension_numbers = #tpu.dot_dimension_numbers<[1], [1], [0], [0], [0, 0, 1, 0], [], []>} : vector<8x8xbf16>, vector<8x8xbf16>, vector<8x8xf32> -> vector<8x8xf32>
    %cst_124 = arith.constant 0.353553385 : f32
    %279 = vector.broadcast %cst_124 : f32 to vector<8x8xf32>
    %280 = arith.mulf %278, %279 : vector<8x8xf32>
    %cst_125 = arith.constant 0.000000e+00 : f32
    %281 = vector.broadcast %cst_125 : f32 to vector<8x8xf32>
    %282 = arith.cmpf oeq, %3, %281 : vector<8x8xf32>
    %cst_126 = arith.constant -1.000000e+06 : f32
    %283 = vector.broadcast %cst_126 : f32 to vector<8x8xf32>
    %284 = arith.select %282, %283, %280 : vector<8x8xi1>, vector<8x8xf32>
    %cst_127 = arith.constant dense<0xFF800000> : vector<8xf32>
    %285 = vector.multi_reduction <maximumf>, %284, %cst_127 [1] : vector<8x8xf32> to vector<8xf32>
    %286 = vector.shape_cast %285 : vector<8xf32> to vector<8x1xf32>
    %287 = vector.broadcast %286 : vector<8x1xf32> to vector<8x8xf32>
    %288 = arith.subf %284, %287 : vector<8x8xf32>
    %289 = math.exp %288 : vector<8x8xf32>
    %cst_128 = arith.constant dense<0.000000e+00> : vector<8xf32>
    %290 = vector.multi_reduction <add>, %289, %cst_128 [1] : vector<8x8xf32> to vector<8xf32>
    %291 = vector.shape_cast %290 : vector<8xf32> to vector<8x1xf32>
    %292 = tpu.reciprocal %291 {approx = true} : vector<8x1xf32> -> vector<8x1xf32>
    %293 = vector.broadcast %292 : vector<8x1xf32> to vector<8x8xf32>
    %294 = arith.mulf %289, %293 : vector<8x8xf32>
    %295 = arith.truncf %294 : vector<8x8xf32> to vector<8x8xbf16>
    %296 = arith.truncf %275 : vector<8x8xf32> to vector<8x8xbf16>
    %cst_129 = arith.constant dense<0.000000e+00> : vector<8x8xf32>
    %297 = tpu.matmul %295, %296, %cst_129 {dimension_numbers = #tpu.dot_dimension_numbers<[1], [0], [0], [1], [0, 0, 1, 1], [], []>} : vector<8x8xbf16>, vector<8x8xbf16>, vector<8x8xf32> -> vector<8x8xf32>
    %298 = vector.extract_strided_slice %218 {offsets = [0, 24], sizes = [8, 8], strides = [1, 1]} : vector<8x32xf32> to vector<8x8xf32>
    %299 = vector.extract_strided_slice %222 {offsets = [0, 24], sizes = [8, 8], strides = [1, 1]} : vector<8x64xf32> to vector<8x8xf32>
    %300 = vector.extract_strided_slice %222 {offsets = [0, 56], sizes = [8, 8], strides = [1, 1]} : vector<8x64xf32> to vector<8x8xf32>
    %301 = arith.truncf %298 : vector<8x8xf32> to vector<8x8xbf16>
    %302 = arith.truncf %299 : vector<8x8xf32> to vector<8x8xbf16>
    %cst_130 = arith.constant dense<0.000000e+00> : vector<8x8xf32>
    %303 = tpu.matmul %301, %302, %cst_130 {dimension_numbers = #tpu.dot_dimension_numbers<[1], [1], [0], [0], [0, 0, 1, 0], [], []>} : vector<8x8xbf16>, vector<8x8xbf16>, vector<8x8xf32> -> vector<8x8xf32>
    %cst_131 = arith.constant 0.353553385 : f32
    %304 = vector.broadcast %cst_131 : f32 to vector<8x8xf32>
    %305 = arith.mulf %303, %304 : vector<8x8xf32>
    %cst_132 = arith.constant 0.000000e+00 : f32
    %306 = vector.broadcast %cst_132 : f32 to vector<8x8xf32>
    %307 = arith.cmpf oeq, %3, %306 : vector<8x8xf32>
    %cst_133 = arith.constant -1.000000e+06 : f32
    %308 = vector.broadcast %cst_133 : f32 to vector<8x8xf32>
    %309 = arith.select %307, %308, %305 : vector<8x8xi1>, vector<8x8xf32>
    %cst_134 = arith.constant dense<0xFF800000> : vector<8xf32>
    %310 = vector.multi_reduction <maximumf>, %309, %cst_134 [1] : vector<8x8xf32> to vector<8xf32>
    %311 = vector.shape_cast %310 : vector<8xf32> to vector<8x1xf32>
    %312 = vector.broadcast %311 : vector<8x1xf32> to vector<8x8xf32>
    %313 = arith.subf %309, %312 : vector<8x8xf32>
    %314 = math.exp %313 : vector<8x8xf32>
    %cst_135 = arith.constant dense<0.000000e+00> : vector<8xf32>
    %315 = vector.multi_reduction <add>, %314, %cst_135 [1] : vector<8x8xf32> to vector<8xf32>
    %316 = vector.shape_cast %315 : vector<8xf32> to vector<8x1xf32>
    %317 = tpu.reciprocal %316 {approx = true} : vector<8x1xf32> -> vector<8x1xf32>
    %318 = vector.broadcast %317 : vector<8x1xf32> to vector<8x8xf32>
    %319 = arith.mulf %314, %318 : vector<8x8xf32>
    %320 = arith.truncf %319 : vector<8x8xf32> to vector<8x8xbf16>
    %321 = arith.truncf %300 : vector<8x8xf32> to vector<8x8xbf16>
    %cst_136 = arith.constant dense<0.000000e+00> : vector<8x8xf32>
    %322 = tpu.matmul %320, %321, %cst_136 {dimension_numbers = #tpu.dot_dimension_numbers<[1], [0], [0], [1], [0, 0, 1, 1], [], []>} : vector<8x8xbf16>, vector<8x8xbf16>, vector<8x8xf32> -> vector<8x8xf32>
    %323 = tpu.concatenate %247, %272, %297, %322 in 1 : vector<8x8xf32>, vector<8x8xf32>, vector<8x8xf32>, vector<8x8xf32> -> vector<8x32xf32>
    %324 = arith.truncf %323 : vector<8x32xf32> to vector<8x32xbf16>
    %cst_137 = arith.constant dense<0.000000e+00> : vector<8x32xf32>
    %325 = tpu.matmul %324, %212, %cst_137 {dimension_numbers = #tpu.dot_dimension_numbers<[1], [0], [0], [1], [0, 0, 1, 1], [], []>} : vector<8x32xbf16>, vector<32x32xbf16>, vector<8x32xf32> -> vector<8x32xf32>
    %326 = vector.broadcast %214 : vector<1x32xf32> to vector<8x32xf32>
    %327 = arith.addf %325, %326 : vector<8x32xf32>
    %c1_138 = arith.constant 1 : index
    %c0_139 = arith.constant 0 : index
    %c0_140 = arith.constant 0 : index
    %328 = vector.load %arg12[%c1_138, %c0_139, %c0_140] : memref<2x1x32xf32, #tpu.memory_space<vmem>>, vector<1x1x32xf32>
    %329 = vector.shape_cast %328 : vector<1x1x32xf32> to vector<1x32xf32>
    %c1_141 = arith.constant 1 : index
    %c0_142 = arith.constant 0 : index
    %c0_143 = arith.constant 0 : index
    %330 = vector.load %arg13[%c1_141, %c0_142, %c0_143] : memref<2x1x32xf32, #tpu.memory_space<vmem>>, vector<1x1x32xf32>
    %331 = vector.shape_cast %330 : vector<1x1x32xf32> to vector<1x32xf32>
    %332 = arith.addf %327, %202 : vector<8x32xf32>
    %cst_144 = arith.constant dense<0.000000e+00> : vector<8xf32>
    %333 = vector.multi_reduction <add>, %332, %cst_144 [1] : vector<8x32xf32> to vector<8xf32>
    %334 = vector.shape_cast %333 : vector<8xf32> to vector<8x1xf32>
    %cst_145 = arith.constant 3.200000e+01 : f32
    %335 = vector.broadcast %cst_145 : f32 to vector<8x1xf32>
    %336 = arith.divf %334, %335 : vector<8x1xf32>
    %337 = vector.broadcast %336 : vector<8x1xf32> to vector<8x32xf32>
    %338 = arith.subf %332, %337 : vector<8x32xf32>
    %339 = arith.mulf %338, %338 : vector<8x32xf32>
    %cst_146 = arith.constant dense<0.000000e+00> : vector<8xf32>
    %340 = vector.multi_reduction <add>, %339, %cst_146 [1] : vector<8x32xf32> to vector<8xf32>
    %341 = vector.shape_cast %340 : vector<8xf32> to vector<8x1xf32>
    %cst_147 = arith.constant 3.200000e+01 : f32
    %342 = vector.broadcast %cst_147 : f32 to vector<8x1xf32>
    %343 = arith.divf %341, %342 : vector<8x1xf32>
    %344 = math.sqrt %343 : vector<8x1xf32>
    %345 = vector.broadcast %336 : vector<8x1xf32> to vector<8x32xf32>
    %346 = arith.subf %332, %345 : vector<8x32xf32>
    %cst_148 = arith.constant 9.99999997E-7 : f32
    %347 = vector.broadcast %cst_148 : f32 to vector<8x1xf32>
    %348 = arith.addf %344, %347 : vector<8x1xf32>
    %349 = math.rsqrt %348 : vector<8x1xf32>
    %350 = vector.broadcast %349 : vector<8x1xf32> to vector<8x32xf32>
    %351 = arith.mulf %346, %350 : vector<8x32xf32>
    %352 = vector.broadcast %329 : vector<1x32xf32> to vector<8x32xf32>
    %353 = arith.mulf %352, %351 : vector<8x32xf32>
    %354 = vector.broadcast %331 : vector<1x32xf32> to vector<8x32xf32>
    %355 = arith.addf %353, %354 : vector<8x32xf32>
    %c1_149 = arith.constant 1 : index
    %c0_150 = arith.constant 0 : index
    %c0_151 = arith.constant 0 : index
    %356 = vector.load %arg14[%c1_149, %c0_150, %c0_151] : memref<2x32x64xbf16, #tpu.memory_space<vmem>>, vector<1x32x64xbf16>
    %357 = vector.shape_cast %356 : vector<1x32x64xbf16> to vector<32x64xbf16>
    %c1_152 = arith.constant 1 : index
    %c0_153 = arith.constant 0 : index
    %c0_154 = arith.constant 0 : index
    %358 = vector.load %arg15[%c1_152, %c0_153, %c0_154] : memref<2x1x64xf32, #tpu.memory_space<vmem>>, vector<1x1x64xf32>
    %359 = vector.shape_cast %358 : vector<1x1x64xf32> to vector<1x64xf32>
    %c1_155 = arith.constant 1 : index
    %c0_156 = arith.constant 0 : index
    %c0_157 = arith.constant 0 : index
    %360 = vector.load %arg16[%c1_155, %c0_156, %c0_157] : memref<2x64x32xbf16, #tpu.memory_space<vmem>>, vector<1x64x32xbf16>
    %361 = vector.shape_cast %360 : vector<1x64x32xbf16> to vector<64x32xbf16>
    %c1_158 = arith.constant 1 : index
    %c0_159 = arith.constant 0 : index
    %c0_160 = arith.constant 0 : index
    %362 = vector.load %arg17[%c1_158, %c0_159, %c0_160] : memref<2x1x32xf32, #tpu.memory_space<vmem>>, vector<1x1x32xf32>
    %363 = vector.shape_cast %362 : vector<1x1x32xf32> to vector<1x32xf32>
    %364 = arith.truncf %355 : vector<8x32xf32> to vector<8x32xbf16>
    %cst_161 = arith.constant dense<0.000000e+00> : vector<8x64xf32>
    %365 = tpu.matmul %364, %357, %cst_161 {dimension_numbers = #tpu.dot_dimension_numbers<[1], [0], [0], [1], [0, 0, 1, 1], [], []>} : vector<8x32xbf16>, vector<32x64xbf16>, vector<8x64xf32> -> vector<8x64xf32>
    %366 = vector.broadcast %359 : vector<1x64xf32> to vector<8x64xf32>
    %367 = arith.addf %365, %366 : vector<8x64xf32>
    %cst_162 = arith.constant 0.000000e+00 : f32
    %368 = vector.broadcast %cst_162 : f32 to vector<8x64xf32>
    %369 = arith.maximumf %367, %368 : vector<8x64xf32>
    %370 = arith.truncf %369 : vector<8x64xf32> to vector<8x64xbf16>
    %cst_163 = arith.constant dense<0.000000e+00> : vector<8x32xf32>
    %371 = tpu.matmul %370, %361, %cst_163 {dimension_numbers = #tpu.dot_dimension_numbers<[1], [0], [0], [1], [0, 0, 1, 1], [], []>} : vector<8x64xbf16>, vector<64x32xbf16>, vector<8x32xf32> -> vector<8x32xf32>
    %372 = vector.broadcast %363 : vector<1x32xf32> to vector<8x32xf32>
    %373 = arith.addf %371, %372 : vector<8x32xf32>
    %c1_164 = arith.constant 1 : index
    %c0_165 = arith.constant 0 : index
    %c0_166 = arith.constant 0 : index
    %374 = vector.load %arg18[%c1_164, %c0_165, %c0_166] : memref<2x1x32xf32, #tpu.memory_space<vmem>>, vector<1x1x32xf32>
    %375 = vector.shape_cast %374 : vector<1x1x32xf32> to vector<1x32xf32>
    %c1_167 = arith.constant 1 : index
    %c0_168 = arith.constant 0 : index
    %c0_169 = arith.constant 0 : index
    %376 = vector.load %arg19[%c1_167, %c0_168, %c0_169] : memref<2x1x32xf32, #tpu.memory_space<vmem>>, vector<1x1x32xf32>
    %377 = vector.shape_cast %376 : vector<1x1x32xf32> to vector<1x32xf32>
    %378 = arith.addf %373, %355 : vector<8x32xf32>
    %cst_170 = arith.constant dense<0.000000e+00> : vector<8xf32>
    %379 = vector.multi_reduction <add>, %378, %cst_170 [1] : vector<8x32xf32> to vector<8xf32>
    %380 = vector.shape_cast %379 : vector<8xf32> to vector<8x1xf32>
    %cst_171 = arith.constant 3.200000e+01 : f32
    %381 = vector.broadcast %cst_171 : f32 to vector<8x1xf32>
    %382 = arith.divf %380, %381 : vector<8x1xf32>
    %383 = vector.broadcast %382 : vector<8x1xf32> to vector<8x32xf32>
    %384 = arith.subf %378, %383 : vector<8x32xf32>
    %385 = arith.mulf %384, %384 : vector<8x32xf32>
    %cst_172 = arith.constant dense<0.000000e+00> : vector<8xf32>
    %386 = vector.multi_reduction <add>, %385, %cst_172 [1] : vector<8x32xf32> to vector<8xf32>
    %387 = vector.shape_cast %386 : vector<8xf32> to vector<8x1xf32>
    %cst_173 = arith.constant 3.200000e+01 : f32
    %388 = vector.broadcast %cst_173 : f32 to vector<8x1xf32>
    %389 = arith.divf %387, %388 : vector<8x1xf32>
    %390 = math.sqrt %389 : vector<8x1xf32>
    %391 = vector.broadcast %382 : vector<8x1xf32> to vector<8x32xf32>
    %392 = arith.subf %378, %391 : vector<8x32xf32>
    %cst_174 = arith.constant 9.99999997E-7 : f32
    %393 = vector.broadcast %cst_174 : f32 to vector<8x1xf32>
    %394 = arith.addf %390, %393 : vector<8x1xf32>
    %395 = math.rsqrt %394 : vector<8x1xf32>
    %396 = vector.broadcast %395 : vector<8x1xf32> to vector<8x32xf32>
    %397 = arith.mulf %392, %396 : vector<8x32xf32>
    %398 = vector.broadcast %375 : vector<1x32xf32> to vector<8x32xf32>
    %399 = arith.mulf %398, %397 : vector<8x32xf32>
    %400 = vector.broadcast %377 : vector<1x32xf32> to vector<8x32xf32>
    %401 = arith.addf %399, %400 : vector<8x32xf32>
    %c0_175 = arith.constant 0 : index
    %c0_176 = arith.constant 0 : index
    %c0_177 = arith.constant 0 : index
    %402 = vector.load %arg2[%c0_175, %c0_176, %c0_177] : memref<1x8x32xf32, #tpu.memory_space<vmem>>, vector<1x8x32xf32>
    %403 = vector.shape_cast %402 : vector<1x8x32xf32> to vector<8x32xf32>
    %c0_178 = arith.constant 0 : index
    %c0_179 = arith.constant 0 : index
    %c0_180 = arith.constant 0 : index
    %404 = vector.load %arg4[%c0_178, %c0_179, %c0_180] : memref<1x8x8xf32, #tpu.memory_space<vmem>>, vector<1x8x8xf32>
    %405 = vector.shape_cast %404 : vector<1x8x8xf32> to vector<8x8xf32>
    %c0_181 = arith.constant 0 : index
    %c0_182 = arith.constant 0 : index
    %c0_183 = arith.constant 0 : index
    %406 = vector.load %arg5[%c0_181, %c0_182, %c0_183] : memref<1x8x8xf32, #tpu.memory_space<vmem>>, vector<1x8x8xf32>
    %407 = vector.shape_cast %406 : vector<1x8x8xf32> to vector<8x8xf32>
    %c0_184 = arith.constant 0 : index
    %c0_185 = arith.constant 0 : index
    %c0_186 = arith.constant 0 : index
    %408 = vector.load %arg20[%c0_184, %c0_185, %c0_186] : memref<2x32x32xbf16, #tpu.memory_space<vmem>>, vector<1x32x32xbf16>
    %409 = vector.shape_cast %408 : vector<1x32x32xbf16> to vector<32x32xbf16>
    %c0_187 = arith.constant 0 : index
    %c0_188 = arith.constant 0 : index
    %c0_189 = arith.constant 0 : index
    %410 = vector.load %arg21[%c0_187, %c0_188, %c0_189] : memref<2x1x32xf32, #tpu.memory_space<vmem>>, vector<1x1x32xf32>
    %411 = vector.shape_cast %410 : vector<1x1x32xf32> to vector<1x32xf32>
    %c0_190 = arith.constant 0 : index
    %c0_191 = arith.constant 0 : index
    %c0_192 = arith.constant 0 : index
    %412 = vector.load %arg22[%c0_190, %c0_191, %c0_192] : memref<2x32x64xbf16, #tpu.memory_space<vmem>>, vector<1x32x64xbf16>
    %413 = vector.shape_cast %412 : vector<1x32x64xbf16> to vector<32x64xbf16>
    %c0_193 = arith.constant 0 : index
    %c0_194 = arith.constant 0 : index
    %c0_195 = arith.constant 0 : index
    %414 = vector.load %arg23[%c0_193, %c0_194, %c0_195] : memref<2x1x64xf32, #tpu.memory_space<vmem>>, vector<1x1x64xf32>
    %415 = vector.shape_cast %414 : vector<1x1x64xf32> to vector<1x64xf32>
    %c0_196 = arith.constant 0 : index
    %c0_197 = arith.constant 0 : index
    %c0_198 = arith.constant 0 : index
    %416 = vector.load %arg24[%c0_196, %c0_197, %c0_198] : memref<2x32x32xbf16, #tpu.memory_space<vmem>>, vector<1x32x32xbf16>
    %417 = vector.shape_cast %416 : vector<1x32x32xbf16> to vector<32x32xbf16>
    %c0_199 = arith.constant 0 : index
    %c0_200 = arith.constant 0 : index
    %c0_201 = arith.constant 0 : index
    %418 = vector.load %arg25[%c0_199, %c0_200, %c0_201] : memref<2x1x32xf32, #tpu.memory_space<vmem>>, vector<1x1x32xf32>
    %419 = vector.shape_cast %418 : vector<1x1x32xf32> to vector<1x32xf32>
    %420 = arith.truncf %403 : vector<8x32xf32> to vector<8x32xbf16>
    %cst_202 = arith.constant dense<0.000000e+00> : vector<8x32xf32>
    %421 = tpu.matmul %420, %409, %cst_202 {dimension_numbers = #tpu.dot_dimension_numbers<[1], [0], [0], [1], [0, 0, 1, 1], [], []>} : vector<8x32xbf16>, vector<32x32xbf16>, vector<8x32xf32> -> vector<8x32xf32>
    %422 = vector.broadcast %411 : vector<1x32xf32> to vector<8x32xf32>
    %423 = arith.addf %421, %422 : vector<8x32xf32>
    %424 = arith.truncf %403 : vector<8x32xf32> to vector<8x32xbf16>
    %cst_203 = arith.constant dense<0.000000e+00> : vector<8x64xf32>
    %425 = tpu.matmul %424, %413, %cst_203 {dimension_numbers = #tpu.dot_dimension_numbers<[1], [0], [0], [1], [0, 0, 1, 1], [], []>} : vector<8x32xbf16>, vector<32x64xbf16>, vector<8x64xf32> -> vector<8x64xf32>
    %426 = vector.broadcast %415 : vector<1x64xf32> to vector<8x64xf32>
    %427 = arith.addf %425, %426 : vector<8x64xf32>
    %428 = vector.extract_strided_slice %423 {offsets = [0, 0], sizes = [8, 8], strides = [1, 1]} : vector<8x32xf32> to vector<8x8xf32>
    %429 = vector.extract_strided_slice %427 {offsets = [0, 0], sizes = [8, 8], strides = [1, 1]} : vector<8x64xf32> to vector<8x8xf32>
    %430 = vector.extract_strided_slice %427 {offsets = [0, 32], sizes = [8, 8], strides = [1, 1]} : vector<8x64xf32> to vector<8x8xf32>
    %431 = arith.truncf %428 : vector<8x8xf32> to vector<8x8xbf16>
    %432 = arith.truncf %429 : vector<8x8xf32> to vector<8x8xbf16>
    %cst_204 = arith.constant dense<0.000000e+00> : vector<8x8xf32>
    %433 = tpu.matmul %431, %432, %cst_204 {dimension_numbers = #tpu.dot_dimension_numbers<[1], [1], [0], [0], [0, 0, 1, 0], [], []>} : vector<8x8xbf16>, vector<8x8xbf16>, vector<8x8xf32> -> vector<8x8xf32>
    %cst_205 = arith.constant 0.353553385 : f32
    %434 = vector.broadcast %cst_205 : f32 to vector<8x8xf32>
    %435 = arith.mulf %433, %434 : vector<8x8xf32>
    %cst_206 = arith.constant 0.000000e+00 : f32
    %436 = vector.broadcast %cst_206 : f32 to vector<8x8xf32>
    %437 = arith.cmpf oeq, %405, %436 : vector<8x8xf32>
    %cst_207 = arith.constant -1.000000e+06 : f32
    %438 = vector.broadcast %cst_207 : f32 to vector<8x8xf32>
    %439 = arith.select %437, %438, %435 : vector<8x8xi1>, vector<8x8xf32>
    %cst_208 = arith.constant dense<0xFF800000> : vector<8xf32>
    %440 = vector.multi_reduction <maximumf>, %439, %cst_208 [1] : vector<8x8xf32> to vector<8xf32>
    %441 = vector.shape_cast %440 : vector<8xf32> to vector<8x1xf32>
    %442 = vector.broadcast %441 : vector<8x1xf32> to vector<8x8xf32>
    %443 = arith.subf %439, %442 : vector<8x8xf32>
    %444 = math.exp %443 : vector<8x8xf32>
    %cst_209 = arith.constant dense<0.000000e+00> : vector<8xf32>
    %445 = vector.multi_reduction <add>, %444, %cst_209 [1] : vector<8x8xf32> to vector<8xf32>
    %446 = vector.shape_cast %445 : vector<8xf32> to vector<8x1xf32>
    %447 = tpu.reciprocal %446 {approx = true} : vector<8x1xf32> -> vector<8x1xf32>
    %448 = vector.broadcast %447 : vector<8x1xf32> to vector<8x8xf32>
    %449 = arith.mulf %444, %448 : vector<8x8xf32>
    %450 = arith.truncf %449 : vector<8x8xf32> to vector<8x8xbf16>
    %451 = arith.truncf %430 : vector<8x8xf32> to vector<8x8xbf16>
    %cst_210 = arith.constant dense<0.000000e+00> : vector<8x8xf32>
    %452 = tpu.matmul %450, %451, %cst_210 {dimension_numbers = #tpu.dot_dimension_numbers<[1], [0], [0], [1], [0, 0, 1, 1], [], []>} : vector<8x8xbf16>, vector<8x8xbf16>, vector<8x8xf32> -> vector<8x8xf32>
    %453 = vector.extract_strided_slice %423 {offsets = [0, 8], sizes = [8, 8], strides = [1, 1]} : vector<8x32xf32> to vector<8x8xf32>
    %454 = vector.extract_strided_slice %427 {offsets = [0, 8], sizes = [8, 8], strides = [1, 1]} : vector<8x64xf32> to vector<8x8xf32>
    %455 = vector.extract_strided_slice %427 {offsets = [0, 40], sizes = [8, 8], strides = [1, 1]} : vector<8x64xf32> to vector<8x8xf32>
    %456 = arith.truncf %453 : vector<8x8xf32> to vector<8x8xbf16>
    %457 = arith.truncf %454 : vector<8x8xf32> to vector<8x8xbf16>
    %cst_211 = arith.constant dense<0.000000e+00> : vector<8x8xf32>
    %458 = tpu.matmul %456, %457, %cst_211 {dimension_numbers = #tpu.dot_dimension_numbers<[1], [1], [0], [0], [0, 0, 1, 0], [], []>} : vector<8x8xbf16>, vector<8x8xbf16>, vector<8x8xf32> -> vector<8x8xf32>
    %cst_212 = arith.constant 0.353553385 : f32
    %459 = vector.broadcast %cst_212 : f32 to vector<8x8xf32>
    %460 = arith.mulf %458, %459 : vector<8x8xf32>
    %cst_213 = arith.constant 0.000000e+00 : f32
    %461 = vector.broadcast %cst_213 : f32 to vector<8x8xf32>
    %462 = arith.cmpf oeq, %405, %461 : vector<8x8xf32>
    %cst_214 = arith.constant -1.000000e+06 : f32
    %463 = vector.broadcast %cst_214 : f32 to vector<8x8xf32>
    %464 = arith.select %462, %463, %460 : vector<8x8xi1>, vector<8x8xf32>
    %cst_215 = arith.constant dense<0xFF800000> : vector<8xf32>
    %465 = vector.multi_reduction <maximumf>, %464, %cst_215 [1] : vector<8x8xf32> to vector<8xf32>
    %466 = vector.shape_cast %465 : vector<8xf32> to vector<8x1xf32>
    %467 = vector.broadcast %466 : vector<8x1xf32> to vector<8x8xf32>
    %468 = arith.subf %464, %467 : vector<8x8xf32>
    %469 = math.exp %468 : vector<8x8xf32>
    %cst_216 = arith.constant dense<0.000000e+00> : vector<8xf32>
    %470 = vector.multi_reduction <add>, %469, %cst_216 [1] : vector<8x8xf32> to vector<8xf32>
    %471 = vector.shape_cast %470 : vector<8xf32> to vector<8x1xf32>
    %472 = tpu.reciprocal %471 {approx = true} : vector<8x1xf32> -> vector<8x1xf32>
    %473 = vector.broadcast %472 : vector<8x1xf32> to vector<8x8xf32>
    %474 = arith.mulf %469, %473 : vector<8x8xf32>
    %475 = arith.truncf %474 : vector<8x8xf32> to vector<8x8xbf16>
    %476 = arith.truncf %455 : vector<8x8xf32> to vector<8x8xbf16>
    %cst_217 = arith.constant dense<0.000000e+00> : vector<8x8xf32>
    %477 = tpu.matmul %475, %476, %cst_217 {dimension_numbers = #tpu.dot_dimension_numbers<[1], [0], [0], [1], [0, 0, 1, 1], [], []>} : vector<8x8xbf16>, vector<8x8xbf16>, vector<8x8xf32> -> vector<8x8xf32>
    %478 = vector.extract_strided_slice %423 {offsets = [0, 16], sizes = [8, 8], strides = [1, 1]} : vector<8x32xf32> to vector<8x8xf32>
    %479 = vector.extract_strided_slice %427 {offsets = [0, 16], sizes = [8, 8], strides = [1, 1]} : vector<8x64xf32> to vector<8x8xf32>
    %480 = vector.extract_strided_slice %427 {offsets = [0, 48], sizes = [8, 8], strides = [1, 1]} : vector<8x64xf32> to vector<8x8xf32>
    %481 = arith.truncf %478 : vector<8x8xf32> to vector<8x8xbf16>
    %482 = arith.truncf %479 : vector<8x8xf32> to vector<8x8xbf16>
    %cst_218 = arith.constant dense<0.000000e+00> : vector<8x8xf32>
    %483 = tpu.matmul %481, %482, %cst_218 {dimension_numbers = #tpu.dot_dimension_numbers<[1], [1], [0], [0], [0, 0, 1, 0], [], []>} : vector<8x8xbf16>, vector<8x8xbf16>, vector<8x8xf32> -> vector<8x8xf32>
    %cst_219 = arith.constant 0.353553385 : f32
    %484 = vector.broadcast %cst_219 : f32 to vector<8x8xf32>
    %485 = arith.mulf %483, %484 : vector<8x8xf32>
    %cst_220 = arith.constant 0.000000e+00 : f32
    %486 = vector.broadcast %cst_220 : f32 to vector<8x8xf32>
    %487 = arith.cmpf oeq, %405, %486 : vector<8x8xf32>
    %cst_221 = arith.constant -1.000000e+06 : f32
    %488 = vector.broadcast %cst_221 : f32 to vector<8x8xf32>
    %489 = arith.select %487, %488, %485 : vector<8x8xi1>, vector<8x8xf32>
    %cst_222 = arith.constant dense<0xFF800000> : vector<8xf32>
    %490 = vector.multi_reduction <maximumf>, %489, %cst_222 [1] : vector<8x8xf32> to vector<8xf32>
    %491 = vector.shape_cast %490 : vector<8xf32> to vector<8x1xf32>
    %492 = vector.broadcast %491 : vector<8x1xf32> to vector<8x8xf32>
    %493 = arith.subf %489, %492 : vector<8x8xf32>
    %494 = math.exp %493 : vector<8x8xf32>
    %cst_223 = arith.constant dense<0.000000e+00> : vector<8xf32>
    %495 = vector.multi_reduction <add>, %494, %cst_223 [1] : vector<8x8xf32> to vector<8xf32>
    %496 = vector.shape_cast %495 : vector<8xf32> to vector<8x1xf32>
    %497 = tpu.reciprocal %496 {approx = true} : vector<8x1xf32> -> vector<8x1xf32>
    %498 = vector.broadcast %497 : vector<8x1xf32> to vector<8x8xf32>
    %499 = arith.mulf %494, %498 : vector<8x8xf32>
    %500 = arith.truncf %499 : vector<8x8xf32> to vector<8x8xbf16>
    %501 = arith.truncf %480 : vector<8x8xf32> to vector<8x8xbf16>
    %cst_224 = arith.constant dense<0.000000e+00> : vector<8x8xf32>
    %502 = tpu.matmul %500, %501, %cst_224 {dimension_numbers = #tpu.dot_dimension_numbers<[1], [0], [0], [1], [0, 0, 1, 1], [], []>} : vector<8x8xbf16>, vector<8x8xbf16>, vector<8x8xf32> -> vector<8x8xf32>
    %503 = vector.extract_strided_slice %423 {offsets = [0, 24], sizes = [8, 8], strides = [1, 1]} : vector<8x32xf32> to vector<8x8xf32>
    %504 = vector.extract_strided_slice %427 {offsets = [0, 24], sizes = [8, 8], strides = [1, 1]} : vector<8x64xf32> to vector<8x8xf32>
    %505 = vector.extract_strided_slice %427 {offsets = [0, 56], sizes = [8, 8], strides = [1, 1]} : vector<8x64xf32> to vector<8x8xf32>
    %506 = arith.truncf %503 : vector<8x8xf32> to vector<8x8xbf16>
    %507 = arith.truncf %504 : vector<8x8xf32> to vector<8x8xbf16>
    %cst_225 = arith.constant dense<0.000000e+00> : vector<8x8xf32>
    %508 = tpu.matmul %506, %507, %cst_225 {dimension_numbers = #tpu.dot_dimension_numbers<[1], [1], [0], [0], [0, 0, 1, 0], [], []>} : vector<8x8xbf16>, vector<8x8xbf16>, vector<8x8xf32> -> vector<8x8xf32>
    %cst_226 = arith.constant 0.353553385 : f32
    %509 = vector.broadcast %cst_226 : f32 to vector<8x8xf32>
    %510 = arith.mulf %508, %509 : vector<8x8xf32>
    %cst_227 = arith.constant 0.000000e+00 : f32
    %511 = vector.broadcast %cst_227 : f32 to vector<8x8xf32>
    %512 = arith.cmpf oeq, %405, %511 : vector<8x8xf32>
    %cst_228 = arith.constant -1.000000e+06 : f32
    %513 = vector.broadcast %cst_228 : f32 to vector<8x8xf32>
    %514 = arith.select %512, %513, %510 : vector<8x8xi1>, vector<8x8xf32>
    %cst_229 = arith.constant dense<0xFF800000> : vector<8xf32>
    %515 = vector.multi_reduction <maximumf>, %514, %cst_229 [1] : vector<8x8xf32> to vector<8xf32>
    %516 = vector.shape_cast %515 : vector<8xf32> to vector<8x1xf32>
    %517 = vector.broadcast %516 : vector<8x1xf32> to vector<8x8xf32>
    %518 = arith.subf %514, %517 : vector<8x8xf32>
    %519 = math.exp %518 : vector<8x8xf32>
    %cst_230 = arith.constant dense<0.000000e+00> : vector<8xf32>
    %520 = vector.multi_reduction <add>, %519, %cst_230 [1] : vector<8x8xf32> to vector<8xf32>
    %521 = vector.shape_cast %520 : vector<8xf32> to vector<8x1xf32>
    %522 = tpu.reciprocal %521 {approx = true} : vector<8x1xf32> -> vector<8x1xf32>
    %523 = vector.broadcast %522 : vector<8x1xf32> to vector<8x8xf32>
    %524 = arith.mulf %519, %523 : vector<8x8xf32>
    %525 = arith.truncf %524 : vector<8x8xf32> to vector<8x8xbf16>
    %526 = arith.truncf %505 : vector<8x8xf32> to vector<8x8xbf16>
    %cst_231 = arith.constant dense<0.000000e+00> : vector<8x8xf32>
    %527 = tpu.matmul %525, %526, %cst_231 {dimension_numbers = #tpu.dot_dimension_numbers<[1], [0], [0], [1], [0, 0, 1, 1], [], []>} : vector<8x8xbf16>, vector<8x8xbf16>, vector<8x8xf32> -> vector<8x8xf32>
    %528 = tpu.concatenate %452, %477, %502, %527 in 1 : vector<8x8xf32>, vector<8x8xf32>, vector<8x8xf32>, vector<8x8xf32> -> vector<8x32xf32>
    %529 = arith.truncf %528 : vector<8x32xf32> to vector<8x32xbf16>
    %cst_232 = arith.constant dense<0.000000e+00> : vector<8x32xf32>
    %530 = tpu.matmul %529, %417, %cst_232 {dimension_numbers = #tpu.dot_dimension_numbers<[1], [0], [0], [1], [0, 0, 1, 1], [], []>} : vector<8x32xbf16>, vector<32x32xbf16>, vector<8x32xf32> -> vector<8x32xf32>
    %531 = vector.broadcast %419 : vector<1x32xf32> to vector<8x32xf32>
    %532 = arith.addf %530, %531 : vector<8x32xf32>
    %c0_233 = arith.constant 0 : index
    %c0_234 = arith.constant 0 : index
    %c0_235 = arith.constant 0 : index
    %533 = vector.load %arg26[%c0_233, %c0_234, %c0_235] : memref<2x1x32xf32, #tpu.memory_space<vmem>>, vector<1x1x32xf32>
    %534 = vector.shape_cast %533 : vector<1x1x32xf32> to vector<1x32xf32>
    %c0_236 = arith.constant 0 : index
    %c0_237 = arith.constant 0 : index
    %c0_238 = arith.constant 0 : index
    %535 = vector.load %arg27[%c0_236, %c0_237, %c0_238] : memref<2x1x32xf32, #tpu.memory_space<vmem>>, vector<1x1x32xf32>
    %536 = vector.shape_cast %535 : vector<1x1x32xf32> to vector<1x32xf32>
    %537 = arith.addf %532, %403 : vector<8x32xf32>
    %cst_239 = arith.constant dense<0.000000e+00> : vector<8xf32>
    %538 = vector.multi_reduction <add>, %537, %cst_239 [1] : vector<8x32xf32> to vector<8xf32>
    %539 = vector.shape_cast %538 : vector<8xf32> to vector<8x1xf32>
    %cst_240 = arith.constant 3.200000e+01 : f32
    %540 = vector.broadcast %cst_240 : f32 to vector<8x1xf32>
    %541 = arith.divf %539, %540 : vector<8x1xf32>
    %542 = vector.broadcast %541 : vector<8x1xf32> to vector<8x32xf32>
    %543 = arith.subf %537, %542 : vector<8x32xf32>
    %544 = arith.mulf %543, %543 : vector<8x32xf32>
    %cst_241 = arith.constant dense<0.000000e+00> : vector<8xf32>
    %545 = vector.multi_reduction <add>, %544, %cst_241 [1] : vector<8x32xf32> to vector<8xf32>
    %546 = vector.shape_cast %545 : vector<8xf32> to vector<8x1xf32>
    %cst_242 = arith.constant 3.200000e+01 : f32
    %547 = vector.broadcast %cst_242 : f32 to vector<8x1xf32>
    %548 = arith.divf %546, %547 : vector<8x1xf32>
    %549 = math.sqrt %548 : vector<8x1xf32>
    %550 = vector.broadcast %541 : vector<8x1xf32> to vector<8x32xf32>
    %551 = arith.subf %537, %550 : vector<8x32xf32>
    %cst_243 = arith.constant 9.99999997E-7 : f32
    %552 = vector.broadcast %cst_243 : f32 to vector<8x1xf32>
    %553 = arith.addf %549, %552 : vector<8x1xf32>
    %554 = math.rsqrt %553 : vector<8x1xf32>
    %555 = vector.broadcast %554 : vector<8x1xf32> to vector<8x32xf32>
    %556 = arith.mulf %551, %555 : vector<8x32xf32>
    %557 = vector.broadcast %534 : vector<1x32xf32> to vector<8x32xf32>
    %558 = arith.mulf %557, %556 : vector<8x32xf32>
    %559 = vector.broadcast %536 : vector<1x32xf32> to vector<8x32xf32>
    %560 = arith.addf %558, %559 : vector<8x32xf32>
    %c0_244 = arith.constant 0 : index
    %c0_245 = arith.constant 0 : index
    %c0_246 = arith.constant 0 : index
    %561 = vector.load %arg28[%c0_244, %c0_245, %c0_246] : memref<2x32x32xbf16, #tpu.memory_space<vmem>>, vector<1x32x32xbf16>
    %562 = vector.shape_cast %561 : vector<1x32x32xbf16> to vector<32x32xbf16>
    %c0_247 = arith.constant 0 : index
    %c0_248 = arith.constant 0 : index
    %c0_249 = arith.constant 0 : index
    %563 = vector.load %arg29[%c0_247, %c0_248, %c0_249] : memref<2x1x32xf32, #tpu.memory_space<vmem>>, vector<1x1x32xf32>
    %564 = vector.shape_cast %563 : vector<1x1x32xf32> to vector<1x32xf32>
    %c0_250 = arith.constant 0 : index
    %c0_251 = arith.constant 0 : index
    %c0_252 = arith.constant 0 : index
    %565 = vector.load %arg30[%c0_250, %c0_251, %c0_252] : memref<2x32x64xbf16, #tpu.memory_space<vmem>>, vector<1x32x64xbf16>
    %566 = vector.shape_cast %565 : vector<1x32x64xbf16> to vector<32x64xbf16>
    %c0_253 = arith.constant 0 : index
    %c0_254 = arith.constant 0 : index
    %c0_255 = arith.constant 0 : index
    %567 = vector.load %arg31[%c0_253, %c0_254, %c0_255] : memref<2x1x64xf32, #tpu.memory_space<vmem>>, vector<1x1x64xf32>
    %568 = vector.shape_cast %567 : vector<1x1x64xf32> to vector<1x64xf32>
    %c0_256 = arith.constant 0 : index
    %c0_257 = arith.constant 0 : index
    %c0_258 = arith.constant 0 : index
    %569 = vector.load %arg32[%c0_256, %c0_257, %c0_258] : memref<2x32x32xbf16, #tpu.memory_space<vmem>>, vector<1x32x32xbf16>
    %570 = vector.shape_cast %569 : vector<1x32x32xbf16> to vector<32x32xbf16>
    %c0_259 = arith.constant 0 : index
    %c0_260 = arith.constant 0 : index
    %c0_261 = arith.constant 0 : index
    %571 = vector.load %arg33[%c0_259, %c0_260, %c0_261] : memref<2x1x32xf32, #tpu.memory_space<vmem>>, vector<1x1x32xf32>
    %572 = vector.shape_cast %571 : vector<1x1x32xf32> to vector<1x32xf32>
    %573 = arith.truncf %560 : vector<8x32xf32> to vector<8x32xbf16>
    %cst_262 = arith.constant dense<0.000000e+00> : vector<8x32xf32>
    %574 = tpu.matmul %573, %562, %cst_262 {dimension_numbers = #tpu.dot_dimension_numbers<[1], [0], [0], [1], [0, 0, 1, 1], [], []>} : vector<8x32xbf16>, vector<32x32xbf16>, vector<8x32xf32> -> vector<8x32xf32>
    %575 = vector.broadcast %564 : vector<1x32xf32> to vector<8x32xf32>
    %576 = arith.addf %574, %575 : vector<8x32xf32>
    %577 = arith.truncf %401 : vector<8x32xf32> to vector<8x32xbf16>
    %cst_263 = arith.constant dense<0.000000e+00> : vector<8x64xf32>
    %578 = tpu.matmul %577, %566, %cst_263 {dimension_numbers = #tpu.dot_dimension_numbers<[1], [0], [0], [1], [0, 0, 1, 1], [], []>} : vector<8x32xbf16>, vector<32x64xbf16>, vector<8x64xf32> -> vector<8x64xf32>
    %579 = vector.broadcast %568 : vector<1x64xf32> to vector<8x64xf32>
    %580 = arith.addf %578, %579 : vector<8x64xf32>
    %581 = vector.extract_strided_slice %576 {offsets = [0, 0], sizes = [8, 8], strides = [1, 1]} : vector<8x32xf32> to vector<8x8xf32>
    %582 = vector.extract_strided_slice %580 {offsets = [0, 0], sizes = [8, 8], strides = [1, 1]} : vector<8x64xf32> to vector<8x8xf32>
    %583 = vector.extract_strided_slice %580 {offsets = [0, 32], sizes = [8, 8], strides = [1, 1]} : vector<8x64xf32> to vector<8x8xf32>
    %584 = arith.truncf %581 : vector<8x8xf32> to vector<8x8xbf16>
    %585 = arith.truncf %582 : vector<8x8xf32> to vector<8x8xbf16>
    %cst_264 = arith.constant dense<0.000000e+00> : vector<8x8xf32>
    %586 = tpu.matmul %584, %585, %cst_264 {dimension_numbers = #tpu.dot_dimension_numbers<[1], [1], [0], [0], [0, 0, 1, 0], [], []>} : vector<8x8xbf16>, vector<8x8xbf16>, vector<8x8xf32> -> vector<8x8xf32>
    %cst_265 = arith.constant 0.353553385 : f32
    %587 = vector.broadcast %cst_265 : f32 to vector<8x8xf32>
    %588 = arith.mulf %586, %587 : vector<8x8xf32>
    %cst_266 = arith.constant 0.000000e+00 : f32
    %589 = vector.broadcast %cst_266 : f32 to vector<8x8xf32>
    %590 = arith.cmpf oeq, %407, %589 : vector<8x8xf32>
    %cst_267 = arith.constant -1.000000e+06 : f32
    %591 = vector.broadcast %cst_267 : f32 to vector<8x8xf32>
    %592 = arith.select %590, %591, %588 : vector<8x8xi1>, vector<8x8xf32>
    %cst_268 = arith.constant dense<0xFF800000> : vector<8xf32>
    %593 = vector.multi_reduction <maximumf>, %592, %cst_268 [1] : vector<8x8xf32> to vector<8xf32>
    %594 = vector.shape_cast %593 : vector<8xf32> to vector<8x1xf32>
    %595 = vector.broadcast %594 : vector<8x1xf32> to vector<8x8xf32>
    %596 = arith.subf %592, %595 : vector<8x8xf32>
    %597 = math.exp %596 : vector<8x8xf32>
    %cst_269 = arith.constant dense<0.000000e+00> : vector<8xf32>
    %598 = vector.multi_reduction <add>, %597, %cst_269 [1] : vector<8x8xf32> to vector<8xf32>
    %599 = vector.shape_cast %598 : vector<8xf32> to vector<8x1xf32>
    %600 = tpu.reciprocal %599 {approx = true} : vector<8x1xf32> -> vector<8x1xf32>
    %601 = vector.broadcast %600 : vector<8x1xf32> to vector<8x8xf32>
    %602 = arith.mulf %597, %601 : vector<8x8xf32>
    %603 = arith.truncf %602 : vector<8x8xf32> to vector<8x8xbf16>
    %604 = arith.truncf %583 : vector<8x8xf32> to vector<8x8xbf16>
    %cst_270 = arith.constant dense<0.000000e+00> : vector<8x8xf32>
    %605 = tpu.matmul %603, %604, %cst_270 {dimension_numbers = #tpu.dot_dimension_numbers<[1], [0], [0], [1], [0, 0, 1, 1], [], []>} : vector<8x8xbf16>, vector<8x8xbf16>, vector<8x8xf32> -> vector<8x8xf32>
    %606 = vector.extract_strided_slice %576 {offsets = [0, 8], sizes = [8, 8], strides = [1, 1]} : vector<8x32xf32> to vector<8x8xf32>
    %607 = vector.extract_strided_slice %580 {offsets = [0, 8], sizes = [8, 8], strides = [1, 1]} : vector<8x64xf32> to vector<8x8xf32>
    %608 = vector.extract_strided_slice %580 {offsets = [0, 40], sizes = [8, 8], strides = [1, 1]} : vector<8x64xf32> to vector<8x8xf32>
    %609 = arith.truncf %606 : vector<8x8xf32> to vector<8x8xbf16>
    %610 = arith.truncf %607 : vector<8x8xf32> to vector<8x8xbf16>
    %cst_271 = arith.constant dense<0.000000e+00> : vector<8x8xf32>
    %611 = tpu.matmul %609, %610, %cst_271 {dimension_numbers = #tpu.dot_dimension_numbers<[1], [1], [0], [0], [0, 0, 1, 0], [], []>} : vector<8x8xbf16>, vector<8x8xbf16>, vector<8x8xf32> -> vector<8x8xf32>
    %cst_272 = arith.constant 0.353553385 : f32
    %612 = vector.broadcast %cst_272 : f32 to vector<8x8xf32>
    %613 = arith.mulf %611, %612 : vector<8x8xf32>
    %cst_273 = arith.constant 0.000000e+00 : f32
    %614 = vector.broadcast %cst_273 : f32 to vector<8x8xf32>
    %615 = arith.cmpf oeq, %407, %614 : vector<8x8xf32>
    %cst_274 = arith.constant -1.000000e+06 : f32
    %616 = vector.broadcast %cst_274 : f32 to vector<8x8xf32>
    %617 = arith.select %615, %616, %613 : vector<8x8xi1>, vector<8x8xf32>
    %cst_275 = arith.constant dense<0xFF800000> : vector<8xf32>
    %618 = vector.multi_reduction <maximumf>, %617, %cst_275 [1] : vector<8x8xf32> to vector<8xf32>
    %619 = vector.shape_cast %618 : vector<8xf32> to vector<8x1xf32>
    %620 = vector.broadcast %619 : vector<8x1xf32> to vector<8x8xf32>
    %621 = arith.subf %617, %620 : vector<8x8xf32>
    %622 = math.exp %621 : vector<8x8xf32>
    %cst_276 = arith.constant dense<0.000000e+00> : vector<8xf32>
    %623 = vector.multi_reduction <add>, %622, %cst_276 [1] : vector<8x8xf32> to vector<8xf32>
    %624 = vector.shape_cast %623 : vector<8xf32> to vector<8x1xf32>
    %625 = tpu.reciprocal %624 {approx = true} : vector<8x1xf32> -> vector<8x1xf32>
    %626 = vector.broadcast %625 : vector<8x1xf32> to vector<8x8xf32>
    %627 = arith.mulf %622, %626 : vector<8x8xf32>
    %628 = arith.truncf %627 : vector<8x8xf32> to vector<8x8xbf16>
    %629 = arith.truncf %608 : vector<8x8xf32> to vector<8x8xbf16>
    %cst_277 = arith.constant dense<0.000000e+00> : vector<8x8xf32>
    %630 = tpu.matmul %628, %629, %cst_277 {dimension_numbers = #tpu.dot_dimension_numbers<[1], [0], [0], [1], [0, 0, 1, 1], [], []>} : vector<8x8xbf16>, vector<8x8xbf16>, vector<8x8xf32> -> vector<8x8xf32>
    %631 = vector.extract_strided_slice %576 {offsets = [0, 16], sizes = [8, 8], strides = [1, 1]} : vector<8x32xf32> to vector<8x8xf32>
    %632 = vector.extract_strided_slice %580 {offsets = [0, 16], sizes = [8, 8], strides = [1, 1]} : vector<8x64xf32> to vector<8x8xf32>
    %633 = vector.extract_strided_slice %580 {offsets = [0, 48], sizes = [8, 8], strides = [1, 1]} : vector<8x64xf32> to vector<8x8xf32>
    %634 = arith.truncf %631 : vector<8x8xf32> to vector<8x8xbf16>
    %635 = arith.truncf %632 : vector<8x8xf32> to vector<8x8xbf16>
    %cst_278 = arith.constant dense<0.000000e+00> : vector<8x8xf32>
    %636 = tpu.matmul %634, %635, %cst_278 {dimension_numbers = #tpu.dot_dimension_numbers<[1], [1], [0], [0], [0, 0, 1, 0], [], []>} : vector<8x8xbf16>, vector<8x8xbf16>, vector<8x8xf32> -> vector<8x8xf32>
    %cst_279 = arith.constant 0.353553385 : f32
    %637 = vector.broadcast %cst_279 : f32 to vector<8x8xf32>
    %638 = arith.mulf %636, %637 : vector<8x8xf32>
    %cst_280 = arith.constant 0.000000e+00 : f32
    %639 = vector.broadcast %cst_280 : f32 to vector<8x8xf32>
    %640 = arith.cmpf oeq, %407, %639 : vector<8x8xf32>
    %cst_281 = arith.constant -1.000000e+06 : f32
    %641 = vector.broadcast %cst_281 : f32 to vector<8x8xf32>
    %642 = arith.select %640, %641, %638 : vector<8x8xi1>, vector<8x8xf32>
    %cst_282 = arith.constant dense<0xFF800000> : vector<8xf32>
    %643 = vector.multi_reduction <maximumf>, %642, %cst_282 [1] : vector<8x8xf32> to vector<8xf32>
    %644 = vector.shape_cast %643 : vector<8xf32> to vector<8x1xf32>
    %645 = vector.broadcast %644 : vector<8x1xf32> to vector<8x8xf32>
    %646 = arith.subf %642, %645 : vector<8x8xf32>
    %647 = math.exp %646 : vector<8x8xf32>
    %cst_283 = arith.constant dense<0.000000e+00> : vector<8xf32>
    %648 = vector.multi_reduction <add>, %647, %cst_283 [1] : vector<8x8xf32> to vector<8xf32>
    %649 = vector.shape_cast %648 : vector<8xf32> to vector<8x1xf32>
    %650 = tpu.reciprocal %649 {approx = true} : vector<8x1xf32> -> vector<8x1xf32>
    %651 = vector.broadcast %650 : vector<8x1xf32> to vector<8x8xf32>
    %652 = arith.mulf %647, %651 : vector<8x8xf32>
    %653 = arith.truncf %652 : vector<8x8xf32> to vector<8x8xbf16>
    %654 = arith.truncf %633 : vector<8x8xf32> to vector<8x8xbf16>
    %cst_284 = arith.constant dense<0.000000e+00> : vector<8x8xf32>
    %655 = tpu.matmul %653, %654, %cst_284 {dimension_numbers = #tpu.dot_dimension_numbers<[1], [0], [0], [1], [0, 0, 1, 1], [], []>} : vector<8x8xbf16>, vector<8x8xbf16>, vector<8x8xf32> -> vector<8x8xf32>
    %656 = vector.extract_strided_slice %576 {offsets = [0, 24], sizes = [8, 8], strides = [1, 1]} : vector<8x32xf32> to vector<8x8xf32>
    %657 = vector.extract_strided_slice %580 {offsets = [0, 24], sizes = [8, 8], strides = [1, 1]} : vector<8x64xf32> to vector<8x8xf32>
    %658 = vector.extract_strided_slice %580 {offsets = [0, 56], sizes = [8, 8], strides = [1, 1]} : vector<8x64xf32> to vector<8x8xf32>
    %659 = arith.truncf %656 : vector<8x8xf32> to vector<8x8xbf16>
    %660 = arith.truncf %657 : vector<8x8xf32> to vector<8x8xbf16>
    %cst_285 = arith.constant dense<0.000000e+00> : vector<8x8xf32>
    %661 = tpu.matmul %659, %660, %cst_285 {dimension_numbers = #tpu.dot_dimension_numbers<[1], [1], [0], [0], [0, 0, 1, 0], [], []>} : vector<8x8xbf16>, vector<8x8xbf16>, vector<8x8xf32> -> vector<8x8xf32>
    %cst_286 = arith.constant 0.353553385 : f32
    %662 = vector.broadcast %cst_286 : f32 to vector<8x8xf32>
    %663 = arith.mulf %661, %662 : vector<8x8xf32>
    %cst_287 = arith.constant 0.000000e+00 : f32
    %664 = vector.broadcast %cst_287 : f32 to vector<8x8xf32>
    %665 = arith.cmpf oeq, %407, %664 : vector<8x8xf32>
    %cst_288 = arith.constant -1.000000e+06 : f32
    %666 = vector.broadcast %cst_288 : f32 to vector<8x8xf32>
    %667 = arith.select %665, %666, %663 : vector<8x8xi1>, vector<8x8xf32>
    %cst_289 = arith.constant dense<0xFF800000> : vector<8xf32>
    %668 = vector.multi_reduction <maximumf>, %667, %cst_289 [1] : vector<8x8xf32> to vector<8xf32>
    %669 = vector.shape_cast %668 : vector<8xf32> to vector<8x1xf32>
    %670 = vector.broadcast %669 : vector<8x1xf32> to vector<8x8xf32>
    %671 = arith.subf %667, %670 : vector<8x8xf32>
    %672 = math.exp %671 : vector<8x8xf32>
    %cst_290 = arith.constant dense<0.000000e+00> : vector<8xf32>
    %673 = vector.multi_reduction <add>, %672, %cst_290 [1] : vector<8x8xf32> to vector<8xf32>
    %674 = vector.shape_cast %673 : vector<8xf32> to vector<8x1xf32>
    %675 = tpu.reciprocal %674 {approx = true} : vector<8x1xf32> -> vector<8x1xf32>
    %676 = vector.broadcast %675 : vector<8x1xf32> to vector<8x8xf32>
    %677 = arith.mulf %672, %676 : vector<8x8xf32>
    %678 = arith.truncf %677 : vector<8x8xf32> to vector<8x8xbf16>
    %679 = arith.truncf %658 : vector<8x8xf32> to vector<8x8xbf16>
    %cst_291 = arith.constant dense<0.000000e+00> : vector<8x8xf32>
    %680 = tpu.matmul %678, %679, %cst_291 {dimension_numbers = #tpu.dot_dimension_numbers<[1], [0], [0], [1], [0, 0, 1, 1], [], []>} : vector<8x8xbf16>, vector<8x8xbf16>, vector<8x8xf32> -> vector<8x8xf32>
    %681 = tpu.concatenate %605, %630, %655, %680 in 1 : vector<8x8xf32>, vector<8x8xf32>, vector<8x8xf32>, vector<8x8xf32> -> vector<8x32xf32>
    %682 = arith.truncf %681 : vector<8x32xf32> to vector<8x32xbf16>
    %cst_292 = arith.constant dense<0.000000e+00> : vector<8x32xf32>
    %683 = tpu.matmul %682, %570, %cst_292 {dimension_numbers = #tpu.dot_dimension_numbers<[1], [0], [0], [1], [0, 0, 1, 1], [], []>} : vector<8x32xbf16>, vector<32x32xbf16>, vector<8x32xf32> -> vector<8x32xf32>
    %684 = vector.broadcast %572 : vector<1x32xf32> to vector<8x32xf32>
    %685 = arith.addf %683, %684 : vector<8x32xf32>
    %c0_293 = arith.constant 0 : index
    %c0_294 = arith.constant 0 : index
    %c0_295 = arith.constant 0 : index
    %686 = vector.load %arg34[%c0_293, %c0_294, %c0_295] : memref<2x1x32xf32, #tpu.memory_space<vmem>>, vector<1x1x32xf32>
    %687 = vector.shape_cast %686 : vector<1x1x32xf32> to vector<1x32xf32>
    %c0_296 = arith.constant 0 : index
    %c0_297 = arith.constant 0 : index
    %c0_298 = arith.constant 0 : index
    %688 = vector.load %arg35[%c0_296, %c0_297, %c0_298] : memref<2x1x32xf32, #tpu.memory_space<vmem>>, vector<1x1x32xf32>
    %689 = vector.shape_cast %688 : vector<1x1x32xf32> to vector<1x32xf32>
    %690 = arith.addf %685, %560 : vector<8x32xf32>
    %cst_299 = arith.constant dense<0.000000e+00> : vector<8xf32>
    %691 = vector.multi_reduction <add>, %690, %cst_299 [1] : vector<8x32xf32> to vector<8xf32>
    %692 = vector.shape_cast %691 : vector<8xf32> to vector<8x1xf32>
    %cst_300 = arith.constant 3.200000e+01 : f32
    %693 = vector.broadcast %cst_300 : f32 to vector<8x1xf32>
    %694 = arith.divf %692, %693 : vector<8x1xf32>
    %695 = vector.broadcast %694 : vector<8x1xf32> to vector<8x32xf32>
    %696 = arith.subf %690, %695 : vector<8x32xf32>
    %697 = arith.mulf %696, %696 : vector<8x32xf32>
    %cst_301 = arith.constant dense<0.000000e+00> : vector<8xf32>
    %698 = vector.multi_reduction <add>, %697, %cst_301 [1] : vector<8x32xf32> to vector<8xf32>
    %699 = vector.shape_cast %698 : vector<8xf32> to vector<8x1xf32>
    %cst_302 = arith.constant 3.200000e+01 : f32
    %700 = vector.broadcast %cst_302 : f32 to vector<8x1xf32>
    %701 = arith.divf %699, %700 : vector<8x1xf32>
    %702 = math.sqrt %701 : vector<8x1xf32>
    %703 = vector.broadcast %694 : vector<8x1xf32> to vector<8x32xf32>
    %704 = arith.subf %690, %703 : vector<8x32xf32>
    %cst_303 = arith.constant 9.99999997E-7 : f32
    %705 = vector.broadcast %cst_303 : f32 to vector<8x1xf32>
    %706 = arith.addf %702, %705 : vector<8x1xf32>
    %707 = math.rsqrt %706 : vector<8x1xf32>
    %708 = vector.broadcast %707 : vector<8x1xf32> to vector<8x32xf32>
    %709 = arith.mulf %704, %708 : vector<8x32xf32>
    %710 = vector.broadcast %687 : vector<1x32xf32> to vector<8x32xf32>
    %711 = arith.mulf %710, %709 : vector<8x32xf32>
    %712 = vector.broadcast %689 : vector<1x32xf32> to vector<8x32xf32>
    %713 = arith.addf %711, %712 : vector<8x32xf32>
    %c0_304 = arith.constant 0 : index
    %c0_305 = arith.constant 0 : index
    %c0_306 = arith.constant 0 : index
    %714 = vector.load %arg36[%c0_304, %c0_305, %c0_306] : memref<2x32x64xbf16, #tpu.memory_space<vmem>>, vector<1x32x64xbf16>
    %715 = vector.shape_cast %714 : vector<1x32x64xbf16> to vector<32x64xbf16>
    %c0_307 = arith.constant 0 : index
    %c0_308 = arith.constant 0 : index
    %c0_309 = arith.constant 0 : index
    %716 = vector.load %arg37[%c0_307, %c0_308, %c0_309] : memref<2x1x64xf32, #tpu.memory_space<vmem>>, vector<1x1x64xf32>
    %717 = vector.shape_cast %716 : vector<1x1x64xf32> to vector<1x64xf32>
    %c0_310 = arith.constant 0 : index
    %c0_311 = arith.constant 0 : index
    %c0_312 = arith.constant 0 : index
    %718 = vector.load %arg38[%c0_310, %c0_311, %c0_312] : memref<2x64x32xbf16, #tpu.memory_space<vmem>>, vector<1x64x32xbf16>
    %719 = vector.shape_cast %718 : vector<1x64x32xbf16> to vector<64x32xbf16>
    %c0_313 = arith.constant 0 : index
    %c0_314 = arith.constant 0 : index
    %c0_315 = arith.constant 0 : index
    %720 = vector.load %arg39[%c0_313, %c0_314, %c0_315] : memref<2x1x32xf32, #tpu.memory_space<vmem>>, vector<1x1x32xf32>
    %721 = vector.shape_cast %720 : vector<1x1x32xf32> to vector<1x32xf32>
    %722 = arith.truncf %713 : vector<8x32xf32> to vector<8x32xbf16>
    %cst_316 = arith.constant dense<0.000000e+00> : vector<8x64xf32>
    %723 = tpu.matmul %722, %715, %cst_316 {dimension_numbers = #tpu.dot_dimension_numbers<[1], [0], [0], [1], [0, 0, 1, 1], [], []>} : vector<8x32xbf16>, vector<32x64xbf16>, vector<8x64xf32> -> vector<8x64xf32>
    %724 = vector.broadcast %717 : vector<1x64xf32> to vector<8x64xf32>
    %725 = arith.addf %723, %724 : vector<8x64xf32>
    %cst_317 = arith.constant 0.000000e+00 : f32
    %726 = vector.broadcast %cst_317 : f32 to vector<8x64xf32>
    %727 = arith.maximumf %725, %726 : vector<8x64xf32>
    %728 = arith.truncf %727 : vector<8x64xf32> to vector<8x64xbf16>
    %cst_318 = arith.constant dense<0.000000e+00> : vector<8x32xf32>
    %729 = tpu.matmul %728, %719, %cst_318 {dimension_numbers = #tpu.dot_dimension_numbers<[1], [0], [0], [1], [0, 0, 1, 1], [], []>} : vector<8x64xbf16>, vector<64x32xbf16>, vector<8x32xf32> -> vector<8x32xf32>
    %730 = vector.broadcast %721 : vector<1x32xf32> to vector<8x32xf32>
    %731 = arith.addf %729, %730 : vector<8x32xf32>
    %c0_319 = arith.constant 0 : index
    %c0_320 = arith.constant 0 : index
    %c0_321 = arith.constant 0 : index
    %732 = vector.load %arg40[%c0_319, %c0_320, %c0_321] : memref<2x1x32xf32, #tpu.memory_space<vmem>>, vector<1x1x32xf32>
    %733 = vector.shape_cast %732 : vector<1x1x32xf32> to vector<1x32xf32>
    %c0_322 = arith.constant 0 : index
    %c0_323 = arith.constant 0 : index
    %c0_324 = arith.constant 0 : index
    %734 = vector.load %arg41[%c0_322, %c0_323, %c0_324] : memref<2x1x32xf32, #tpu.memory_space<vmem>>, vector<1x1x32xf32>
    %735 = vector.shape_cast %734 : vector<1x1x32xf32> to vector<1x32xf32>
    %736 = arith.addf %731, %713 : vector<8x32xf32>
    %cst_325 = arith.constant dense<0.000000e+00> : vector<8xf32>
    %737 = vector.multi_reduction <add>, %736, %cst_325 [1] : vector<8x32xf32> to vector<8xf32>
    %738 = vector.shape_cast %737 : vector<8xf32> to vector<8x1xf32>
    %cst_326 = arith.constant 3.200000e+01 : f32
    %739 = vector.broadcast %cst_326 : f32 to vector<8x1xf32>
    %740 = arith.divf %738, %739 : vector<8x1xf32>
    %741 = vector.broadcast %740 : vector<8x1xf32> to vector<8x32xf32>
    %742 = arith.subf %736, %741 : vector<8x32xf32>
    %743 = arith.mulf %742, %742 : vector<8x32xf32>
    %cst_327 = arith.constant dense<0.000000e+00> : vector<8xf32>
    %744 = vector.multi_reduction <add>, %743, %cst_327 [1] : vector<8x32xf32> to vector<8xf32>
    %745 = vector.shape_cast %744 : vector<8xf32> to vector<8x1xf32>
    %cst_328 = arith.constant 3.200000e+01 : f32
    %746 = vector.broadcast %cst_328 : f32 to vector<8x1xf32>
    %747 = arith.divf %745, %746 : vector<8x1xf32>
    %748 = math.sqrt %747 : vector<8x1xf32>
    %749 = vector.broadcast %740 : vector<8x1xf32> to vector<8x32xf32>
    %750 = arith.subf %736, %749 : vector<8x32xf32>
    %cst_329 = arith.constant 9.99999997E-7 : f32
    %751 = vector.broadcast %cst_329 : f32 to vector<8x1xf32>
    %752 = arith.addf %748, %751 : vector<8x1xf32>
    %753 = math.rsqrt %752 : vector<8x1xf32>
    %754 = vector.broadcast %753 : vector<8x1xf32> to vector<8x32xf32>
    %755 = arith.mulf %750, %754 : vector<8x32xf32>
    %756 = vector.broadcast %733 : vector<1x32xf32> to vector<8x32xf32>
    %757 = arith.mulf %756, %755 : vector<8x32xf32>
    %758 = vector.broadcast %735 : vector<1x32xf32> to vector<8x32xf32>
    %759 = arith.addf %757, %758 : vector<8x32xf32>
    %c1_330 = arith.constant 1 : index
    %c0_331 = arith.constant 0 : index
    %c0_332 = arith.constant 0 : index
    %760 = vector.load %arg20[%c1_330, %c0_331, %c0_332] : memref<2x32x32xbf16, #tpu.memory_space<vmem>>, vector<1x32x32xbf16>
    %761 = vector.shape_cast %760 : vector<1x32x32xbf16> to vector<32x32xbf16>
    %c1_333 = arith.constant 1 : index
    %c0_334 = arith.constant 0 : index
    %c0_335 = arith.constant 0 : index
    %762 = vector.load %arg21[%c1_333, %c0_334, %c0_335] : memref<2x1x32xf32, #tpu.memory_space<vmem>>, vector<1x1x32xf32>
    %763 = vector.shape_cast %762 : vector<1x1x32xf32> to vector<1x32xf32>
    %c1_336 = arith.constant 1 : index
    %c0_337 = arith.constant 0 : index
    %c0_338 = arith.constant 0 : index
    %764 = vector.load %arg22[%c1_336, %c0_337, %c0_338] : memref<2x32x64xbf16, #tpu.memory_space<vmem>>, vector<1x32x64xbf16>
    %765 = vector.shape_cast %764 : vector<1x32x64xbf16> to vector<32x64xbf16>
    %c1_339 = arith.constant 1 : index
    %c0_340 = arith.constant 0 : index
    %c0_341 = arith.constant 0 : index
    %766 = vector.load %arg23[%c1_339, %c0_340, %c0_341] : memref<2x1x64xf32, #tpu.memory_space<vmem>>, vector<1x1x64xf32>
    %767 = vector.shape_cast %766 : vector<1x1x64xf32> to vector<1x64xf32>
    %c1_342 = arith.constant 1 : index
    %c0_343 = arith.constant 0 : index
    %c0_344 = arith.constant 0 : index
    %768 = vector.load %arg24[%c1_342, %c0_343, %c0_344] : memref<2x32x32xbf16, #tpu.memory_space<vmem>>, vector<1x32x32xbf16>
    %769 = vector.shape_cast %768 : vector<1x32x32xbf16> to vector<32x32xbf16>
    %c1_345 = arith.constant 1 : index
    %c0_346 = arith.constant 0 : index
    %c0_347 = arith.constant 0 : index
    %770 = vector.load %arg25[%c1_345, %c0_346, %c0_347] : memref<2x1x32xf32, #tpu.memory_space<vmem>>, vector<1x1x32xf32>
    %771 = vector.shape_cast %770 : vector<1x1x32xf32> to vector<1x32xf32>
    %772 = arith.truncf %759 : vector<8x32xf32> to vector<8x32xbf16>
    %cst_348 = arith.constant dense<0.000000e+00> : vector<8x32xf32>
    %773 = tpu.matmul %772, %761, %cst_348 {dimension_numbers = #tpu.dot_dimension_numbers<[1], [0], [0], [1], [0, 0, 1, 1], [], []>} : vector<8x32xbf16>, vector<32x32xbf16>, vector<8x32xf32> -> vector<8x32xf32>
    %774 = vector.broadcast %763 : vector<1x32xf32> to vector<8x32xf32>
    %775 = arith.addf %773, %774 : vector<8x32xf32>
    %776 = arith.truncf %759 : vector<8x32xf32> to vector<8x32xbf16>
    %cst_349 = arith.constant dense<0.000000e+00> : vector<8x64xf32>
    %777 = tpu.matmul %776, %765, %cst_349 {dimension_numbers = #tpu.dot_dimension_numbers<[1], [0], [0], [1], [0, 0, 1, 1], [], []>} : vector<8x32xbf16>, vector<32x64xbf16>, vector<8x64xf32> -> vector<8x64xf32>
    %778 = vector.broadcast %767 : vector<1x64xf32> to vector<8x64xf32>
    %779 = arith.addf %777, %778 : vector<8x64xf32>
    %780 = vector.extract_strided_slice %775 {offsets = [0, 0], sizes = [8, 8], strides = [1, 1]} : vector<8x32xf32> to vector<8x8xf32>
    %781 = vector.extract_strided_slice %779 {offsets = [0, 0], sizes = [8, 8], strides = [1, 1]} : vector<8x64xf32> to vector<8x8xf32>
    %782 = vector.extract_strided_slice %779 {offsets = [0, 32], sizes = [8, 8], strides = [1, 1]} : vector<8x64xf32> to vector<8x8xf32>
    %783 = arith.truncf %780 : vector<8x8xf32> to vector<8x8xbf16>
    %784 = arith.truncf %781 : vector<8x8xf32> to vector<8x8xbf16>
    %cst_350 = arith.constant dense<0.000000e+00> : vector<8x8xf32>
    %785 = tpu.matmul %783, %784, %cst_350 {dimension_numbers = #tpu.dot_dimension_numbers<[1], [1], [0], [0], [0, 0, 1, 0], [], []>} : vector<8x8xbf16>, vector<8x8xbf16>, vector<8x8xf32> -> vector<8x8xf32>
    %cst_351 = arith.constant 0.353553385 : f32
    %786 = vector.broadcast %cst_351 : f32 to vector<8x8xf32>
    %787 = arith.mulf %785, %786 : vector<8x8xf32>
    %cst_352 = arith.constant 0.000000e+00 : f32
    %788 = vector.broadcast %cst_352 : f32 to vector<8x8xf32>
    %789 = arith.cmpf oeq, %405, %788 : vector<8x8xf32>
    %cst_353 = arith.constant -1.000000e+06 : f32
    %790 = vector.broadcast %cst_353 : f32 to vector<8x8xf32>
    %791 = arith.select %789, %790, %787 : vector<8x8xi1>, vector<8x8xf32>
    %cst_354 = arith.constant dense<0xFF800000> : vector<8xf32>
    %792 = vector.multi_reduction <maximumf>, %791, %cst_354 [1] : vector<8x8xf32> to vector<8xf32>
    %793 = vector.shape_cast %792 : vector<8xf32> to vector<8x1xf32>
    %794 = vector.broadcast %793 : vector<8x1xf32> to vector<8x8xf32>
    %795 = arith.subf %791, %794 : vector<8x8xf32>
    %796 = math.exp %795 : vector<8x8xf32>
    %cst_355 = arith.constant dense<0.000000e+00> : vector<8xf32>
    %797 = vector.multi_reduction <add>, %796, %cst_355 [1] : vector<8x8xf32> to vector<8xf32>
    %798 = vector.shape_cast %797 : vector<8xf32> to vector<8x1xf32>
    %799 = tpu.reciprocal %798 {approx = true} : vector<8x1xf32> -> vector<8x1xf32>
    %800 = vector.broadcast %799 : vector<8x1xf32> to vector<8x8xf32>
    %801 = arith.mulf %796, %800 : vector<8x8xf32>
    %802 = arith.truncf %801 : vector<8x8xf32> to vector<8x8xbf16>
    %803 = arith.truncf %782 : vector<8x8xf32> to vector<8x8xbf16>
    %cst_356 = arith.constant dense<0.000000e+00> : vector<8x8xf32>
    %804 = tpu.matmul %802, %803, %cst_356 {dimension_numbers = #tpu.dot_dimension_numbers<[1], [0], [0], [1], [0, 0, 1, 1], [], []>} : vector<8x8xbf16>, vector<8x8xbf16>, vector<8x8xf32> -> vector<8x8xf32>
    %805 = vector.extract_strided_slice %775 {offsets = [0, 8], sizes = [8, 8], strides = [1, 1]} : vector<8x32xf32> to vector<8x8xf32>
    %806 = vector.extract_strided_slice %779 {offsets = [0, 8], sizes = [8, 8], strides = [1, 1]} : vector<8x64xf32> to vector<8x8xf32>
    %807 = vector.extract_strided_slice %779 {offsets = [0, 40], sizes = [8, 8], strides = [1, 1]} : vector<8x64xf32> to vector<8x8xf32>
    %808 = arith.truncf %805 : vector<8x8xf32> to vector<8x8xbf16>
    %809 = arith.truncf %806 : vector<8x8xf32> to vector<8x8xbf16>
    %cst_357 = arith.constant dense<0.000000e+00> : vector<8x8xf32>
    %810 = tpu.matmul %808, %809, %cst_357 {dimension_numbers = #tpu.dot_dimension_numbers<[1], [1], [0], [0], [0, 0, 1, 0], [], []>} : vector<8x8xbf16>, vector<8x8xbf16>, vector<8x8xf32> -> vector<8x8xf32>
    %cst_358 = arith.constant 0.353553385 : f32
    %811 = vector.broadcast %cst_358 : f32 to vector<8x8xf32>
    %812 = arith.mulf %810, %811 : vector<8x8xf32>
    %cst_359 = arith.constant 0.000000e+00 : f32
    %813 = vector.broadcast %cst_359 : f32 to vector<8x8xf32>
    %814 = arith.cmpf oeq, %405, %813 : vector<8x8xf32>
    %cst_360 = arith.constant -1.000000e+06 : f32
    %815 = vector.broadcast %cst_360 : f32 to vector<8x8xf32>
    %816 = arith.select %814, %815, %812 : vector<8x8xi1>, vector<8x8xf32>
    %cst_361 = arith.constant dense<0xFF800000> : vector<8xf32>
    %817 = vector.multi_reduction <maximumf>, %816, %cst_361 [1] : vector<8x8xf32> to vector<8xf32>
    %818 = vector.shape_cast %817 : vector<8xf32> to vector<8x1xf32>
    %819 = vector.broadcast %818 : vector<8x1xf32> to vector<8x8xf32>
    %820 = arith.subf %816, %819 : vector<8x8xf32>
    %821 = math.exp %820 : vector<8x8xf32>
    %cst_362 = arith.constant dense<0.000000e+00> : vector<8xf32>
    %822 = vector.multi_reduction <add>, %821, %cst_362 [1] : vector<8x8xf32> to vector<8xf32>
    %823 = vector.shape_cast %822 : vector<8xf32> to vector<8x1xf32>
    %824 = tpu.reciprocal %823 {approx = true} : vector<8x1xf32> -> vector<8x1xf32>
    %825 = vector.broadcast %824 : vector<8x1xf32> to vector<8x8xf32>
    %826 = arith.mulf %821, %825 : vector<8x8xf32>
    %827 = arith.truncf %826 : vector<8x8xf32> to vector<8x8xbf16>
    %828 = arith.truncf %807 : vector<8x8xf32> to vector<8x8xbf16>
    %cst_363 = arith.constant dense<0.000000e+00> : vector<8x8xf32>
    %829 = tpu.matmul %827, %828, %cst_363 {dimension_numbers = #tpu.dot_dimension_numbers<[1], [0], [0], [1], [0, 0, 1, 1], [], []>} : vector<8x8xbf16>, vector<8x8xbf16>, vector<8x8xf32> -> vector<8x8xf32>
    %830 = vector.extract_strided_slice %775 {offsets = [0, 16], sizes = [8, 8], strides = [1, 1]} : vector<8x32xf32> to vector<8x8xf32>
    %831 = vector.extract_strided_slice %779 {offsets = [0, 16], sizes = [8, 8], strides = [1, 1]} : vector<8x64xf32> to vector<8x8xf32>
    %832 = vector.extract_strided_slice %779 {offsets = [0, 48], sizes = [8, 8], strides = [1, 1]} : vector<8x64xf32> to vector<8x8xf32>
    %833 = arith.truncf %830 : vector<8x8xf32> to vector<8x8xbf16>
    %834 = arith.truncf %831 : vector<8x8xf32> to vector<8x8xbf16>
    %cst_364 = arith.constant dense<0.000000e+00> : vector<8x8xf32>
    %835 = tpu.matmul %833, %834, %cst_364 {dimension_numbers = #tpu.dot_dimension_numbers<[1], [1], [0], [0], [0, 0, 1, 0], [], []>} : vector<8x8xbf16>, vector<8x8xbf16>, vector<8x8xf32> -> vector<8x8xf32>
    %cst_365 = arith.constant 0.353553385 : f32
    %836 = vector.broadcast %cst_365 : f32 to vector<8x8xf32>
    %837 = arith.mulf %835, %836 : vector<8x8xf32>
    %cst_366 = arith.constant 0.000000e+00 : f32
    %838 = vector.broadcast %cst_366 : f32 to vector<8x8xf32>
    %839 = arith.cmpf oeq, %405, %838 : vector<8x8xf32>
    %cst_367 = arith.constant -1.000000e+06 : f32
    %840 = vector.broadcast %cst_367 : f32 to vector<8x8xf32>
    %841 = arith.select %839, %840, %837 : vector<8x8xi1>, vector<8x8xf32>
    %cst_368 = arith.constant dense<0xFF800000> : vector<8xf32>
    %842 = vector.multi_reduction <maximumf>, %841, %cst_368 [1] : vector<8x8xf32> to vector<8xf32>
    %843 = vector.shape_cast %842 : vector<8xf32> to vector<8x1xf32>
    %844 = vector.broadcast %843 : vector<8x1xf32> to vector<8x8xf32>
    %845 = arith.subf %841, %844 : vector<8x8xf32>
    %846 = math.exp %845 : vector<8x8xf32>
    %cst_369 = arith.constant dense<0.000000e+00> : vector<8xf32>
    %847 = vector.multi_reduction <add>, %846, %cst_369 [1] : vector<8x8xf32> to vector<8xf32>
    %848 = vector.shape_cast %847 : vector<8xf32> to vector<8x1xf32>
    %849 = tpu.reciprocal %848 {approx = true} : vector<8x1xf32> -> vector<8x1xf32>
    %850 = vector.broadcast %849 : vector<8x1xf32> to vector<8x8xf32>
    %851 = arith.mulf %846, %850 : vector<8x8xf32>
    %852 = arith.truncf %851 : vector<8x8xf32> to vector<8x8xbf16>
    %853 = arith.truncf %832 : vector<8x8xf32> to vector<8x8xbf16>
    %cst_370 = arith.constant dense<0.000000e+00> : vector<8x8xf32>
    %854 = tpu.matmul %852, %853, %cst_370 {dimension_numbers = #tpu.dot_dimension_numbers<[1], [0], [0], [1], [0, 0, 1, 1], [], []>} : vector<8x8xbf16>, vector<8x8xbf16>, vector<8x8xf32> -> vector<8x8xf32>
    %855 = vector.extract_strided_slice %775 {offsets = [0, 24], sizes = [8, 8], strides = [1, 1]} : vector<8x32xf32> to vector<8x8xf32>
    %856 = vector.extract_strided_slice %779 {offsets = [0, 24], sizes = [8, 8], strides = [1, 1]} : vector<8x64xf32> to vector<8x8xf32>
    %857 = vector.extract_strided_slice %779 {offsets = [0, 56], sizes = [8, 8], strides = [1, 1]} : vector<8x64xf32> to vector<8x8xf32>
    %858 = arith.truncf %855 : vector<8x8xf32> to vector<8x8xbf16>
    %859 = arith.truncf %856 : vector<8x8xf32> to vector<8x8xbf16>
    %cst_371 = arith.constant dense<0.000000e+00> : vector<8x8xf32>
    %860 = tpu.matmul %858, %859, %cst_371 {dimension_numbers = #tpu.dot_dimension_numbers<[1], [1], [0], [0], [0, 0, 1, 0], [], []>} : vector<8x8xbf16>, vector<8x8xbf16>, vector<8x8xf32> -> vector<8x8xf32>
    %cst_372 = arith.constant 0.353553385 : f32
    %861 = vector.broadcast %cst_372 : f32 to vector<8x8xf32>
    %862 = arith.mulf %860, %861 : vector<8x8xf32>
    %cst_373 = arith.constant 0.000000e+00 : f32
    %863 = vector.broadcast %cst_373 : f32 to vector<8x8xf32>
    %864 = arith.cmpf oeq, %405, %863 : vector<8x8xf32>
    %cst_374 = arith.constant -1.000000e+06 : f32
    %865 = vector.broadcast %cst_374 : f32 to vector<8x8xf32>
    %866 = arith.select %864, %865, %862 : vector<8x8xi1>, vector<8x8xf32>
    %cst_375 = arith.constant dense<0xFF800000> : vector<8xf32>
    %867 = vector.multi_reduction <maximumf>, %866, %cst_375 [1] : vector<8x8xf32> to vector<8xf32>
    %868 = vector.shape_cast %867 : vector<8xf32> to vector<8x1xf32>
    %869 = vector.broadcast %868 : vector<8x1xf32> to vector<8x8xf32>
    %870 = arith.subf %866, %869 : vector<8x8xf32>
    %871 = math.exp %870 : vector<8x8xf32>
    %cst_376 = arith.constant dense<0.000000e+00> : vector<8xf32>
    %872 = vector.multi_reduction <add>, %871, %cst_376 [1] : vector<8x8xf32> to vector<8xf32>
    %873 = vector.shape_cast %872 : vector<8xf32> to vector<8x1xf32>
    %874 = tpu.reciprocal %873 {approx = true} : vector<8x1xf32> -> vector<8x1xf32>
    %875 = vector.broadcast %874 : vector<8x1xf32> to vector<8x8xf32>
    %876 = arith.mulf %871, %875 : vector<8x8xf32>
    %877 = arith.truncf %876 : vector<8x8xf32> to vector<8x8xbf16>
    %878 = arith.truncf %857 : vector<8x8xf32> to vector<8x8xbf16>
    %cst_377 = arith.constant dense<0.000000e+00> : vector<8x8xf32>
    %879 = tpu.matmul %877, %878, %cst_377 {dimension_numbers = #tpu.dot_dimension_numbers<[1], [0], [0], [1], [0, 0, 1, 1], [], []>} : vector<8x8xbf16>, vector<8x8xbf16>, vector<8x8xf32> -> vector<8x8xf32>
    %880 = tpu.concatenate %804, %829, %854, %879 in 1 : vector<8x8xf32>, vector<8x8xf32>, vector<8x8xf32>, vector<8x8xf32> -> vector<8x32xf32>
    %881 = arith.truncf %880 : vector<8x32xf32> to vector<8x32xbf16>
    %cst_378 = arith.constant dense<0.000000e+00> : vector<8x32xf32>
    %882 = tpu.matmul %881, %769, %cst_378 {dimension_numbers = #tpu.dot_dimension_numbers<[1], [0], [0], [1], [0, 0, 1, 1], [], []>} : vector<8x32xbf16>, vector<32x32xbf16>, vector<8x32xf32> -> vector<8x32xf32>
    %883 = vector.broadcast %771 : vector<1x32xf32> to vector<8x32xf32>
    %884 = arith.addf %882, %883 : vector<8x32xf32>
    %c1_379 = arith.constant 1 : index
    %c0_380 = arith.constant 0 : index
    %c0_381 = arith.constant 0 : index
    %885 = vector.load %arg26[%c1_379, %c0_380, %c0_381] : memref<2x1x32xf32, #tpu.memory_space<vmem>>, vector<1x1x32xf32>
    %886 = vector.shape_cast %885 : vector<1x1x32xf32> to vector<1x32xf32>
    %c1_382 = arith.constant 1 : index
    %c0_383 = arith.constant 0 : index
    %c0_384 = arith.constant 0 : index
    %887 = vector.load %arg27[%c1_382, %c0_383, %c0_384] : memref<2x1x32xf32, #tpu.memory_space<vmem>>, vector<1x1x32xf32>
    %888 = vector.shape_cast %887 : vector<1x1x32xf32> to vector<1x32xf32>
    %889 = arith.addf %884, %759 : vector<8x32xf32>
    %cst_385 = arith.constant dense<0.000000e+00> : vector<8xf32>
    %890 = vector.multi_reduction <add>, %889, %cst_385 [1] : vector<8x32xf32> to vector<8xf32>
    %891 = vector.shape_cast %890 : vector<8xf32> to vector<8x1xf32>
    %cst_386 = arith.constant 3.200000e+01 : f32
    %892 = vector.broadcast %cst_386 : f32 to vector<8x1xf32>
    %893 = arith.divf %891, %892 : vector<8x1xf32>
    %894 = vector.broadcast %893 : vector<8x1xf32> to vector<8x32xf32>
    %895 = arith.subf %889, %894 : vector<8x32xf32>
    %896 = arith.mulf %895, %895 : vector<8x32xf32>
    %cst_387 = arith.constant dense<0.000000e+00> : vector<8xf32>
    %897 = vector.multi_reduction <add>, %896, %cst_387 [1] : vector<8x32xf32> to vector<8xf32>
    %898 = vector.shape_cast %897 : vector<8xf32> to vector<8x1xf32>
    %cst_388 = arith.constant 3.200000e+01 : f32
    %899 = vector.broadcast %cst_388 : f32 to vector<8x1xf32>
    %900 = arith.divf %898, %899 : vector<8x1xf32>
    %901 = math.sqrt %900 : vector<8x1xf32>
    %902 = vector.broadcast %893 : vector<8x1xf32> to vector<8x32xf32>
    %903 = arith.subf %889, %902 : vector<8x32xf32>
    %cst_389 = arith.constant 9.99999997E-7 : f32
    %904 = vector.broadcast %cst_389 : f32 to vector<8x1xf32>
    %905 = arith.addf %901, %904 : vector<8x1xf32>
    %906 = math.rsqrt %905 : vector<8x1xf32>
    %907 = vector.broadcast %906 : vector<8x1xf32> to vector<8x32xf32>
    %908 = arith.mulf %903, %907 : vector<8x32xf32>
    %909 = vector.broadcast %886 : vector<1x32xf32> to vector<8x32xf32>
    %910 = arith.mulf %909, %908 : vector<8x32xf32>
    %911 = vector.broadcast %888 : vector<1x32xf32> to vector<8x32xf32>
    %912 = arith.addf %910, %911 : vector<8x32xf32>
    %c1_390 = arith.constant 1 : index
    %c0_391 = arith.constant 0 : index
    %c0_392 = arith.constant 0 : index
    %913 = vector.load %arg28[%c1_390, %c0_391, %c0_392] : memref<2x32x32xbf16, #tpu.memory_space<vmem>>, vector<1x32x32xbf16>
    %914 = vector.shape_cast %913 : vector<1x32x32xbf16> to vector<32x32xbf16>
    %c1_393 = arith.constant 1 : index
    %c0_394 = arith.constant 0 : index
    %c0_395 = arith.constant 0 : index
    %915 = vector.load %arg29[%c1_393, %c0_394, %c0_395] : memref<2x1x32xf32, #tpu.memory_space<vmem>>, vector<1x1x32xf32>
    %916 = vector.shape_cast %915 : vector<1x1x32xf32> to vector<1x32xf32>
    %c1_396 = arith.constant 1 : index
    %c0_397 = arith.constant 0 : index
    %c0_398 = arith.constant 0 : index
    %917 = vector.load %arg30[%c1_396, %c0_397, %c0_398] : memref<2x32x64xbf16, #tpu.memory_space<vmem>>, vector<1x32x64xbf16>
    %918 = vector.shape_cast %917 : vector<1x32x64xbf16> to vector<32x64xbf16>
    %c1_399 = arith.constant 1 : index
    %c0_400 = arith.constant 0 : index
    %c0_401 = arith.constant 0 : index
    %919 = vector.load %arg31[%c1_399, %c0_400, %c0_401] : memref<2x1x64xf32, #tpu.memory_space<vmem>>, vector<1x1x64xf32>
    %920 = vector.shape_cast %919 : vector<1x1x64xf32> to vector<1x64xf32>
    %c1_402 = arith.constant 1 : index
    %c0_403 = arith.constant 0 : index
    %c0_404 = arith.constant 0 : index
    %921 = vector.load %arg32[%c1_402, %c0_403, %c0_404] : memref<2x32x32xbf16, #tpu.memory_space<vmem>>, vector<1x32x32xbf16>
    %922 = vector.shape_cast %921 : vector<1x32x32xbf16> to vector<32x32xbf16>
    %c1_405 = arith.constant 1 : index
    %c0_406 = arith.constant 0 : index
    %c0_407 = arith.constant 0 : index
    %923 = vector.load %arg33[%c1_405, %c0_406, %c0_407] : memref<2x1x32xf32, #tpu.memory_space<vmem>>, vector<1x1x32xf32>
    %924 = vector.shape_cast %923 : vector<1x1x32xf32> to vector<1x32xf32>
    %925 = arith.truncf %912 : vector<8x32xf32> to vector<8x32xbf16>
    %cst_408 = arith.constant dense<0.000000e+00> : vector<8x32xf32>
    %926 = tpu.matmul %925, %914, %cst_408 {dimension_numbers = #tpu.dot_dimension_numbers<[1], [0], [0], [1], [0, 0, 1, 1], [], []>} : vector<8x32xbf16>, vector<32x32xbf16>, vector<8x32xf32> -> vector<8x32xf32>
    %927 = vector.broadcast %916 : vector<1x32xf32> to vector<8x32xf32>
    %928 = arith.addf %926, %927 : vector<8x32xf32>
    %929 = arith.truncf %401 : vector<8x32xf32> to vector<8x32xbf16>
    %cst_409 = arith.constant dense<0.000000e+00> : vector<8x64xf32>
    %930 = tpu.matmul %929, %918, %cst_409 {dimension_numbers = #tpu.dot_dimension_numbers<[1], [0], [0], [1], [0, 0, 1, 1], [], []>} : vector<8x32xbf16>, vector<32x64xbf16>, vector<8x64xf32> -> vector<8x64xf32>
    %931 = vector.broadcast %920 : vector<1x64xf32> to vector<8x64xf32>
    %932 = arith.addf %930, %931 : vector<8x64xf32>
    %933 = vector.extract_strided_slice %928 {offsets = [0, 0], sizes = [8, 8], strides = [1, 1]} : vector<8x32xf32> to vector<8x8xf32>
    %934 = vector.extract_strided_slice %932 {offsets = [0, 0], sizes = [8, 8], strides = [1, 1]} : vector<8x64xf32> to vector<8x8xf32>
    %935 = vector.extract_strided_slice %932 {offsets = [0, 32], sizes = [8, 8], strides = [1, 1]} : vector<8x64xf32> to vector<8x8xf32>
    %936 = arith.truncf %933 : vector<8x8xf32> to vector<8x8xbf16>
    %937 = arith.truncf %934 : vector<8x8xf32> to vector<8x8xbf16>
    %cst_410 = arith.constant dense<0.000000e+00> : vector<8x8xf32>
    %938 = tpu.matmul %936, %937, %cst_410 {dimension_numbers = #tpu.dot_dimension_numbers<[1], [1], [0], [0], [0, 0, 1, 0], [], []>} : vector<8x8xbf16>, vector<8x8xbf16>, vector<8x8xf32> -> vector<8x8xf32>
    %cst_411 = arith.constant 0.353553385 : f32
    %939 = vector.broadcast %cst_411 : f32 to vector<8x8xf32>
    %940 = arith.mulf %938, %939 : vector<8x8xf32>
    %cst_412 = arith.constant 0.000000e+00 : f32
    %941 = vector.broadcast %cst_412 : f32 to vector<8x8xf32>
    %942 = arith.cmpf oeq, %407, %941 : vector<8x8xf32>
    %cst_413 = arith.constant -1.000000e+06 : f32
    %943 = vector.broadcast %cst_413 : f32 to vector<8x8xf32>
    %944 = arith.select %942, %943, %940 : vector<8x8xi1>, vector<8x8xf32>
    %cst_414 = arith.constant dense<0xFF800000> : vector<8xf32>
    %945 = vector.multi_reduction <maximumf>, %944, %cst_414 [1] : vector<8x8xf32> to vector<8xf32>
    %946 = vector.shape_cast %945 : vector<8xf32> to vector<8x1xf32>
    %947 = vector.broadcast %946 : vector<8x1xf32> to vector<8x8xf32>
    %948 = arith.subf %944, %947 : vector<8x8xf32>
    %949 = math.exp %948 : vector<8x8xf32>
    %cst_415 = arith.constant dense<0.000000e+00> : vector<8xf32>
    %950 = vector.multi_reduction <add>, %949, %cst_415 [1] : vector<8x8xf32> to vector<8xf32>
    %951 = vector.shape_cast %950 : vector<8xf32> to vector<8x1xf32>
    %952 = tpu.reciprocal %951 {approx = true} : vector<8x1xf32> -> vector<8x1xf32>
    %953 = vector.broadcast %952 : vector<8x1xf32> to vector<8x8xf32>
    %954 = arith.mulf %949, %953 : vector<8x8xf32>
    %955 = arith.truncf %954 : vector<8x8xf32> to vector<8x8xbf16>
    %956 = arith.truncf %935 : vector<8x8xf32> to vector<8x8xbf16>
    %cst_416 = arith.constant dense<0.000000e+00> : vector<8x8xf32>
    %957 = tpu.matmul %955, %956, %cst_416 {dimension_numbers = #tpu.dot_dimension_numbers<[1], [0], [0], [1], [0, 0, 1, 1], [], []>} : vector<8x8xbf16>, vector<8x8xbf16>, vector<8x8xf32> -> vector<8x8xf32>
    %958 = vector.extract_strided_slice %928 {offsets = [0, 8], sizes = [8, 8], strides = [1, 1]} : vector<8x32xf32> to vector<8x8xf32>
    %959 = vector.extract_strided_slice %932 {offsets = [0, 8], sizes = [8, 8], strides = [1, 1]} : vector<8x64xf32> to vector<8x8xf32>
    %960 = vector.extract_strided_slice %932 {offsets = [0, 40], sizes = [8, 8], strides = [1, 1]} : vector<8x64xf32> to vector<8x8xf32>
    %961 = arith.truncf %958 : vector<8x8xf32> to vector<8x8xbf16>
    %962 = arith.truncf %959 : vector<8x8xf32> to vector<8x8xbf16>
    %cst_417 = arith.constant dense<0.000000e+00> : vector<8x8xf32>
    %963 = tpu.matmul %961, %962, %cst_417 {dimension_numbers = #tpu.dot_dimension_numbers<[1], [1], [0], [0], [0, 0, 1, 0], [], []>} : vector<8x8xbf16>, vector<8x8xbf16>, vector<8x8xf32> -> vector<8x8xf32>
    %cst_418 = arith.constant 0.353553385 : f32
    %964 = vector.broadcast %cst_418 : f32 to vector<8x8xf32>
    %965 = arith.mulf %963, %964 : vector<8x8xf32>
    %cst_419 = arith.constant 0.000000e+00 : f32
    %966 = vector.broadcast %cst_419 : f32 to vector<8x8xf32>
    %967 = arith.cmpf oeq, %407, %966 : vector<8x8xf32>
    %cst_420 = arith.constant -1.000000e+06 : f32
    %968 = vector.broadcast %cst_420 : f32 to vector<8x8xf32>
    %969 = arith.select %967, %968, %965 : vector<8x8xi1>, vector<8x8xf32>
    %cst_421 = arith.constant dense<0xFF800000> : vector<8xf32>
    %970 = vector.multi_reduction <maximumf>, %969, %cst_421 [1] : vector<8x8xf32> to vector<8xf32>
    %971 = vector.shape_cast %970 : vector<8xf32> to vector<8x1xf32>
    %972 = vector.broadcast %971 : vector<8x1xf32> to vector<8x8xf32>
    %973 = arith.subf %969, %972 : vector<8x8xf32>
    %974 = math.exp %973 : vector<8x8xf32>
    %cst_422 = arith.constant dense<0.000000e+00> : vector<8xf32>
    %975 = vector.multi_reduction <add>, %974, %cst_422 [1] : vector<8x8xf32> to vector<8xf32>
    %976 = vector.shape_cast %975 : vector<8xf32> to vector<8x1xf32>
    %977 = tpu.reciprocal %976 {approx = true} : vector<8x1xf32> -> vector<8x1xf32>
    %978 = vector.broadcast %977 : vector<8x1xf32> to vector<8x8xf32>
    %979 = arith.mulf %974, %978 : vector<8x8xf32>
    %980 = arith.truncf %979 : vector<8x8xf32> to vector<8x8xbf16>
    %981 = arith.truncf %960 : vector<8x8xf32> to vector<8x8xbf16>
    %cst_423 = arith.constant dense<0.000000e+00> : vector<8x8xf32>
    %982 = tpu.matmul %980, %981, %cst_423 {dimension_numbers = #tpu.dot_dimension_numbers<[1], [0], [0], [1], [0, 0, 1, 1], [], []>} : vector<8x8xbf16>, vector<8x8xbf16>, vector<8x8xf32> -> vector<8x8xf32>
    %983 = vector.extract_strided_slice %928 {offsets = [0, 16], sizes = [8, 8], strides = [1, 1]} : vector<8x32xf32> to vector<8x8xf32>
    %984 = vector.extract_strided_slice %932 {offsets = [0, 16], sizes = [8, 8], strides = [1, 1]} : vector<8x64xf32> to vector<8x8xf32>
    %985 = vector.extract_strided_slice %932 {offsets = [0, 48], sizes = [8, 8], strides = [1, 1]} : vector<8x64xf32> to vector<8x8xf32>
    %986 = arith.truncf %983 : vector<8x8xf32> to vector<8x8xbf16>
    %987 = arith.truncf %984 : vector<8x8xf32> to vector<8x8xbf16>
    %cst_424 = arith.constant dense<0.000000e+00> : vector<8x8xf32>
    %988 = tpu.matmul %986, %987, %cst_424 {dimension_numbers = #tpu.dot_dimension_numbers<[1], [1], [0], [0], [0, 0, 1, 0], [], []>} : vector<8x8xbf16>, vector<8x8xbf16>, vector<8x8xf32> -> vector<8x8xf32>
    %cst_425 = arith.constant 0.353553385 : f32
    %989 = vector.broadcast %cst_425 : f32 to vector<8x8xf32>
    %990 = arith.mulf %988, %989 : vector<8x8xf32>
    %cst_426 = arith.constant 0.000000e+00 : f32
    %991 = vector.broadcast %cst_426 : f32 to vector<8x8xf32>
    %992 = arith.cmpf oeq, %407, %991 : vector<8x8xf32>
    %cst_427 = arith.constant -1.000000e+06 : f32
    %993 = vector.broadcast %cst_427 : f32 to vector<8x8xf32>
    %994 = arith.select %992, %993, %990 : vector<8x8xi1>, vector<8x8xf32>
    %cst_428 = arith.constant dense<0xFF800000> : vector<8xf32>
    %995 = vector.multi_reduction <maximumf>, %994, %cst_428 [1] : vector<8x8xf32> to vector<8xf32>
    %996 = vector.shape_cast %995 : vector<8xf32> to vector<8x1xf32>
    %997 = vector.broadcast %996 : vector<8x1xf32> to vector<8x8xf32>
    %998 = arith.subf %994, %997 : vector<8x8xf32>
    %999 = math.exp %998 : vector<8x8xf32>
    %cst_429 = arith.constant dense<0.000000e+00> : vector<8xf32>
    %1000 = vector.multi_reduction <add>, %999, %cst_429 [1] : vector<8x8xf32> to vector<8xf32>
    %1001 = vector.shape_cast %1000 : vector<8xf32> to vector<8x1xf32>
    %1002 = tpu.reciprocal %1001 {approx = true} : vector<8x1xf32> -> vector<8x1xf32>
    %1003 = vector.broadcast %1002 : vector<8x1xf32> to vector<8x8xf32>
    %1004 = arith.mulf %999, %1003 : vector<8x8xf32>
    %1005 = arith.truncf %1004 : vector<8x8xf32> to vector<8x8xbf16>
    %1006 = arith.truncf %985 : vector<8x8xf32> to vector<8x8xbf16>
    %cst_430 = arith.constant dense<0.000000e+00> : vector<8x8xf32>
    %1007 = tpu.matmul %1005, %1006, %cst_430 {dimension_numbers = #tpu.dot_dimension_numbers<[1], [0], [0], [1], [0, 0, 1, 1], [], []>} : vector<8x8xbf16>, vector<8x8xbf16>, vector<8x8xf32> -> vector<8x8xf32>
    %1008 = vector.extract_strided_slice %928 {offsets = [0, 24], sizes = [8, 8], strides = [1, 1]} : vector<8x32xf32> to vector<8x8xf32>
    %1009 = vector.extract_strided_slice %932 {offsets = [0, 24], sizes = [8, 8], strides = [1, 1]} : vector<8x64xf32> to vector<8x8xf32>
    %1010 = vector.extract_strided_slice %932 {offsets = [0, 56], sizes = [8, 8], strides = [1, 1]} : vector<8x64xf32> to vector<8x8xf32>
    %1011 = arith.truncf %1008 : vector<8x8xf32> to vector<8x8xbf16>
    %1012 = arith.truncf %1009 : vector<8x8xf32> to vector<8x8xbf16>
    %cst_431 = arith.constant dense<0.000000e+00> : vector<8x8xf32>
    %1013 = tpu.matmul %1011, %1012, %cst_431 {dimension_numbers = #tpu.dot_dimension_numbers<[1], [1], [0], [0], [0, 0, 1, 0], [], []>} : vector<8x8xbf16>, vector<8x8xbf16>, vector<8x8xf32> -> vector<8x8xf32>
    %cst_432 = arith.constant 0.353553385 : f32
    %1014 = vector.broadcast %cst_432 : f32 to vector<8x8xf32>
    %1015 = arith.mulf %1013, %1014 : vector<8x8xf32>
    %cst_433 = arith.constant 0.000000e+00 : f32
    %1016 = vector.broadcast %cst_433 : f32 to vector<8x8xf32>
    %1017 = arith.cmpf oeq, %407, %1016 : vector<8x8xf32>
    %cst_434 = arith.constant -1.000000e+06 : f32
    %1018 = vector.broadcast %cst_434 : f32 to vector<8x8xf32>
    %1019 = arith.select %1017, %1018, %1015 : vector<8x8xi1>, vector<8x8xf32>
    %cst_435 = arith.constant dense<0xFF800000> : vector<8xf32>
    %1020 = vector.multi_reduction <maximumf>, %1019, %cst_435 [1] : vector<8x8xf32> to vector<8xf32>
    %1021 = vector.shape_cast %1020 : vector<8xf32> to vector<8x1xf32>
    %1022 = vector.broadcast %1021 : vector<8x1xf32> to vector<8x8xf32>
    %1023 = arith.subf %1019, %1022 : vector<8x8xf32>
    %1024 = math.exp %1023 : vector<8x8xf32>
    %cst_436 = arith.constant dense<0.000000e+00> : vector<8xf32>
    %1025 = vector.multi_reduction <add>, %1024, %cst_436 [1] : vector<8x8xf32> to vector<8xf32>
    %1026 = vector.shape_cast %1025 : vector<8xf32> to vector<8x1xf32>
    %1027 = tpu.reciprocal %1026 {approx = true} : vector<8x1xf32> -> vector<8x1xf32>
    %1028 = vector.broadcast %1027 : vector<8x1xf32> to vector<8x8xf32>
    %1029 = arith.mulf %1024, %1028 : vector<8x8xf32>
    %1030 = arith.truncf %1029 : vector<8x8xf32> to vector<8x8xbf16>
    %1031 = arith.truncf %1010 : vector<8x8xf32> to vector<8x8xbf16>
    %cst_437 = arith.constant dense<0.000000e+00> : vector<8x8xf32>
    %1032 = tpu.matmul %1030, %1031, %cst_437 {dimension_numbers = #tpu.dot_dimension_numbers<[1], [0], [0], [1], [0, 0, 1, 1], [], []>} : vector<8x8xbf16>, vector<8x8xbf16>, vector<8x8xf32> -> vector<8x8xf32>
    %1033 = tpu.concatenate %957, %982, %1007, %1032 in 1 : vector<8x8xf32>, vector<8x8xf32>, vector<8x8xf32>, vector<8x8xf32> -> vector<8x32xf32>
    %1034 = arith.truncf %1033 : vector<8x32xf32> to vector<8x32xbf16>
    %cst_438 = arith.constant dense<0.000000e+00> : vector<8x32xf32>
    %1035 = tpu.matmul %1034, %922, %cst_438 {dimension_numbers = #tpu.dot_dimension_numbers<[1], [0], [0], [1], [0, 0, 1, 1], [], []>} : vector<8x32xbf16>, vector<32x32xbf16>, vector<8x32xf32> -> vector<8x32xf32>
    %1036 = vector.broadcast %924 : vector<1x32xf32> to vector<8x32xf32>
    %1037 = arith.addf %1035, %1036 : vector<8x32xf32>
    %c1_439 = arith.constant 1 : index
    %c0_440 = arith.constant 0 : index
    %c0_441 = arith.constant 0 : index
    %1038 = vector.load %arg34[%c1_439, %c0_440, %c0_441] : memref<2x1x32xf32, #tpu.memory_space<vmem>>, vector<1x1x32xf32>
    %1039 = vector.shape_cast %1038 : vector<1x1x32xf32> to vector<1x32xf32>
    %c1_442 = arith.constant 1 : index
    %c0_443 = arith.constant 0 : index
    %c0_444 = arith.constant 0 : index
    %1040 = vector.load %arg35[%c1_442, %c0_443, %c0_444] : memref<2x1x32xf32, #tpu.memory_space<vmem>>, vector<1x1x32xf32>
    %1041 = vector.shape_cast %1040 : vector<1x1x32xf32> to vector<1x32xf32>
    %1042 = arith.addf %1037, %912 : vector<8x32xf32>
    %cst_445 = arith.constant dense<0.000000e+00> : vector<8xf32>
    %1043 = vector.multi_reduction <add>, %1042, %cst_445 [1] : vector<8x32xf32> to vector<8xf32>
    %1044 = vector.shape_cast %1043 : vector<8xf32> to vector<8x1xf32>
    %cst_446 = arith.constant 3.200000e+01 : f32
    %1045 = vector.broadcast %cst_446 : f32 to vector<8x1xf32>
    %1046 = arith.divf %1044, %1045 : vector<8x1xf32>
    %1047 = vector.broadcast %1046 : vector<8x1xf32> to vector<8x32xf32>
    %1048 = arith.subf %1042, %1047 : vector<8x32xf32>
    %1049 = arith.mulf %1048, %1048 : vector<8x32xf32>
    %cst_447 = arith.constant dense<0.000000e+00> : vector<8xf32>
    %1050 = vector.multi_reduction <add>, %1049, %cst_447 [1] : vector<8x32xf32> to vector<8xf32>
    %1051 = vector.shape_cast %1050 : vector<8xf32> to vector<8x1xf32>
    %cst_448 = arith.constant 3.200000e+01 : f32
    %1052 = vector.broadcast %cst_448 : f32 to vector<8x1xf32>
    %1053 = arith.divf %1051, %1052 : vector<8x1xf32>
    %1054 = math.sqrt %1053 : vector<8x1xf32>
    %1055 = vector.broadcast %1046 : vector<8x1xf32> to vector<8x32xf32>
    %1056 = arith.subf %1042, %1055 : vector<8x32xf32>
    %cst_449 = arith.constant 9.99999997E-7 : f32
    %1057 = vector.broadcast %cst_449 : f32 to vector<8x1xf32>
    %1058 = arith.addf %1054, %1057 : vector<8x1xf32>
    %1059 = math.rsqrt %1058 : vector<8x1xf32>
    %1060 = vector.broadcast %1059 : vector<8x1xf32> to vector<8x32xf32>
    %1061 = arith.mulf %1056, %1060 : vector<8x32xf32>
    %1062 = vector.broadcast %1039 : vector<1x32xf32> to vector<8x32xf32>
    %1063 = arith.mulf %1062, %1061 : vector<8x32xf32>
    %1064 = vector.broadcast %1041 : vector<1x32xf32> to vector<8x32xf32>
    %1065 = arith.addf %1063, %1064 : vector<8x32xf32>
    %c1_450 = arith.constant 1 : index
    %c0_451 = arith.constant 0 : index
    %c0_452 = arith.constant 0 : index
    %1066 = vector.load %arg36[%c1_450, %c0_451, %c0_452] : memref<2x32x64xbf16, #tpu.memory_space<vmem>>, vector<1x32x64xbf16>
    %1067 = vector.shape_cast %1066 : vector<1x32x64xbf16> to vector<32x64xbf16>
    %c1_453 = arith.constant 1 : index
    %c0_454 = arith.constant 0 : index
    %c0_455 = arith.constant 0 : index
    %1068 = vector.load %arg37[%c1_453, %c0_454, %c0_455] : memref<2x1x64xf32, #tpu.memory_space<vmem>>, vector<1x1x64xf32>
    %1069 = vector.shape_cast %1068 : vector<1x1x64xf32> to vector<1x64xf32>
    %c1_456 = arith.constant 1 : index
    %c0_457 = arith.constant 0 : index
    %c0_458 = arith.constant 0 : index
    %1070 = vector.load %arg38[%c1_456, %c0_457, %c0_458] : memref<2x64x32xbf16, #tpu.memory_space<vmem>>, vector<1x64x32xbf16>
    %1071 = vector.shape_cast %1070 : vector<1x64x32xbf16> to vector<64x32xbf16>
    %c1_459 = arith.constant 1 : index
    %c0_460 = arith.constant 0 : index
    %c0_461 = arith.constant 0 : index
    %1072 = vector.load %arg39[%c1_459, %c0_460, %c0_461] : memref<2x1x32xf32, #tpu.memory_space<vmem>>, vector<1x1x32xf32>
    %1073 = vector.shape_cast %1072 : vector<1x1x32xf32> to vector<1x32xf32>
    %1074 = arith.truncf %1065 : vector<8x32xf32> to vector<8x32xbf16>
    %cst_462 = arith.constant dense<0.000000e+00> : vector<8x64xf32>
    %1075 = tpu.matmul %1074, %1067, %cst_462 {dimension_numbers = #tpu.dot_dimension_numbers<[1], [0], [0], [1], [0, 0, 1, 1], [], []>} : vector<8x32xbf16>, vector<32x64xbf16>, vector<8x64xf32> -> vector<8x64xf32>
    %1076 = vector.broadcast %1069 : vector<1x64xf32> to vector<8x64xf32>
    %1077 = arith.addf %1075, %1076 : vector<8x64xf32>
    %cst_463 = arith.constant 0.000000e+00 : f32
    %1078 = vector.broadcast %cst_463 : f32 to vector<8x64xf32>
    %1079 = arith.maximumf %1077, %1078 : vector<8x64xf32>
    %1080 = arith.truncf %1079 : vector<8x64xf32> to vector<8x64xbf16>
    %cst_464 = arith.constant dense<0.000000e+00> : vector<8x32xf32>
    %1081 = tpu.matmul %1080, %1071, %cst_464 {dimension_numbers = #tpu.dot_dimension_numbers<[1], [0], [0], [1], [0, 0, 1, 1], [], []>} : vector<8x64xbf16>, vector<64x32xbf16>, vector<8x32xf32> -> vector<8x32xf32>
    %1082 = vector.broadcast %1073 : vector<1x32xf32> to vector<8x32xf32>
    %1083 = arith.addf %1081, %1082 : vector<8x32xf32>
    %c1_465 = arith.constant 1 : index
    %c0_466 = arith.constant 0 : index
    %c0_467 = arith.constant 0 : index
    %1084 = vector.load %arg40[%c1_465, %c0_466, %c0_467] : memref<2x1x32xf32, #tpu.memory_space<vmem>>, vector<1x1x32xf32>
    %1085 = vector.shape_cast %1084 : vector<1x1x32xf32> to vector<1x32xf32>
    %c1_468 = arith.constant 1 : index
    %c0_469 = arith.constant 0 : index
    %c0_470 = arith.constant 0 : index
    %1086 = vector.load %arg41[%c1_468, %c0_469, %c0_470] : memref<2x1x32xf32, #tpu.memory_space<vmem>>, vector<1x1x32xf32>
    %1087 = vector.shape_cast %1086 : vector<1x1x32xf32> to vector<1x32xf32>
    %1088 = arith.addf %1083, %1065 : vector<8x32xf32>
    %cst_471 = arith.constant dense<0.000000e+00> : vector<8xf32>
    %1089 = vector.multi_reduction <add>, %1088, %cst_471 [1] : vector<8x32xf32> to vector<8xf32>
    %1090 = vector.shape_cast %1089 : vector<8xf32> to vector<8x1xf32>
    %cst_472 = arith.constant 3.200000e+01 : f32
    %1091 = vector.broadcast %cst_472 : f32 to vector<8x1xf32>
    %1092 = arith.divf %1090, %1091 : vector<8x1xf32>
    %1093 = vector.broadcast %1092 : vector<8x1xf32> to vector<8x32xf32>
    %1094 = arith.subf %1088, %1093 : vector<8x32xf32>
    %1095 = arith.mulf %1094, %1094 : vector<8x32xf32>
    %cst_473 = arith.constant dense<0.000000e+00> : vector<8xf32>
    %1096 = vector.multi_reduction <add>, %1095, %cst_473 [1] : vector<8x32xf32> to vector<8xf32>
    %1097 = vector.shape_cast %1096 : vector<8xf32> to vector<8x1xf32>
    %cst_474 = arith.constant 3.200000e+01 : f32
    %1098 = vector.broadcast %cst_474 : f32 to vector<8x1xf32>
    %1099 = arith.divf %1097, %1098 : vector<8x1xf32>
    %1100 = math.sqrt %1099 : vector<8x1xf32>
    %1101 = vector.broadcast %1092 : vector<8x1xf32> to vector<8x32xf32>
    %1102 = arith.subf %1088, %1101 : vector<8x32xf32>
    %cst_475 = arith.constant 9.99999997E-7 : f32
    %1103 = vector.broadcast %cst_475 : f32 to vector<8x1xf32>
    %1104 = arith.addf %1100, %1103 : vector<8x1xf32>
    %1105 = math.rsqrt %1104 : vector<8x1xf32>
    %1106 = vector.broadcast %1105 : vector<8x1xf32> to vector<8x32xf32>
    %1107 = arith.mulf %1102, %1106 : vector<8x32xf32>
    %1108 = vector.broadcast %1085 : vector<1x32xf32> to vector<8x32xf32>
    %1109 = arith.mulf %1108, %1107 : vector<8x32xf32>
    %1110 = vector.broadcast %1087 : vector<1x32xf32> to vector<8x32xf32>
    %1111 = arith.addf %1109, %1110 : vector<8x32xf32>
    %c0_476 = arith.constant 0 : index
    %c0_477 = arith.constant 0 : index
    %1112 = vector.load %arg42[%c0_476, %c0_477] : memref<32x128xbf16, #tpu.memory_space<vmem>>, vector<32x128xbf16>
    %c0_478 = arith.constant 0 : index
    %c0_479 = arith.constant 0 : index
    %1113 = vector.load %arg43[%c0_478, %c0_479] : memref<1x128xf32, #tpu.memory_space<vmem>>, vector<1x128xf32>
    %1114 = arith.truncf %1111 : vector<8x32xf32> to vector<8x32xbf16>
    %cst_480 = arith.constant dense<0.000000e+00> : vector<8x128xf32>
    %1115 = tpu.matmul %1114, %1112, %cst_480 {dimension_numbers = #tpu.dot_dimension_numbers<[1], [0], [0], [1], [0, 0, 1, 1], [], []>} : vector<8x32xbf16>, vector<32x128xbf16>, vector<8x128xf32> -> vector<8x128xf32>
    %1116 = vector.broadcast %1113 : vector<1x128xf32> to vector<8x128xf32>
    %1117 = arith.addf %1115, %1116 : vector<8x128xf32>
    %c0_481 = arith.constant 0 : index
    %c0_482 = arith.constant 0 : index
    %c0_483 = arith.constant 0 : index
    %1118 = vector.load %arg44[%c0_481, %c0_482, %c0_483] : memref<1x8x128xf32, #tpu.memory_space<vmem>>, vector<1x8x128xf32>
    %1119 = vector.shape_cast %1118 : vector<1x8x128xf32> to vector<8x128xf32>
    %1120 = vector.shape_cast %1117 : vector<8x128xf32> to vector<1x8x128xf32>
    tpu.vector_store %arg44[%c0_481, %c0_482, %c0_483], %1120 {strides = array<i32>} : memref<1x8x128xf32, #tpu.memory_space<vmem>>, vector<1x8x128xf32>,
    return
  }
  func.func @transform_0(%arg0: i32) -> (i32, i32, i32) {
    %c0_i32 = arith.constant 0 : i32
    %c0_i32_0 = arith.constant 0 : i32
    %c0_i32_1 = arith.constant 0 : i32
    return %arg0, %c0_i32, %c0_i32_0 : i32, i32, i32
  }
  func.func @transform_1(%arg0: i32) -> (i32, i32, i32) {
    %c0_i32 = arith.constant 0 : i32
    %c0_i32_0 = arith.constant 0 : i32
    %c0_i32_1 = arith.constant 0 : i32
    return %arg0, %c0_i32, %c0_i32_0 : i32, i32, i32
  }
  func.func @transform_2(%arg0: i32) -> (i32, i32, i32) {
    %c0_i32 = arith.constant 0 : i32
    %c0_i32_0 = arith.constant 0 : i32
    %c0_i32_1 = arith.constant 0 : i32
    return %arg0, %c0_i32, %c0_i32_0 : i32, i32, i32
  }
  func.func @transform_3(%arg0: i32) -> (i32, i32, i32) {
    %c0_i32 = arith.constant 0 : i32
    %c0_i32_0 = arith.constant 0 : i32
    %c0_i32_1 = arith.constant 0 : i32
    return %arg0, %c0_i32, %c0_i32_0 : i32, i32, i32
  }
  func.func @transform_4(%arg0: i32) -> (i32, i32, i32) {
    %c0_i32 = arith.constant 0 : i32
    %c0_i32_0 = arith.constant 0 : i32
    %c0_i32_1 = arith.constant 0 : i32
    return %arg0, %c0_i32, %c0_i32_0 : i32, i32, i32
  }
  func.func @transform_5(%arg0: i32) -> (i32, i32, i32) {
    %c0_i32 = arith.constant 0 : i32
    %c0_i32_0 = arith.constant 0 : i32
    %c0_i32_1 = arith.constant 0 : i32
    %c0_i32_2 = arith.constant 0 : i32
    return %c0_i32, %c0_i32_0, %c0_i32_1 : i32, i32, i32
  }
  func.func @transform_6(%arg0: i32) -> (i32, i32, i32) {
    %c0_i32 = arith.constant 0 : i32
    %c0_i32_0 = arith.constant 0 : i32
    %c0_i32_1 = arith.constant 0 : i32
    %c0_i32_2 = arith.constant 0 : i32
    return %c0_i32, %c0_i32_0, %c0_i32_1 : i32, i32, i32
  }
  func.func @transform_7(%arg0: i32) -> (i32, i32, i32) {
    %c0_i32 = arith.constant 0 : i32
    %c0_i32_0 = arith.constant 0 : i32
    %c0_i32_1 = arith.constant 0 : i32
    %c0_i32_2 = arith.constant 0 : i32
    return %c0_i32, %c0_i32_0, %c0_i32_1 : i32, i32, i32
  }
  func.func @transform_8(%arg0: i32) -> (i32, i32, i32) {
    %c0_i32 = arith.constant 0 : i32
    %c0_i32_0 = arith.constant 0 : i32
    %c0_i32_1 = arith.constant 0 : i32
    %c0_i32_2 = arith.constant 0 : i32
    return %c0_i32, %c0_i32_0, %c0_i32_1 : i32, i32, i32
  }
  func.func @transform_9(%arg0: i32) -> (i32, i32, i32) {
    %c0_i32 = arith.constant 0 : i32
    %c0_i32_0 = arith.constant 0 : i32
    %c0_i32_1 = arith.constant 0 : i32
    %c0_i32_2 = arith.constant 0 : i32
    return %c0_i32, %c0_i32_0, %c0_i32_1 : i32, i32, i32
  }
  func.func @transform_10(%arg0: i32) -> (i32, i32, i32) {
    %c0_i32 = arith.constant 0 : i32
    %c0_i32_0 = arith.constant 0 : i32
    %c0_i32_1 = arith.constant 0 : i32
    %c0_i32_2 = arith.constant 0 : i32
    return %c0_i32, %c0_i32_0, %c0_i32_1 : i32, i32, i32
  }
  func.func @transform_11(%arg0: i32) -> (i32, i32, i32) {
    %c0_i32 = arith.constant 0 : i32
    %c0_i32_0 = arith.constant 0 : i32
    %c0_i32_1 = arith.constant 0 : i32
    %c0_i32_2 = arith.constant 0 : i32
    return %c0_i32, %c0_i32_0, %c0_i32_1 : i32, i32, i32
  }
  func.func @transform_12(%arg0: i32) -> (i32, i32, i32) {
    %c0_i32 = arith.constant 0 : i32
    %c0_i32_0 = arith.constant 0 : i32
    %c0_i32_1 = arith.constant 0 : i32
    %c0_i32_2 = arith.constant 0 : i32
    return %c0_i32, %c0_i32_0, %c0_i32_1 : i32, i32, i32
  }
  func.func @transform_13(%arg0: i32) -> (i32, i32, i32) {
    %c0_i32 = arith.constant 0 : i32
    %c0_i32_0 = arith.constant 0 : i32
    %c0_i32_1 = arith.constant 0 : i32
    %c0_i32_2 = arith.constant 0 : i32
    return %c0_i32, %c0_i32_0, %c0_i32_1 : i32, i32, i32
  }
  func.func @transform_14(%arg0: i32) -> (i32, i32, i32) {
    %c0_i32 = arith.constant 0 : i32
    %c0_i32_0 = arith.constant 0 : i32
    %c0_i32_1 = arith.constant 0 : i32
    %c0_i32_2 = arith.constant 0 : i32
    return %c0_i32, %c0_i32_0, %c0_i32_1 : i32, i32, i32
  }
  func.func @transform_15(%arg0: i32) -> (i32, i32, i32) {
    %c0_i32 = arith.constant 0 : i32
    %c0_i32_0 = arith.constant 0 : i32
    %c0_i32_1 = arith.constant 0 : i32
    %c0_i32_2 = arith.constant 0 : i32
    return %c0_i32, %c0_i32_0, %c0_i32_1 : i32, i32, i32
  }
  func.func @transform_16(%arg0: i32) -> (i32, i32, i32) {
    %c0_i32 = arith.constant 0 : i32
    %c0_i32_0 = arith.constant 0 : i32
    %c0_i32_1 = arith.constant 0 : i32
    %c0_i32_2 = arith.constant 0 : i32
    return %c0_i32, %c0_i32_0, %c0_i32_1 : i32, i32, i32
  }
  func.func @transform_17(%arg0: i32) -> (i32, i32, i32) {
    %c0_i32 = arith.constant 0 : i32
    %c0_i32_0 = arith.constant 0 : i32
    %c0_i32_1 = arith.constant 0 : i32
    %c0_i32_2 = arith.constant 0 : i32
    return %c0_i32, %c0_i32_0, %c0_i32_1 : i32, i32, i32
  }
  func.func @transform_18(%arg0: i32) -> (i32, i32, i32) {
    %c0_i32 = arith.constant 0 : i32
    %c0_i32_0 = arith.constant 0 : i32
    %c0_i32_1 = arith.constant 0 : i32
    %c0_i32_2 = arith.constant 0 : i32
    return %c0_i32, %c0_i32_0, %c0_i32_1 : i32, i32, i32
  }
  func.func @transform_19(%arg0: i32) -> (i32, i32, i32) {
    %c0_i32 = arith.constant 0 : i32
    %c0_i32_0 = arith.constant 0 : i32
    %c0_i32_1 = arith.constant 0 : i32
    %c0_i32_2 = arith.constant 0 : i32
    return %c0_i32, %c0_i32_0, %c0_i32_1 : i32, i32, i32
  }
  func.func @transform_20(%arg0: i32) -> (i32, i32, i32) {
    %c0_i32 = arith.constant 0 : i32
    %c0_i32_0 = arith.constant 0 : i32
    %c0_i32_1 = arith.constant 0 : i32
    %c0_i32_2 = arith.constant 0 : i32
    return %c0_i32, %c0_i32_0, %c0_i32_1 : i32, i32, i32
  }
  func.func @transform_21(%arg0: i32) -> (i32, i32, i32) {
    %c0_i32 = arith.constant 0 : i32
    %c0_i32_0 = arith.constant 0 : i32
    %c0_i32_1 = arith.constant 0 : i32
    %c0_i32_2 = arith.constant 0 : i32
    return %c0_i32, %c0_i32_0, %c0_i32_1 : i32, i32, i32
  }
  func.func @transform_22(%arg0: i32) -> (i32, i32, i32) {
    %c0_i32 = arith.constant 0 : i32
    %c0_i32_0 = arith.constant 0 : i32
    %c0_i32_1 = arith.constant 0 : i32
    %c0_i32_2 = arith.constant 0 : i32
    return %c0_i32, %c0_i32_0, %c0_i32_1 : i32, i32, i32
  }
  func.func @transform_23(%arg0: i32) -> (i32, i32, i32) {
    %c0_i32 = arith.constant 0 : i32
    %c0_i32_0 = arith.constant 0 : i32
    %c0_i32_1 = arith.constant 0 : i32
    %c0_i32_2 = arith.constant 0 : i32
    return %c0_i32, %c0_i32_0, %c0_i32_1 : i32, i32, i32
  }
  func.func @transform_24(%arg0: i32) -> (i32, i32, i32) {
    %c0_i32 = arith.constant 0 : i32
    %c0_i32_0 = arith.constant 0 : i32
    %c0_i32_1 = arith.constant 0 : i32
    %c0_i32_2 = arith.constant 0 : i32
    return %c0_i32, %c0_i32_0, %c0_i32_1 : i32, i32, i32
  }
  func.func @transform_25(%arg0: i32) -> (i32, i32, i32) {
    %c0_i32 = arith.constant 0 : i32
    %c0_i32_0 = arith.constant 0 : i32
    %c0_i32_1 = arith.constant 0 : i32
    %c0_i32_2 = arith.constant 0 : i32
    return %c0_i32, %c0_i32_0, %c0_i32_1 : i32, i32, i32
  }
  func.func @transform_26(%arg0: i32) -> (i32, i32, i32) {
    %c0_i32 = arith.constant 0 : i32
    %c0_i32_0 = arith.constant 0 : i32
    %c0_i32_1 = arith.constant 0 : i32
    %c0_i32_2 = arith.constant 0 : i32
    return %c0_i32, %c0_i32_0, %c0_i32_1 : i32, i32, i32
  }
  func.func @transform_27(%arg0: i32) -> (i32, i32, i32) {
    %c0_i32 = arith.constant 0 : i32
    %c0_i32_0 = arith.constant 0 : i32
    %c0_i32_1 = arith.constant 0 : i32
    %c0_i32_2 = arith.constant 0 : i32
    return %c0_i32, %c0_i32_0, %c0_i32_1 : i32, i32, i32
  }
  func.func @transform_28(%arg0: i32) -> (i32, i32, i32) {
    %c0_i32 = arith.constant 0 : i32
    %c0_i32_0 = arith.constant 0 : i32
    %c0_i32_1 = arith.constant 0 : i32
    %c0_i32_2 = arith.constant 0 : i32
    return %c0_i32, %c0_i32_0, %c0_i32_1 : i32, i32, i32
  }
  func.func @transform_29(%arg0: i32) -> (i32, i32, i32) {
    %c0_i32 = arith.constant 0 : i32
    %c0_i32_0 = arith.constant 0 : i32
    %c0_i32_1 = arith.constant 0 : i32
    %c0_i32_2 = arith.constant 0 : i32
    return %c0_i32, %c0_i32_0, %c0_i32_1 : i32, i32, i32
  }
  func.func @transform_30(%arg0: i32) -> (i32, i32, i32) {
    %c0_i32 = arith.constant 0 : i32
    %c0_i32_0 = arith.constant 0 : i32
    %c0_i32_1 = arith.constant 0 : i32
    %c0_i32_2 = arith.constant 0 : i32
    return %c0_i32, %c0_i32_0, %c0_i32_1 : i32, i32, i32
  }
  func.func @transform_31(%arg0: i32) -> (i32, i32, i32) {
    %c0_i32 = arith.constant 0 : i32
    %c0_i32_0 = arith.constant 0 : i32
    %c0_i32_1 = arith.constant 0 : i32
    %c0_i32_2 = arith.constant 0 : i32
    return %c0_i32, %c0_i32_0, %c0_i32_1 : i32, i32, i32
  }
  func.func @transform_32(%arg0: i32) -> (i32, i32, i32) {
    %c0_i32 = arith.constant 0 : i32
    %c0_i32_0 = arith.constant 0 : i32
    %c0_i32_1 = arith.constant 0 : i32
    %c0_i32_2 = arith.constant 0 : i32
    return %c0_i32, %c0_i32_0, %c0_i32_1 : i32, i32, i32
  }
  func.func @transform_33(%arg0: i32) -> (i32, i32, i32) {
    %c0_i32 = arith.constant 0 : i32
    %c0_i32_0 = arith.constant 0 : i32
    %c0_i32_1 = arith.constant 0 : i32
    %c0_i32_2 = arith.constant 0 : i32
    return %c0_i32, %c0_i32_0, %c0_i32_1 : i32, i32, i32
  }
  func.func @transform_34(%arg0: i32) -> (i32, i32, i32) {
    %c0_i32 = arith.constant 0 : i32
    %c0_i32_0 = arith.constant 0 : i32
    %c0_i32_1 = arith.constant 0 : i32
    %c0_i32_2 = arith.constant 0 : i32
    return %c0_i32, %c0_i32_0, %c0_i32_1 : i32, i32, i32
  }
  func.func @transform_35(%arg0: i32) -> (i32, i32, i32) {
    %c0_i32 = arith.constant 0 : i32
    %c0_i32_0 = arith.constant 0 : i32
    %c0_i32_1 = arith.constant 0 : i32
    %c0_i32_2 = arith.constant 0 : i32
    return %c0_i32, %c0_i32_0, %c0_i32_1 : i32, i32, i32
  }
  func.func @transform_36(%arg0: i32) -> (i32, i32, i32) {
    %c0_i32 = arith.constant 0 : i32
    %c0_i32_0 = arith.constant 0 : i32
    %c0_i32_1 = arith.constant 0 : i32
    %c0_i32_2 = arith.constant 0 : i32
    return %c0_i32, %c0_i32_0, %c0_i32_1 : i32, i32, i32
  }
  func.func @transform_37(%arg0: i32) -> (i32, i32, i32) {
    %c0_i32 = arith.constant 0 : i32
    %c0_i32_0 = arith.constant 0 : i32
    %c0_i32_1 = arith.constant 0 : i32
    %c0_i32_2 = arith.constant 0 : i32
    return %c0_i32, %c0_i32_0, %c0_i32_1 : i32, i32, i32
  }
  func.func @transform_38(%arg0: i32) -> (i32, i32, i32) {
    %c0_i32 = arith.constant 0 : i32
    %c0_i32_0 = arith.constant 0 : i32
    %c0_i32_1 = arith.constant 0 : i32
    %c0_i32_2 = arith.constant 0 : i32
    return %c0_i32, %c0_i32_0, %c0_i32_1 : i32, i32, i32
  }
  func.func @transform_39(%arg0: i32) -> (i32, i32, i32) {
    %c0_i32 = arith.constant 0 : i32
    %c0_i32_0 = arith.constant 0 : i32
    %c0_i32_1 = arith.constant 0 : i32
    %c0_i32_2 = arith.constant 0 : i32
    return %c0_i32, %c0_i32_0, %c0_i32_1 : i32, i32, i32
  }
  func.func @transform_40(%arg0: i32) -> (i32, i32, i32) {
    %c0_i32 = arith.constant 0 : i32
    %c0_i32_0 = arith.constant 0 : i32
    %c0_i32_1 = arith.constant 0 : i32
    %c0_i32_2 = arith.constant 0 : i32
    return %c0_i32, %c0_i32_0, %c0_i32_1 : i32, i32, i32
  }
  func.func @transform_41(%arg0: i32) -> (i32, i32) {
    %c0_i32 = arith.constant 0 : i32
    %c0_i32_0 = arith.constant 0 : i32
    %c0_i32_1 = arith.constant 0 : i32
    return %c0_i32, %c0_i32_0 : i32, i32
  }
  func.func @transform_42(%arg0: i32) -> (i32, i32) {
    %c0_i32 = arith.constant 0 : i32
    %c0_i32_0 = arith.constant 0 : i32
    %c0_i32_1 = arith.constant 0 : i32
    return %c0_i32, %c0_i32_0 : i32, i32
  }
  func.func @transform_43(%arg0: i32) -> (i32, i32, i32) {
    %c0_i32 = arith.constant 0 : i32
    %c0_i32_0 = arith.constant 0 : i32
    %c0_i32_1 = arith.constant 0 : i32
    return %arg0, %c0_i32, %c0_i32_0 : i32, i32, i32
  }
}

</mosaic_0001>

<bundles_post_ra>
// kernel: transformer_forward.1
= control target key start
LH: loop header
LB: loop body
LE: loop exit
PB: predicated region body
PF: predicated region fallthrough
CT: control target
= control target key end

     0   :  { %s7922_s6 = smov 1   ;;  %s7923_s10 = smov 2   ;;  %s9121_s0 = inlined_call_operand.smem [shape: u32[44], index: -1, kind: input, shape index: {}] }
   0x1   :  { %s7986_s5 = sld [smem:[%s9121_s0]]   ;;  %s7924_s14 = smov 3  }
   0x2   :  { %s7991_s9 = sld [smem:[%s9121_s0 + %s7922_s6]]   ;;  %s7925_s18 = smov 4  }
   0x3   :  { %s7996_s13 = sld [smem:[%s9121_s0 + %s7923_s10]]   ;;  %s7926_s22 = smov 5  }
   0x4   :  { %s8001_s17 = sld [smem:[%s9121_s0 + %s7924_s14]]   ;;  %s7927_s26 = smov 6  }
   0x5   :  { %s8006_s21 = sld [smem:[%s9121_s0 + %s7925_s18]]   ;;  %s7928_s30 = smov 7  }
   0x6   :  { %s8011_s25 = sld [smem:[%s9121_s0 + %s7926_s22]]   ;;  %s7929_s4 = smov 8  }
   0x7   :  { %9193 = sst [smem:[#allocation5_spill]] %s7986_s5  ;;  %s7930_s10 = smov 9  }
   0x8   :  { %9194 = sst [smem:[#allocation6_spill]] %s7991_s9  ;;  %s7931_s15 = smov 10  }
   0x9   :  { %9195 = sst [smem:[#allocation7_spill]] %s7996_s13  ;;  %s7932_s20 = smov 11  }
   0xa   :  { %9196 = sst [smem:[#allocation8_spill]] %s8001_s17  ;;  %s7934_s1 = smov 13  }
   0xb   :  { %9197 = sst [smem:[#allocation9_spill]] %s8006_s21  ;;  %s7935_s7 = smov 14  }
   0xc   :  { %9198 = sst [smem:[#allocation10_spill]] %s8011_s25  ;;  %s7937_s22 = smov 16  }
   0xd   :  { %s8016_s29 = sld [smem:[%s9121_s0 + %s7927_s26]]   ;;  %s7933_s26 = smov 12  }
   0xe   :  { %s8021_s3 = sld [smem:[%s9121_s0 + %s7928_s30]]   ;;  %s7938_s28 = smov 17  }
   0xf   :  { %s8026_s8 = sld [smem:[%s9121_s0 + %s7929_s4]]  }
  0x10   :  { %s8031_s14 = sld [smem:[%s9121_s0 + %s7930_s10]]  }
  0x11   :  { %s8036_s19 = sld [smem:[%s9121_s0 + %s7931_s15]]   ;;  %s7936_s15 = smov 15  }
  0x12   :  { %s8041_s24 = sld [smem:[%s9121_s0 + %s7932_s20]]  }
  0x13   :  { %9199 = sst [smem:[#allocation11_spill]] %s8016_s29 }
  0x14   :  { %9200 = sst [smem:[#allocation12_spill]] %s8021_s3 }
  0x15   :  { %9201 = sst [smem:[#allocation13_spill]] %s8026_s8 }
  0x16   :  { %9202 = sst [smem:[#allocation14_spill]] %s8031_s14 }
  0x17   :  { %9203 = sst [smem:[#allocation15_spill]] %s8036_s19 }
  0x18   :  { %9204 = sst [smem:[#allocation16_spill]] %s8041_s24 }
  0x19   :  { %s8046_s30 = sld [smem:[%s9121_s0 + %s7933_s26]]  }
  0x1a   :  { %s8051_s6 = sld [smem:[%s9121_s0 + %s7934_s1]]  }
  0x1b   :  { %s8056_s12 = sld [smem:[%s9121_s0 + %s7935_s7]]   ;;  %s7939_s7 = smov 18  }
  0x1c   :  { %s8061_s20 = sld [smem:[%s9121_s0 + %s7936_s15]]   ;;  %s7940_s15 = smov 19  }
  0x1d   :  { %s8066_s27 = sld [smem:[%s9121_s0 + %s7937_s22]]   ;;  %s7941_s22 = smov 20  }
  0x1e   :  { %s8071_s4 = sld [smem:[%s9121_s0 + %s7938_s28]]   ;;  %s7942_s28 = smov 21  }
  0x1f   :  { %9205 = sst [smem:[#allocation17_spill]] %s8046_s30 }
  0x20   :  { %9206 = sst [smem:[#allocation18_spill]] %s8051_s6 }
  0x21   :  { %9207 = sst [smem:[#allocation19_spill]] %s8056_s12 }
  0x22   :  { %9208 = sst [smem:[#allocation20_spill]] %s8061_s20 }
  0x23   :  { %9209 = sst [smem:[#allocation21_spill]] %s8066_s27 }
  0x24   :  { %9210 = sst [smem:[#allocation22_spill]] %s8071_s4 }
  0x25   :  { %s8076_s21 = sld [smem:[%s9121_s0 + %s7939_s7]]   ;;  %s7943_s7 = smov 22  }
  0x26   :  { %s8081_s17 = sld [smem:[%s9121_s0 + %s7940_s15]]   ;;  %s7944_s15 = smov 23  }
  0x27   :  { %s8086_s9 = sld [smem:[%s9121_s0 + %s7941_s22]]   ;;  %s7945_s22 = smov 24  }
  0x28   :  { %s8091_s4 = sld [smem:[%s9121_s0 + %s7942_s28]]   ;;  %s7946_s28 = smov 25  }
  0x2b   :  { %9211 = sst [smem:[#allocation23_spill]] %s8076_s21 }
  0x2c   :  { %9212 = sst [smem:[#allocation24_spill]] %s8081_s17 }
  0x2d   :  { %9213 = sst [smem:[#allocation25_spill]] %s8086_s9 }
  0x2e   :  { %9214 = sst [smem:[#allocation26_spill]] %s8091_s4 }
  0x2f   :  { %s8096_s21 = sld [smem:[%s9121_s0 + %s7943_s7]]   ;;  %s7947_s7 = smov 26  }
  0x30   :  { %s8101_s17 = sld [smem:[%s9121_s0 + %s7944_s15]]   ;;  %s7948_s15 = smov 27  }
  0x31   :  { %s8106_s9 = sld [smem:[%s9121_s0 + %s7945_s22]]   ;;  %s7949_s22 = smov 28  }
  0x32   :  { %s8111_s4 = sld [smem:[%s9121_s0 + %s7946_s28]]   ;;  %s7950_s28 = smov 29  }
  0x35   :  { %9215 = sst [smem:[#allocation27_spill]] %s8096_s21 }
  0x36   :  { %9216 = sst [smem:[#allocation28_spill]] %s8101_s17 }
  0x37   :  { %9217 = sst [smem:[#allocation29_spill]] %s8106_s9 }
  0x38   :  { %9218 = sst [smem:[#allocation30_spill]] %s8111_s4 }
  0x39   :  { %s8116_s21 = sld [smem:[%s9121_s0 + %s7947_s7]]   ;;  %s7951_s7 = smov 30  }
  0x3a   :  { %s8121_s17 = sld [smem:[%s9121_s0 + %s7948_s15]]   ;;  %s7952_s15 = smov 31  }
  0x3b   :  { %s8126_s9 = sld [smem:[%s9121_s0 + %s7949_s22]]   ;;  %s7953_s22 = smov 32  }
  0x3c   :  { %s8131_s4 = sld [smem:[%s9121_s0 + %s7950_s28]]   ;;  %s7954_s28 = smov 33  }
  0x3f   :  { %9219 = sst [smem:[#allocation31_spill]] %s8116_s21 }
  0x40   :  { %9220 = sst [smem:[#allocation32_spill]] %s8121_s17 }
  0x41   :  { %9221 = sst [smem:[#allocation33_spill]] %s8126_s9 }
  0x42   :  { %9222 = sst [smem:[#allocation34_spill]] %s8131_s4 }
  0x43   :  { %s8136_s21 = sld [smem:[%s9121_s0 + %s7951_s7]]   ;;  %s7955_s7 = smov 34  }
  0x44   :  { %s8141_s17 = sld [smem:[%s9121_s0 + %s7952_s15]]   ;;  %s7956_s15 = smov 35  }
  0x45   :  { %s8146_s9 = sld [smem:[%s9121_s0 + %s7953_s22]]   ;;  %s7957_s22 = smov 36  }
  0x46   :  { %s8151_s4 = sld [smem:[%s9121_s0 + %s7954_s28]]   ;;  %s7958_s28 = smov 37  }
  0x49   :  { %9223 = sst [smem:[#allocation35_spill]] %s8136_s21 }
  0x4a   :  { %9224 = sst [smem:[#allocation36_spill]] %s8141_s17 }
  0x4b   :  { %9225 = sst [smem:[#allocation37_spill]] %s8146_s9 }
  0x4c   :  { %9226 = sst [smem:[#allocation38_spill]] %s8151_s4 }
  0x4d   :  { %s8156_s21 = sld [smem:[%s9121_s0 + %s7955_s7]]   ;;  %s7959_s7 = smov 38  }
  0x4e   :  { %s8161_s17 = sld [smem:[%s9121_s0 + %s7956_s15]]   ;;  %s7960_s15 = smov 39  }
  0x4f   :  { %s8166_s9 = sld [smem:[%s9121_s0 + %s7957_s22]]   ;;  %s7961_s22 = smov 40  }
  0x50   :  { %s8171_s4 = sld [smem:[%s9121_s0 + %s7958_s28]]   ;;  %s7962_s28 = smov 41  }
  0x53   :  { %9227 = sst [smem:[#allocation39_spill]] %s8156_s21 }
  0x54   :  { %9228 = sst [smem:[#allocation40_spill]] %s8161_s17 }
  0x55   :  { %9229 = sst [smem:[#allocation41_spill]] %s8166_s9 }
  0x56   :  { %9230 = sst [smem:[#allocation42_spill]] %s8171_s4 }
  0x57   :  { %s8176_s21 = sld [smem:[%s9121_s0 + %s7959_s7]]   ;;  %s7963_s7 = smov 42  }
  0x58   :  { %s8181_s17 = sld [smem:[%s9121_s0 + %s7960_s15]]   ;;  %s7964_s15 = smov 43  }
  0x59   :  { %s8186_s9 = sld [smem:[%s9121_s0 + %s7961_s22]]  }
  0x5a   :  { %s8191_s4 = sld [smem:[%s9121_s0 + %s7962_s28]]  }
  0x5d   :  { %9231 = sst [smem:[#allocation43_spill]] %s8176_s21 }
  0x5e   :  { %9232 = sst [smem:[#allocation44_spill]] %s8181_s17 }
  0x5f   :  { %s8196_s21 = sld [smem:[%s9121_s0 + %s7963_s7]]  }
  0x60   :  { %9233 = sst [smem:[#allocation45_spill]] %s8191_s4 }
  0x61   :  { %s8201_s17 = sld [smem:[%s9121_s0 + %s7964_s15]]  }
  0x65   :  { %9234 = sst [smem:[#allocation46_spill]] %s8196_s21 }
  0x67   :  { %9235 = sst [smem:[#allocation47_spill]] %s8201_s17 }
  0x68   :  { %92 = vsyncpa [#allocation3], 0 }
  0x69   :  { %94 = vsyncpa [#allocation3 + $0x1], 0  ;;  %s8203_s22 = smov 0   ;;  %s8205_s23 = smov 0  }
  0x6a   :  { %s8207_s26 = smov 0   ;;  %s8209_s28 = smov 0  }
  0x6b LB: > { %s9236_s30 = sld [smem:[#allocation17_spill]]  ;;  %s9237_s27 = sld [smem:[#allocation21_spill]]  ;;  %s7920_s28 = sphi %s8209_s28, %s9316_s28   ;;  %s7916_s26 = sphi %s8207_s26, %s9319_s26   ;;  %s7912_s23 = sphi %s8205_s23, %s9318_s23   ;;  %s7908_s22 = sphi %s8203_s22, %s9317_s22  }
  0x6c   : > { %s9238_s24 = sld [smem:[#allocation16_spill]]  ;;  %s9239_s20 = sld [smem:[#allocation20_spill]] }
  0x6d   : > { %s9240_s12 = sld [smem:[#allocation19_spill]]  ;;  %s9241_s19 = sld [smem:[#allocation15_spill]] }
  0x6e   : > { %s9242_s6 = sld [smem:[#allocation18_spill]]  ;;  %s9243_s14 = sld [smem:[#allocation14_spill]] }
  0x6f   : > { %s9244_s29 = sld [smem:[#allocation11_spill]]  ;;  %s9245_s25 = sld [smem:[#allocation10_spill]] }
  0x70   : > { %s9246_s8 = sld [smem:[#allocation13_spill]]  ;;  %s9247_s3 = sld [smem:[#allocation12_spill]] }
  0x71   : > { %9248 = sst [smem:[#allocation48_spill]] %s7908_s22  ;;  %s8224_s0 = sadd.s32 4294967295, %s7920_s28  }
  0x72   : > { %9249 = sst [smem:[#allocation49_spill]] %s7912_s23  ;;  %s6580_s1 = sadd.s32 4294967294, %s7920_s28  }
  0x73   : > { %9250 = sst [smem:[#allocation50_spill]] %s7916_s26  ;;  %s8228_s2 = sadd.s32 1, %s7920_s28  }
  0x74   : > { %9251 = sst [smem:[#allocation51_spill]] %s7920_s28  ;;  %s1035_s7 = sadd.s32 1, %s7916_s26 }
  0x75   : > { %9252 = sst [smem:[#allocation52_spill]] %s8224_s0  ;;  %s1032_s10 = ssub.s32 %s7920_s28, %s8228_s2 }
  0x76   : > { %9253 = sst [smem:[#allocation53_spill]] %s8228_s2  ;;  %p1045_p0 = scmp.ne.s32.totalorder %s7916_s26, %s7912_s23 }
  0x77   : > { %p1033_p1 = scmp.eq.s32.totalorder %s1032_s10, 0  ;;  %p1046_p2 = scmp.eq.s32.totalorder %s8224_s0, 1 }
  0x78   : > { %p1051_p3 = scmp.ne.s32.totalorder %s7912_s23, %s7908_s22  ;;  %p1052_p4 = scmp.eq.s32.totalorder %s6580_s1, 1 }
  0x79   : > { %s8239_s11 = scalar_select %p1033_p1, %s7916_s26, %s1035_s7  }
  0x7a   : > { %p8241_p5 = por %p1046_p2, %p1045_p0  ;;  %p8245_p6 = por %p1052_p4, %p1051_p3 }
  0x7b   : > { %9254 = sst [smem:[#allocation54_spill]] %s8239_s11  ;;  %p6583_p7 = scmp.ge.s32.totalorder %s7920_s28, 1 }
  0x7c   : > { %s9255_s15 = scalar_select %p8241_p5, 1, 0 }
  0x7d   : > { %s9257_s16 = scalar_select %p8245_p6, 1, 0 }
  0x7e   : > { %9256 = sst [smem:[#allocation55_spill]] %s9255_s15  ;;  %p1219_p8 = scmp.lt.s32.totalorder %s7920_s28, 3 }
  0x7f   : > { %9258 = sst [smem:[#allocation56_spill]] %s9257_s16 }
  0x80   : > { %p1220_p9 = pnand %p6583_p7, %p1219_p8 }
  0x81   : > { %v7660_v0 = vld [vmem:[%s9247_s3] sm:$0xff] (!%p1220_p9)   ;;  %v7965_v1 = vmov (!%p1220_p9), 0.0   ;;  %s9259_s5 = sld [smem:[#allocation5_spill]] (!%p1220_p9)  ;;  %v7662_v3 = vld [vmem:[%s9247_s3 + $0x8] sm:$0xff] (!%p1220_p9)   ;;  %vm7966_vm0 = vmmov (!%p1220_p9), 0   ;;  %p1338_p10 = scmp.lt.s32.totalorder (!%p1220_p9), %s8224_s0, 1 }
  0x82   : > { %1223 = sbr.rel (%p1220_p9) target bundleno = 13393 (0x3451), region = 192  ;;  %7054 = vmatprep.subr.bf16.mxu1 (!%p1220_p9), %v7965_v1  ;;  %7046 = vmatprep.subr.bf16.mxu0 (!%p1220_p9), %v7965_v1  ;;  %v7661_v2 = vld [vmem:[%s9245_s25] sm:$0xff] (!%p1220_p9)   ;;  %v7663_v4 = vld [vmem:[%s9245_s25 + $0x8] sm:$0xff] (!%p1220_p9)   ;;  %vm1395_vm1 = vcmask (!%p1220_p9), 261120   ;;  %vm1499_vm2 = vcmask (!%p1220_p9), 64512   ;;  %s9149_s10 = smov (!%p1220_p9), 112  }
  0x83   : > { %7055 = vmatpush3.bf16.msra.mxu1 (!%p1220_p9), %v7660_v0  ;;  %7058 = vmatprep.mubr.msk.bf16.mxu1 (!%p1220_p9), %vm7966_vm0, %v7965_v1  ;;  %v6594_v7 = vld [vmem:[%s9246_s8] ss:$0 sm:$0xff] (!%p1220_p9)  ;;  %s9260_s13 = sld [smem:[#allocation7_spill]] (!%p1220_p9)  ;;  %vm1567_vm4 = vcmask (!%p1220_p9), 1043456   ;;  %vm1961_vm5 = vcmask (!%p1220_p9), 130048   ;;  %vm1963_vm6 = vcmask (!%p1220_p9), 195584  }
  0x84   : > { %7056 = vmatprep.subr.bf16.mxu1 (!%p1220_p9), %v7965_v1  ;;  %7047 = vmatpush3.bf16.msra.mxu0 (!%p1220_p9), %v7661_v2  ;;  %v6590_v8 = vld [vmem:[%s9244_s29] ss:$0 sm:$0xff] (!%p1220_p9)  ;;  %vm2173_vm9 = vcmask (!%p1220_p9), 523264   ;;  %s9270_s11 = smov (!%p1220_p9), 8   ;;  %s9271_s26 = smov (!%p1220_p9), 16  }
  0x85   : > { %7048 = vmatprep.subr.bf16.mxu0 (!%p1220_p9), %v7965_v1  ;;  %7050 = vmatprep.mubr.msk.bf16.mxu0 (!%p1220_p9), %vm7966_vm0, %v7965_v1  ;;  %s9272_s2 = smov (!%p1220_p9), 24   ;;  %s9286_s22 = sld [smem:[#allocation33_spill]] (!%p1220_p9) }
  0x86   : > { %s9294_s21 = sld [smem:[#allocation42_spill]] (!%p1220_p9)  ;;  %s9297_s23 = sld [smem:[#allocation39_spill]] (!%p1220_p9) }
  0x87   : > { %7057 = vmatpush3.bf16.msra.mxu1 (!%p1220_p9), %v7662_v3  ;;  %s9300_s17 = sld [smem:[#allocation43_spill]] (!%p1220_p9) }
  0x88   : > { %7049 = vmatpush3.bf16.msra.mxu0 (!%p1220_p9), %v7663_v4  ;;  %7068 = vmatprep.subr.bf16.mxu1 (!%p1220_p9), %v7965_v1 }
  0x89   : > { %s1339_s18 = scalar_select %p1338_p10, %s8224_s0, 1  ;;  %7062 = vmatprep.subr.bf16.mxu0 %v7965_v1 }
  0x8b   : > { %s8265_s1 = sshll.u32 %s1339_s18, 3  ;;  %s9151_s18 = smov 120  }
  0x8c   : > { %s1341_s7 = scalar_lea.vmem %s9259_s5, %s8265_s1  ;;  %s9265_s5 = smov 104  }
  0x8d   : > { %v8270_v5 = vld [vmem:[%s1341_s7] sm:$0xff]  ;;  %s9145_s7 = smov 104   ;;  %s9287_s15 = smov %s9286_s22 }
  0x8e   : > { %v1376_v6 = vpack.c.bf16 %v8270_v5, %v8270_v5 }
  0x90   : > { %7059 = vmatmul.mubr.msk.bf16.vlgmr.msra.gmra.mrb[0].mxu1 %vm1395_vm1, %v1376_v6  ;;  %7051 = vmatmul.mubr.msk.bf16.vlgmr.msra.gmra.mrb[0].mxu0 %vm1395_vm1, %v1376_v6 }
  0x91   : > { %7064 = vmatprep.mubr.msk.bf16.mxu0 %vm7966_vm0, %v7965_v1  ;;  %7070 = vmatprep.mubr.msk.bf16.mxu1 %vm7966_vm0, %v7965_v1 }
 0x163   : > { %v1491_v9 = vpop.f32.mrb[0].mxu1  ;;  %v1433_v10 = vpop.f32.mrb[0].mxu0 }
 0x164   : > { %v1492_v11 = vadd.f32 %v6594_v7, %v1491_v9  ;;  %v7060_v12 = vpop.f32.mrb[1].mxu1  ;;  %v1434_v13 = vadd.f32 %v6590_v8, %v1433_v10  ;;  %v7052_v14 = vpop.f32.mrb[1].mxu0 }
 0x165   : > { %v1494_v15 = vpop.f32.mrb[2].mxu1  ;;  %v1436_v16 = vpop.f32.mrb[2].mxu0 }
 0x166   : > { %v8283_v17 = vpack.c.bf16 %v1492_v11, %v1492_v11  ;;  %v7061_v18 = vpop.f32.mrb[3].mxu1  ;;  %v7053_v19 = vpop.f32.mrb[3].mxu0  ;;  %v1497_v20 = vpack.c.bf16 %v1434_v13, %v1434_v13 }
 0x168   : > { %1726 = vrot.lane.b32.xlu1 %v8283_v17, %s9149_s10  ;;  %1614 = vrot.lane.b32.xlu0 %v8283_v17, %s9151_s18  ;;  %v1504_v21 = vsel %vm1499_vm2, %v8283_v17, 0 }
 0x169   : > { %7063 = vmatpush3.bf16.xpose.msra.mxu0 %v1504_v21 }
 0x16a   : > { %7074 = vmatprep.subr.bf16.mxu0 %v7965_v1 }
 0x16c   : > { %1724 = vrot.lane.b32.xlu1 %v1497_v20, %s9149_s10  ;;  %1612 = vrot.lane.b32.xlu0 %v1497_v20, %s9151_s18  ;;  %s9155_s10 = smov 72   ;;  %s9157_s18 = smov 88  }
 0x170   : > { %1836 = vrot.lane.b32.xlu1 %v1497_v20, %s9145_s7  ;;  %1838 = vrot.lane.b32.xlu0 %v8283_v17, %s9145_s7  ;;  %s1349_s7 = scalar_lea.vmem %s9260_s13, %s8265_s1  ;;  %s9267_s13 = smov 96  }
 0x171   : > { %7065 = vmatmul.mubr.msk.bf16.vlgmr.msra.gmra.mrb[4].mxu0 %vm1499_vm2, %v1497_v20  ;;  %v8317_v31 = vld [vmem:[%s1349_s7] sm:$0xff]  ;;  %s9147_s7 = smov 96  }
 0x172   : > { %7076 = vmatprep.mubr.msk.bf16.mxu0 %vm7966_vm0, %v7965_v1  ;;  %vm1547_vm3 = vcmp.eq.f32.partialorder %v8317_v31, 0.0 }
 0x1da   : > { %v1615_v22 = vpop.permute.xlu0 %1614  ;;  %v1727_v24 = vpop.permute.xlu1 %1726 }
 0x1db   : > { %v1620_v23 = vsel %vm1499_vm2, %v1615_v22, 0  ;;  %v1732_v26 = vsel %vm1499_vm2, %v1727_v24, 0 }
 0x1dc   : > { %7075 = vmatpush3.bf16.xpose.msra.mxu0 %v1620_v23 }
 0x1dd   : > { %7086 = vmatprep.subr.bf16.mxu0 %v7965_v1 }
 0x1de   : > { %v1613_v25 = vpop.permute.xlu0 %1612  ;;  %v1725_v28 = vpop.permute.xlu1 %1724 }
 0x1e2   : > { %v1839_v27 = vpop.permute.xlu0 %1838  ;;  %v1837_v30 = vpop.permute.xlu1 %1836 }
 0x1e3   : > { %7077 = vmatmul.mubr.msk.bf16.vlgmr.msra.gmra.mrb[8].mxu0 %vm1499_vm2, %v1613_v25  ;;  %v1844_v29 = vsel %vm1499_vm2, %v1839_v27, 0 }
 0x1e4   : > { %7087 = vmatpush3.bf16.xpose.msra.mxu0 %v1732_v26  ;;  %7088 = vmatprep.mubr.msk.bf16.mxu0 %vm7966_vm0, %v7965_v1 }
 0x1e5   : > { %7098 = vmatprep.subr.bf16.mxu0 %v7965_v1 }
 0x1eb   : > { %7089 = vmatmul.mubr.msk.bf16.vlgmr.msra.gmra.mrb[12].mxu0 %vm1499_vm2, %v1725_v28 }
 0x1ec   : > { %7099 = vmatpush3.bf16.xpose.msra.mxu0 %v1844_v29  ;;  %7100 = vmatprep.mubr.msk.bf16.mxu0 %vm7966_vm0, %v7965_v1 }
 0x1ed   : > { %7110 = vmatprep.subr.bf16.mxu0 %v7965_v1 }
 0x1f3   : > { %7101 = vmatmul.mubr.msk.bf16.vlgmr.msra.gmra.mrb[16].mxu0 %vm1499_vm2, %v1837_v30 }
 0x1f4   : > { %7114 = vmatprep.mubr.msk.bf16.mxu0 %vm7966_vm0, %v7965_v1 }
 0x244   : > { %v1540_v32 = vpop.f32.mrb[4].mxu0 }
 0x245   : > { %v1546_v33 = vmul.f32 0.35355338, %v1540_v32  ;;  %v7066_v34 = vpop.f32.mrb[5].mxu0 }
 0x246   : > { %v1543_v35 = vpop.f32.mrb[6].mxu0 }
 0x247   : > { %v7067_v36 = vpop.f32.mrb[7].mxu0  ;;  %v1548_v37 = vsel %vm1547_vm3, -1000000.0, %v1546_v33 }
 0x248   : > { %v1549_v38 = vsel %vm1499_vm2, %v1548_v37, -inf }
 0x249   : > { %1550 = vmax.xlane.f32.xlu0 %v1549_v38 }
 0x2b6   : > { %v1656_v39 = vpop.f32.mrb[8].mxu0 }
 0x2b7   : > { %v1662_v40 = vmul.f32 0.35355338, %v1656_v39  ;;  %v7078_v41 = vpop.f32.mrb[9].mxu0 }
 0x2b8   : > { %v1659_v42 = vpop.f32.mrb[10].mxu0 }
 0x2b9   : > { %v7079_v43 = vpop.f32.mrb[11].mxu0  ;;  %v1663_v44 = vsel %vm1547_vm3, -1000000.0, %v1662_v40 }
 0x2ba   : > { %v1664_v45 = vsel %vm1499_vm2, %v1663_v44, -inf }
 0x2bb   : > { %1665 = vmax.xlane.f32.xlu1 %v1664_v45 }
 0x2be   : > { %v1768_v46 = vpop.f32.mrb[12].mxu0 }
 0x2bf   : > { %v1774_v47 = vmul.f32 0.35355338, %v1768_v46  ;;  %v7090_v48 = vpop.f32.mrb[13].mxu0 }
 0x2c0   : > { %v1771_v49 = vpop.f32.mrb[14].mxu0 }
 0x2c1   : > { %v7091_v50 = vpop.f32.mrb[15].mxu0  ;;  %v1775_v51 = vsel %vm1547_vm3, -1000000.0, %v1774_v47  ;;  %v7664_v47 = vld [vmem:[%s9243_s14] sm:$0xff]  }
 0x2c2   : > { %v1776_v52 = vsel %vm1499_vm2, %v1775_v51, -inf  ;;  %7111 = vmatpush3.bf16.msra.mxu0 %v7664_v47 }
 0x2c3   : > { %1777 = vmax.xlane.f32.xlu0 %v1776_v52  ;;  %7112 = vmatprep.subr.bf16.mxu0 %v7965_v1  ;;  %v7665_v52 = vld [vmem:[%s9243_s14 + $0x8] sm:$0xff]  }
 0x2c6   : > { %v1880_v53 = vpop.f32.mrb[16].mxu0  ;;  %7113 = vmatpush3.bf16.msra.mxu0 %v7665_v52 }
 0x2c7   : > { %v1886_v54 = vmul.f32 0.35355338, %v1880_v53  ;;  %v7102_v55 = vpop.f32.mrb[17].mxu0  ;;  %7126 = vmatprep.subr.bf16.mxu0 %v7965_v1 }
 0x2c8   : > { %v1883_v56 = vpop.f32.mrb[18].mxu0 }
 0x2c9   : > { %v7103_v57 = vpop.f32.mrb[19].mxu0  ;;  %v1887_v58 = vsel %vm1547_vm3, -1000000.0, %v1886_v54 }
 0x2ca   : > { %v1888_v59 = vsel %vm1499_vm2, %v1887_v58, -inf }
 0x2cb   : > { %1889 = vmax.xlane.f32.xlu0 %v1888_v59 }
 0x2d6   : > { %v1551_v60 = vpop.xlane.xlu0 %1550 }
 0x2d7   : > { %v1552_v61 = vsub.f32 %v1548_v37, %v1551_v60 }
 0x2d9   : > { %v1553_v62 = vmul.f32 1.442695, %v1552_v61 }
 0x2db   : > { %7722 = vpow2.f32 %v1553_v62 }
 0x2e5   : > { %v7723_v63 = vpop.eup %7722 }
 0x2e6   : > { %v1555_v0 = vsel %vm1499_vm2, %v7723_v63, 0.0 }
 0x2e7   : > { %1556 = vadd.xlane.f32.xlu1 %v1555_v0 }
 0x2f8   : > { %1562 = vrot.lane.b32.xlu1 %v8283_v17, %s9147_s7  ;;  %s9153_s7 = smov 80  }
 0x348   : > { %v1666_v2 = vpop.xlane.xlu1 %1665 }
 0x349   : > { %v1667_v3 = vsub.f32 %v1663_v44, %v1666_v2 }
 0x34b   : > { %v1668_v4 = vmul.f32 1.442695, %v1667_v3 }
 0x34d   : > { %7724 = vpow2.f32 %v1668_v4 }
 0x350   : > { %v1778_v6 = vpop.xlane.xlu0 %1777 }
 0x351   : > { %v1779_v7 = vsub.f32 %v1775_v51, %v1778_v6  ;;  %v6606_v6 = vld [vmem:[%s9241_s19] ss:$0 sm:$0xff] }
 0x353   : > { %v1780_v8 = vmul.f32 1.442695, %v1779_v7 }
 0x355   : > { %7726 = vpow2.f32 %v1780_v8 }
 0x357   : > { %v7725_v9 = vpop.eup %7724 }
 0x358   : > { %v1890_v10 = vpop.xlane.xlu0 %1889  ;;  %v1670_v11 = vsel %vm1499_vm2, %v7725_v9, 0.0 }
 0x359   : > { %v1891_v12 = vsub.f32 %v1887_v58, %v1890_v10  ;;  %1671 = vadd.xlane.f32.xlu0 %v1670_v11 }
 0x35b   : > { %v1892_v13 = vmul.f32 1.442695, %v1891_v12 }
 0x35d   : > { %7728 = vpow2.f32 %v1892_v13 }
 0x35f   : > { %v7727_v14 = vpop.eup %7726 }
 0x360   : > { %v1782_v15 = vsel %vm1499_vm2, %v7727_v14, 0.0 }
 0x361   : > { %1783 = vadd.xlane.f32.xlu1 %v1782_v15 }
 0x367   : > { %v7729_v16 = vpop.eup %7728 }
 0x368   : > { %v1894_v18 = vsel %vm1499_vm2, %v7729_v16, 0.0 }
 0x369   : > { %1895 = vadd.xlane.f32.xlu0 %v1894_v18 }
 0x372   : > { %1788 = vrot.lane.b32.xlu1 %v8283_v17, %s9153_s7  ;;  %s9163_s7 = smov 8  }
 0x374   : > { %v1557_v19 = vpop.xlane.xlu1 %1556 }
 0x375   : > { %7730 = vrcp.f32 %v1557_v19 }
 0x376   : > { %1900 = vrot.lane.b32.xlu1 %v8283_v17, %s9155_s10  ;;  %s9161_s10 = smov 16  }
 0x378   : > { %v1563_v20 = vpop.permute.xlu1 %1562 }
 0x379   : > { %v1569_v21 = vsel %vm1567_vm4, %v1563_v20, 0  ;;  %v7666_v20 = vld [vmem:[%s9242_s6] sm:$0xff]  }
 0x37a   : > { %7069 = vmatpush3.bf16.msra.mxu1 %v1569_v21  ;;  %v7667_v21 = vld [vmem:[%s9242_s6 + $0x8] sm:$0xff]  }
 0x37b   : > { %7080 = vmatprep.subr.bf16.mxu1 %v7965_v1 }
 0x37f   : > { %v7731_v22 = vpop.eup %7730  ;;  %1676 = vrot.lane.b32.xlu0 %v8283_v17, %s9157_s18  ;;  %s9159_s18 = smov 24  }
 0x380   : > { %v1559_v23 = vmul.f32 %v7731_v22, %v7723_v63  ;;  %v7669_v22 = vld [vmem:[%s9239_s20 + $0x8] sm:$0xff]  }
 0x382   : > { %v1560_v24 = vpack.c.bf16 %v1559_v23, %v1559_v23 }
 0x384   : > { %7071 = vmatmul.mubr.msk.bf16.vlgmr.msra.gmra.mrb[4].mxu1 %vm1499_vm2, %v1560_v24 }
 0x385   : > { %7082 = vmatprep.mubr.msk.bf16.mxu1 %vm7966_vm0, %v7965_v1 }
 0x3e6   : > { %v1672_v25 = vpop.xlane.xlu0 %1671 }
 0x3e7   : > { %7732 = vrcp.f32 %v1672_v25 }
 0x3ee   : > { %v1784_v26 = vpop.xlane.xlu1 %1783 }
 0x3ef   : > { %7734 = vrcp.f32 %v1784_v26 }
 0x3f1   : > { %v7733_v27 = vpop.eup %7732 }
 0x3f2   : > { %v1674_v29 = vmul.f32 %v7733_v27, %v7725_v9  ;;  %v1789_v33 = vpop.permute.xlu1 %1788 }
 0x3f3   : > { %v1794_v35 = vsel %vm1567_vm4, %v1789_v33, 0  ;;  %v6610_v33 = vld [vmem:[%s9238_s24] ss:$0 sm:$0xff] }
 0x3f4   : > { %v1675_v17 = vpack.c.bf16 %v1674_v29, %v1674_v29 }
 0x3f6   : > { %v1896_v28 = vpop.xlane.xlu0 %1895  ;;  %v1901_v37 = vpop.permute.xlu1 %1900 }
 0x3f7   : > { %7736 = vrcp.f32 %v1896_v28  ;;  %v1906_v40 = vsel %vm1567_vm4, %v1901_v37, 0 }
 0x3f9   : > { %v7735_v34 = vpop.eup %7734 }
 0x3fa   : > { %v1677_v30 = vpop.permute.xlu0 %1676  ;;  %v1786_v36 = vmul.f32 %v7735_v34, %v7727_v14  ;;  %v6611_v34 = vld [vmem:[%s9236_s30] ss:$0 sm:$0xff] }
 0x3fb   : > { %v1682_v32 = vsel %vm1567_vm4, %v1677_v30, 0 }
 0x3fc   : > { %7081 = vmatpush3.bf16.msra.mxu1 %v1682_v32  ;;  %v1787_v38 = vpack.c.bf16 %v1786_v36, %v1786_v36 }
 0x3fd   : > { %7092 = vmatprep.subr.bf16.mxu1 %v7965_v1 }
 0x3ff   : > { %7083 = vmatmul.mubr.msk.bf16.vlgmr.msra.gmra.mrb[8].mxu1 %vm1499_vm2, %v1675_v17 }
 0x400   : > { %7093 = vmatpush3.bf16.msra.mxu1 %v1794_v35  ;;  %7094 = vmatprep.mubr.msk.bf16.mxu1 %vm7966_vm0, %v7965_v1 }
 0x401   : > { %7104 = vmatprep.subr.bf16.mxu1 %v7965_v1  ;;  %v7737_v39 = vpop.eup %7736 }
 0x402   : > { %v1898_v41 = vmul.f32 %v7737_v39, %v7729_v16  ;;  %v7671_v39 = vld [vmem:[%s9239_s20 + $0x18] sm:$0xff]  }
 0x404   : > { %v1899_v42 = vpack.c.bf16 %v1898_v41, %v1898_v41 }
 0x407   : > { %7095 = vmatmul.mubr.msk.bf16.vlgmr.msra.gmra.mrb[12].mxu1 %vm1499_vm2, %v1787_v38  ;;  %v7670_v38 = vld [vmem:[%s9239_s20 + $0x10] sm:$0xff]  }
 0x408   : > { %7105 = vmatpush3.bf16.msra.mxu1 %v1906_v40  ;;  %7106 = vmatprep.mubr.msk.bf16.mxu1 %vm7966_vm0, %v7965_v1  ;;  %v6612_v40 = vld [vmem:[%s9240_s12] ss:$0 sm:$0xff] }
 0x409   : > { %7118 = vmatprep.subr.bf16.mxu1 %v7965_v1 }
 0x40f   : > { %7107 = vmatmul.mubr.msk.bf16.vlgmr.msra.gmra.mrb[16].mxu1 %vm1499_vm2, %v1899_v42 }
 0x410   : > { %7122 = vmatprep.mubr.msk.bf16.mxu1 %vm7966_vm0, %v7965_v1  ;;  %7119 = vmatpush3.bf16.msra.mxu1 %v7666_v20 }
 0x411   : > { %7120 = vmatprep.subr.bf16.mxu1 %v7965_v1 }
 0x414   : > { %7121 = vmatpush3.bf16.msra.mxu1 %v7667_v21 }
 0x415   : > { %7138 = vmatprep.subr.bf16.mxu1 %v7965_v1 }
 0x457   : > { %v1605_v43 = vpop.f32.mrb[4].mxu1 }
 0x458   : > { %v7072_v44 = vpop.f32.mrb[5].mxu1 }
 0x459   : > { %v1608_v45 = vpop.f32.mrb[6].mxu1 }
 0x45a   : > { %v7073_v46 = vpop.f32.mrb[7].mxu1 }
 0x4d2   : > { %v1718_v48 = vpop.f32.mrb[8].mxu1 }
 0x4d3   : > { %1949 = vrot.lane.b32.xlu0 %v1718_v48, %s9163_s7  ;;  %v7084_v49 = vpop.f32.mrb[9].mxu1  ;;  %v6616_v48 = vld [vmem:[%s9237_s27] ss:$0 sm:$0xff]  ;;  %s9263_s7 = smov 120  }
 0x4d4   : > { %v1721_v50 = vpop.f32.mrb[10].mxu1 }
 0x4d5   : > { %v7085_v51 = vpop.f32.mrb[11].mxu1 }
 0x4da   : > { %v1830_v53 = vpop.f32.mrb[12].mxu1 }
 0x4db   : > { %1953 = vrot.lane.b32.xlu1 %v1830_v53, %s9161_s10  ;;  %v7096_v54 = vpop.f32.mrb[13].mxu1  ;;  %s9262_s10 = sld [smem:[#allocation23_spill]] }
 0x4dc   : > { %v1833_v55 = vpop.f32.mrb[14].mxu1 }
 0x4dd   : > { %v7097_v56 = vpop.f32.mrb[15].mxu1 }
 0x4e2   : > { %v1942_v57 = vpop.f32.mrb[16].mxu1 }
 0x4e3   : > { %1957 = vrot.lane.b32.xlu0 %v1942_v57, %s9159_s18  ;;  %v7108_v58 = vpop.f32.mrb[17].mxu1  ;;  %s9261_s18 = sld [smem:[#allocation22_spill]] }
 0x4e4   : > { %v1945_v59 = vpop.f32.mrb[18].mxu1 }
 0x4e5   : > { %v7109_v60 = vpop.f32.mrb[19].mxu1 }
 0x545   : > { %v1950_v61 = vpop.permute.xlu0 %1949 }
 0x546   : > { %v1960_v63 = vsel %vm1499_vm2, %v1605_v43, %v1950_v61  ;;  %v7672_v61 = vld [vmem:[%s9245_s25 + $0x10] sm:$0xff]  }
 0x54d   : > { %v1954_v62 = vpop.permute.xlu1 %1953 }
 0x54e   : > { %v1962_v0 = vsel %vm1961_vm5, %v1960_v63, %v1954_v62  ;;  %v7673_v62 = vld [vmem:[%s9245_s25 + $0x18] sm:$0xff]   ;;  %s9268_s25 = smov 72  }
 0x555   : > { %v1958_v2 = vpop.permute.xlu0 %1957 }
 0x556   : > { %v1964_v3 = vsel %vm1963_vm6, %v1962_v0, %v1958_v2 }
 0x557   : > { %v1965_v4 = vpack.c.bf16 %v1964_v3, %v1964_v3 }
 0x559   : > { %7115 = vmatmul.mubr.msk.bf16.vlgmr.msra.gmra.mrb[20].mxu0 %vm1395_vm1, %v1965_v4 }
 0x55a   : > { %7134 = vmatprep.mubr.msk.bf16.mxu0 %vm7966_vm0, %v7965_v1 }
 0x62c   : > { %v2021_v7 = vpop.f32.mrb[20].mxu0 }
 0x62d   : > { %v2022_v8 = vadd.f32 %v6606_v6, %v2021_v7  ;;  %v7116_v9 = vpop.f32.mrb[21].mxu0 }
 0x62e   : > { %v2024_v10 = vpop.f32.mrb[22].mxu0 }
 0x62f   : > { %v7117_v11 = vpop.f32.mrb[23].mxu0  ;;  %v2029_v12 = vadd.f32 %v2022_v8, %v8270_v5  ;;  %v7668_v5 = vld [vmem:[%s9239_s20] sm:$0xff]  }
 0x630   : > { %7127 = vmatpush3.bf16.msra.mxu0 %v7668_v5  ;;  %v6622_v10 = vld [vmem:[%s9261_s18] ss:$0 sm:$0xff] }
 0x631   : > { %v2030_v13 = vsel %vm1395_vm1, %v2029_v12, 0.0  ;;  %7128 = vmatprep.subr.bf16.mxu0 %v7965_v1 }
 0x632   : > { %2031 = vadd.xlane.f32.xlu1 %v2030_v13 }
 0x634   : > { %7129 = vmatpush3.bf16.msra.mxu0 %v7669_v22 }
 0x635   : > { %7130 = vmatprep.subr.bf16.mxu0 %v7965_v1 }
 0x638   : > { %7131 = vmatpush3.bf16.msra.mxu0 %v7670_v38 }
 0x639   : > { %7132 = vmatprep.subr.bf16.mxu0 %v7965_v1 }
 0x63c   : > { %7133 = vmatpush3.bf16.msra.mxu0 %v7671_v39 }
 0x63d   : > { %7154 = vmatprep.subr.bf16.mxu0 %v7965_v1 }
 0x6bf   : > { %v2032_v14 = vpop.xlane.xlu1 %2031 }
 0x6c0   : > { %v2034_v15 = vmul.f32 0.03125, %v2032_v14 }
 0x6c2   : > { %v2035_v16 = vsub.f32 %v2029_v12, %v2034_v15  ;;  %v6623_v12 = vld [vmem:[%s9262_s10] ss:$0 sm:$0xff]  ;;  %v7674_v15 = vld [vmem:[%s9247_s3 + $0x10] sm:$0xff]  }
 0x6c4   : > { %v2036_v18 = vmul.f32 %v2035_v16, %v2035_v16 }
 0x6c6   : > { %v2037_v19 = vsel %vm1395_vm1, %v2036_v18, 0.0  ;;  %v7675_v18 = vld [vmem:[%s9247_s3 + $0x18] sm:$0xff]   ;;  %s9264_s3 = smov 112  }
 0x6c7   : > { %2038 = vadd.xlane.f32.xlu0 %v2037_v19  ;;  %v6639_v19 = vld [vmem:[%s9244_s29 + $0x1] ss:$0 sm:$0xff]  ;;  %s9269_s29 = smov 80  }
 0x754   : > { %v2039_v23 = vpop.xlane.xlu0 %2038 }
 0x755   : > { %v2040_v24 = vmul.f32 0.03125, %v2039_v23 }
 0x757   : > { %7738 = vrsqrt.f32 %v2040_v24  ;;  %vm2043_vm7 = vcmp.eq.f32.partialorder %v2040_v24, inf  ;;  %v2046_v27 = vand.u32 2147483648, %v2040_v24  ;;  %vm2045_vm8 = vcmp.eq.f32.partialorder %v2040_v24, 0.0 }
 0x761   : > { %v7739_v25 = vpop.eup %7738 }
 0x762   : > { %v2042_v26 = vmul.f32 %v7739_v25, %v2040_v24  ;;  %v6643_v25 = vld [vmem:[%s9246_s8 + $0x1] ss:$0 sm:$0xff]  ;;  %s9266_s8 = smov 88  }
 0x764   : > { %v2044_v28 = vsel %vm2043_vm7, %v2040_v24, %v2042_v26 }
 0x765   : > { %v2047_v29 = vsel %vm2045_vm8, %v2046_v27, %v2044_v28 }
 0x766   : > { %v2048_v30 = vadd.f32 1e-06, %v2047_v29 }
 0x768   : > { %7740 = vrsqrt.f32 %v2048_v30 }
 0x772   : > { %v7741_v32 = vpop.eup %7740 }
 0x773   : > { %v2050_v17 = vmul.f32 %v7741_v32, %v2035_v16 }
 0x775   : > { %v2057_v35 = vmul.f32 %v6610_v33, %v2050_v17 }
 0x777   : > { %v2064_v36 = vadd.f32 %v6611_v34, %v2057_v35 }
 0x779   : > { %v2079_v37 = vpack.c.bf16 %v2064_v36, %v2064_v36 }
 0x77b   : > { %7123 = vmatmul.mubr.msk.bf16.vlgmr.msra.gmra.mrb[20].mxu1 %vm1395_vm1, %v2079_v37 }
 0x77c   : > { %7142 = vmatprep.mubr.msk.bf16.mxu1 %vm7966_vm0, %v7965_v1  ;;  %7139 = vmatpush3.bf16.msra.mxu1 %v7672_v61 }
 0x77d   : > { %7140 = vmatprep.subr.bf16.mxu1 %v7965_v1 }
 0x780   : > { %7141 = vmatpush3.bf16.msra.mxu1 %v7673_v62 }
 0x781   : > { %7146 = vmatprep.subr.bf16.mxu1 %v7965_v1 }
 0x84e   : > { %v2135_v41 = vpop.f32.mrb[20].mxu1 }
 0x84f   : > { %v2136_v42 = vadd.f32 %v6612_v40, %v2135_v41  ;;  %v7124_v43 = vpop.f32.mrb[21].mxu1 }
 0x850   : > { %v2138_v44 = vpop.f32.mrb[22].mxu1 }
 0x851   : > { %v2141_v45 = vmax.f32 %v2136_v42, 0.0  ;;  %v7125_v46 = vpop.f32.mrb[23].mxu1 }
 0x853   : > { %v2142_v47 = vpack.c.bf16 %v2141_v45, %v2141_v45 }
 0x855   : > { %7135 = vmatmul.mubr.msk.bf16.vlgmr.msra.gmra.mrb[24].mxu0 %vm2173_vm9, %v2142_v47 }
 0x856   : > { %7156 = vmatprep.mubr.msk.bf16.mxu0 %vm7966_vm0, %v7965_v1 }
 0x928   : > { %v2211_v49 = vpop.f32.mrb[24].mxu0 }
 0x929   : > { %v2212_v50 = vadd.f32 %v6616_v48, %v2211_v49  ;;  %v7136_v51 = vpop.f32.mrb[25].mxu0 }
 0x92a   : > { %v2214_v52 = vpop.f32.mrb[26].mxu0 }
 0x92b   : > { %v7137_v53 = vpop.f32.mrb[27].mxu0  ;;  %v2219_v54 = vadd.f32 %v2212_v50, %v2064_v36 }
 0x92d   : > { %v2220_v55 = vsel %vm1395_vm1, %v2219_v54, 0.0 }
 0x92e   : > { %2221 = vadd.xlane.f32.xlu0 %v2220_v55 }
 0x9bb   : > { %v2222_v56 = vpop.xlane.xlu0 %2221 }
 0x9bc   : > { %v2223_v57 = vmul.f32 0.03125, %v2222_v56 }
 0x9be   : > { %v2224_v58 = vsub.f32 %v2219_v54, %v2223_v57 }
 0x9c0   : > { %v2225_v59 = vmul.f32 %v2224_v58, %v2224_v58 }
 0x9c2   : > { %v2226_v60 = vsel %vm1395_vm1, %v2225_v59, 0.0 }
 0x9c3   : > { %2227 = vadd.xlane.f32.xlu1 %v2226_v60 }
 0xa50   : > { %v2228_v63 = vpop.xlane.xlu1 %2227 }
 0xa51   : > { %v2229_v0 = vmul.f32 0.03125, %v2228_v63 }
 0xa53   : > { %7742 = vrsqrt.f32 %v2229_v0  ;;  %vm2232_vm10 = vcmp.eq.f32.partialorder %v2229_v0, inf  ;;  %v2235_v4 = vand.u32 2147483648, %v2229_v0  ;;  %vm2234_vm11 = vcmp.eq.f32.partialorder %v2229_v0, 0.0 }
 0xa5d   : > { %v7743_v2 = vpop.eup %7742 }
 0xa5e   : > { %v2231_v3 = vmul.f32 %v7743_v2, %v2229_v0 }
 0xa60   : > { %v2233_v6 = vsel %vm2232_vm10, %v2229_v0, %v2231_v3 }
 0xa61   : > { %v2236_v7 = vsel %vm2234_vm11, %v2235_v4, %v2233_v6 }
 0xa62   : > { %v2237_v8 = vadd.f32 1e-06, %v2236_v7 }
 0xa64   : > { %7744 = vrsqrt.f32 %v2237_v8 }
 0xa6e   : > { %v7745_v9 = vpop.eup %7744 }
 0xa6f   : > { %v2239_v11 = vmul.f32 %v7745_v9, %v2224_v58 }
 0xa71   : > { %v2246_v13 = vmul.f32 %v6622_v10, %v2239_v11 }
 0xa73   : > { %v8411_v14 = vadd.f32 %v6623_v12, %v2246_v13 }
 0xa75   : > { %v2275_v16 = vpack.c.bf16 %v8411_v14, %v8411_v14 }
 0xa77   : > { %7143 = vmatmul.mubr.msk.bf16.vlgmr.msra.gmra.mrb[24].mxu1 %vm1395_vm1, %v2275_v16 }
 0xa78   : > { %7147 = vmatpush3.bf16.msra.mxu1 %v7674_v15  ;;  %7150 = vmatprep.mubr.msk.bf16.mxu1 %vm7966_vm0, %v7965_v1 }
 0xa79   : > { %7148 = vmatprep.subr.bf16.mxu1 %v7965_v1 }
 0xa7c   : > { %7149 = vmatpush3.bf16.msra.mxu1 %v7675_v18 }
 0xa7d   : > { %7160 = vmatprep.subr.bf16.mxu1 %v7965_v1 }
 0xa7f   : > { %7151 = vmatmul.mubr.msk.bf16.vlgmr.msra.gmra.mrb[28].mxu1 %vm1395_vm1, %v2275_v16 }
 0xa80   : > { %7162 = vmatprep.mubr.msk.bf16.mxu1 %vm7966_vm0, %v7965_v1 }
 0xb4a   : > { %v2331_v20 = vpop.f32.mrb[24].mxu1 }
 0xb4b   : > { %v2332_v21 = vadd.f32 %v6639_v19, %v2331_v20  ;;  %v7144_v5 = vpop.f32.mrb[25].mxu1 }
 0xb4c   : > { %v2334_v22 = vpop.f32.mrb[26].mxu1 }
 0xb4d   : > { %v2395_v23 = vpack.c.bf16 %v2332_v21, %v2332_v21  ;;  %v7145_v24 = vpop.f32.mrb[27].mxu1 }
 0xb4f   : > { %2507 = vrot.lane.b32.xlu1 %v2395_v23, %s9263_s7 }
 0xb52   : > { %v2389_v26 = vpop.f32.mrb[28].mxu1 }
 0xb53   : > { %v2390_v27 = vadd.f32 %v6643_v25, %v2389_v26  ;;  %v7152_v28 = vpop.f32.mrb[29].mxu1 }
 0xb54   : > { %v2392_v29 = vpop.f32.mrb[30].mxu1 }
 0xb55   : > { %v8428_v30 = vpack.c.bf16 %v2390_v27, %v2390_v27  ;;  %v7153_v32 = vpop.f32.mrb[31].mxu1 }
 0xb57   : > { %2621 = vrot.lane.b32.xlu1 %v8428_v30, %s9264_s3  ;;  %2509 = vrot.lane.b32.xlu0 %v8428_v30, %s9263_s7  ;;  %v2401_v33 = vsel %vm1499_vm2, %v8428_v30, 0 }
 0xb58   : > { %7155 = vmatpush3.bf16.xpose.msra.mxu0 %v2401_v33 }
 0xb59   : > { %7166 = vmatprep.subr.bf16.mxu0 %v7965_v1 }
 0xb5b   : > { %2733 = vrot.lane.b32.xlu1 %v8428_v30, %s9265_s5  ;;  %2619 = vrot.lane.b32.xlu0 %v2395_v23, %s9264_s3 }
 0xb5f   : > { %2731 = vrot.lane.b32.xlu0 %v2395_v23, %s9265_s5  ;;  %7157 = vmatmul.mubr.msk.bf16.vlgmr.msra.gmra.mrb[28].mxu0 %vm1499_vm2, %v2395_v23 }
 0xb60   : > { %7168 = vmatprep.mubr.msk.bf16.mxu0 %vm7966_vm0, %v7965_v1 }
 0xbc1   : > { %v2508_v35 = vpop.permute.xlu1 %2507 }
 0xbc9   : > { %v2510_v17 = vpop.permute.xlu0 %2509  ;;  %v2622_v36 = vpop.permute.xlu1 %2621 }
 0xbca   : > { %v2515_v34 = vsel %vm1499_vm2, %v2510_v17, 0  ;;  %v2627_v37 = vsel %vm1499_vm2, %v2622_v36, 0 }
 0xbcb   : > { %7167 = vmatpush3.bf16.xpose.msra.mxu0 %v2515_v34 }
 0xbcc   : > { %7178 = vmatprep.subr.bf16.mxu0 %v7965_v1 }
 0xbcd   : > { %v2734_v38 = vpop.permute.xlu1 %2733  ;;  %v2620_v39 = vpop.permute.xlu0 %2619 }
 0xbce   : > { %v2739_v40 = vsel %vm1499_vm2, %v2734_v38, 0 }
 0xbd1   : > { %v2732_v41 = vpop.permute.xlu0 %2731 }
 0xbd2   : > { %7169 = vmatmul.mubr.msk.bf16.vlgmr.msra.gmra.mrb[32].mxu0 %vm1499_vm2, %v2508_v35 }
 0xbd3   : > { %7179 = vmatpush3.bf16.xpose.msra.mxu0 %v2627_v37  ;;  %7180 = vmatprep.mubr.msk.bf16.mxu0 %vm7966_vm0, %v7965_v1 }
 0xbd4   : > { %7190 = vmatprep.subr.bf16.mxu0 %v7965_v1 }
 0xbda   : > { %7181 = vmatmul.mubr.msk.bf16.vlgmr.msra.gmra.mrb[36].mxu0 %vm1499_vm2, %v2620_v39 }
 0xbdb   : > { %7191 = vmatpush3.bf16.xpose.msra.mxu0 %v2739_v40  ;;  %7192 = vmatprep.mubr.msk.bf16.mxu0 %vm7966_vm0, %v7965_v1 }
 0xbdc   : > { %7202 = vmatprep.subr.bf16.mxu0 %v7965_v1 }
 0xbe2   : > { %7193 = vmatmul.mubr.msk.bf16.vlgmr.msra.gmra.mrb[40].mxu0 %vm1499_vm2, %v2732_v41 }
 0xbe3   : > { %7206 = vmatprep.mubr.msk.bf16.mxu0 %vm7966_vm0, %v7965_v1 }
 0xc32   : > { %v2437_v42 = vpop.f32.mrb[28].mxu0 }
 0xc33   : > { %v2443_v43 = vmul.f32 0.35355338, %v2437_v42  ;;  %v7158_v44 = vpop.f32.mrb[29].mxu0 }
 0xc34   : > { %v2440_v45 = vpop.f32.mrb[30].mxu0 }
 0xc35   : > { %v7159_v46 = vpop.f32.mrb[31].mxu0  ;;  %v2444_v47 = vsel %vm1547_vm3, -1000000.0, %v2443_v43 }
 0xc36   : > { %v2445_v48 = vsel %vm1499_vm2, %v2444_v47, -inf }
 0xc37   : > { %2446 = vmax.xlane.f32.xlu1 %v2445_v48 }
 0xca5   : > { %v2551_v49 = vpop.f32.mrb[32].mxu0 }
 0xca6   : > { %v2557_v50 = vmul.f32 0.35355338, %v2551_v49  ;;  %v7170_v51 = vpop.f32.mrb[33].mxu0 }
 0xca7   : > { %v2554_v52 = vpop.f32.mrb[34].mxu0 }
 0xca8   : > { %v7171_v53 = vpop.f32.mrb[35].mxu0  ;;  %v2558_v54 = vsel %vm1547_vm3, -1000000.0, %v2557_v50 }
 0xca9   : > { %v2559_v55 = vsel %vm1499_vm2, %v2558_v54, -inf }
 0xcaa   : > { %2560 = vmax.xlane.f32.xlu0 %v2559_v55 }
 0xcad   : > { %v2663_v56 = vpop.f32.mrb[36].mxu0 }
 0xcae   : > { %v2669_v57 = vmul.f32 0.35355338, %v2663_v56  ;;  %v7182_v58 = vpop.f32.mrb[37].mxu0 }
 0xcaf   : > { %v2666_v59 = vpop.f32.mrb[38].mxu0 }
 0xcb0   : > { %v7183_v60 = vpop.f32.mrb[39].mxu0  ;;  %v2670_v61 = vsel %vm1547_vm3, -1000000.0, %v2669_v57 }
 0xcb1   : > { %v2671_v62 = vsel %vm1499_vm2, %v2670_v61, -inf  ;;  %v7676_v60 = vld [vmem:[%s9243_s14 + $0x10] sm:$0xff]  }
 0xcb2   : > { %2672 = vmax.xlane.f32.xlu0 %v2671_v62  ;;  %7203 = vmatpush3.bf16.msra.mxu0 %v7676_v60 }
 0xcb3   : > { %7204 = vmatprep.subr.bf16.mxu0 %v7965_v1 }
 0xcb5   : > { %v2775_v63 = vpop.f32.mrb[40].mxu0 }
 0xcb6   : > { %v2781_v0 = vmul.f32 0.35355338, %v2775_v63  ;;  %v7194_v2 = vpop.f32.mrb[41].mxu0 }
 0xcb7   : > { %v2778_v3 = vpop.f32.mrb[42].mxu0 }
 0xcb8   : > { %v7195_v4 = vpop.f32.mrb[43].mxu0  ;;  %v2782_v6 = vsel %vm1547_vm3, -1000000.0, %v2781_v0 }
 0xcb9   : > { %v2783_v7 = vsel %vm1499_vm2, %v2782_v6, -inf }
 0xcba   : > { %2784 = vmax.xlane.f32.xlu1 %v2783_v7 }
 0xcc4   : > { %v2447_v8 = vpop.xlane.xlu1 %2446 }
 0xcc5   : > { %v2448_v9 = vsub.f32 %v2444_v47, %v2447_v8 }
 0xcc7   : > { %v2449_v10 = vmul.f32 1.442695, %v2448_v9 }
 0xcc9   : > { %7746 = vpow2.f32 %v2449_v10 }
 0xcd3   : > { %v7747_v11 = vpop.eup %7746 }
 0xcd4   : > { %v2451_v12 = vsel %vm1499_vm2, %v7747_v11, 0.0 }
 0xcd5   : > { %2452 = vadd.xlane.f32.xlu0 %v2451_v12 }
 0xd37   : > { %v2561_v13 = vpop.xlane.xlu0 %2560 }
 0xd38   : > { %v2562_v15 = vsub.f32 %v2558_v54, %v2561_v13 }
 0xd3a   : > { %v2563_v16 = vmul.f32 1.442695, %v2562_v15 }
 0xd3c   : > { %7748 = vpow2.f32 %v2563_v16  ;;  %v6655_v16 = vld [vmem:[%s9241_s19 + $0x1] ss:$0 sm:$0xff]  ;;  %s9275_s19 = sld [smem:[#allocation26_spill]] }
 0xd3f   : > { %v2673_v18 = vpop.xlane.xlu0 %2672 }
 0xd40   : > { %v2674_v19 = vsub.f32 %v2670_v61, %v2673_v18  ;;  %v7677_v61 = vld [vmem:[%s9243_s14 + $0x18] sm:$0xff]   ;;  %s9273_s14 = sld [smem:[#allocation24_spill]] }
 0xd41   : > { %7205 = vmatpush3.bf16.msra.mxu0 %v7677_v61 }
 0xd42   : > { %v2675_v20 = vmul.f32 1.442695, %v2674_v19  ;;  %7218 = vmatprep.subr.bf16.mxu0 %v7965_v1 }
 0xd44   : > { %7750 = vpow2.f32 %v2675_v20 }
 0xd46   : > { %v7749_v31 = vpop.eup %7748 }
 0xd47   : > { %v2565_v21 = vsel %vm1499_vm2, %v7749_v31, 0.0  ;;  %v2785_v23 = vpop.xlane.xlu1 %2784 }
 0xd48   : > { %2566 = vadd.xlane.f32.xlu1 %v2565_v21  ;;  %v2786_v24 = vsub.f32 %v2782_v6, %v2785_v23 }
 0xd4a   : > { %v2787_v25 = vmul.f32 1.442695, %v2786_v24 }
 0xd4c   : > { %7752 = vpow2.f32 %v2787_v25 }
 0xd4e   : > { %v7751_v5 = vpop.eup %7750 }
 0xd4f   : > { %v2677_v22 = vsel %vm1499_vm2, %v7751_v5, 0.0 }
 0xd50   : > { %2678 = vadd.xlane.f32.xlu0 %v2677_v22 }
 0xd56   : > { %v7753_v26 = vpop.eup %7752 }
 0xd57   : > { %v2789_v27 = vsel %vm1499_vm2, %v7753_v26, 0.0 }
 0xd59   : > { %2571 = vrot.lane.b32.xlu1 %v8428_v30, %s9266_s8 }
 0xd62   : > { %v2453_v28 = vpop.xlane.xlu0 %2452 }
 0xd63   : > { %7754 = vrcp.f32 %v2453_v28  ;;  %v7678_v28 = vld [vmem:[%s9242_s6 + $0x10] sm:$0xff]  }
 0xd66   : > { %2458 = vrot.lane.b32.xlu0 %v8428_v30, %s9267_s13 }
 0xd6a   : > { %2795 = vrot.lane.b32.xlu0 %v8428_v30, %s9268_s25 }
 0xd6d   : > { %v7755_v32 = vpop.eup %7754 }
 0xd6e   : > { %v2455_v17 = vmul.f32 %v7755_v32, %v7747_v11  ;;  %v7685_v32 = vld [vmem:[%s9239_s20 + $0x28] sm:$0xff]  }
 0xd70   : > { %v2456_v37 = vpack.c.bf16 %v2455_v17, %v2455_v17 }
 0xd7d   : > { %2790 = vadd.xlane.f32.xlu1 %v2789_v27 }
 0xd8e   : > { %2683 = vrot.lane.b32.xlu1 %v8428_v30, %s9269_s29 }
 0xdd5   : > { %v2567_v29 = vpop.xlane.xlu1 %2566 }
 0xdd6   : > { %7756 = vrcp.f32 %v2567_v29  ;;  %v7679_v29 = vld [vmem:[%s9242_s6 + $0x18] sm:$0xff]   ;;  %s9274_s6 = sld [smem:[#allocation6_spill]] }
 0xdd9   : > { %v2572_v36 = vpop.permute.xlu1 %2571 }
 0xdda   : > { %v2577_v39 = vsel %vm1567_vm4, %v2572_v36, 0 }
 0xddc   : > { %s1345_s16 = scalar_lea.vmem %s9274_s6, %s8265_s1  ;;  %s9276_s6 = sld [smem:[#allocation25_spill]] }
 0xddd   : > { %v2679_v33 = vpop.xlane.xlu0 %2678 }
 0xdde   : > { %7758 = vrcp.f32 %v2679_v33 }
 0xde0   : > { %v7757_v38 = vpop.eup %7756 }
 0xde1   : > { %v2459_v34 = vpop.permute.xlu0 %2458  ;;  %v2569_v30 = vmul.f32 %v7757_v38, %v7749_v31 }
 0xde2   : > { %v2464_v35 = vsel %vm1567_vm4, %v2459_v34, 0 }
 0xde3   : > { %7161 = vmatpush3.bf16.msra.mxu1 %v2464_v35  ;;  %v2570_v40 = vpack.c.bf16 %v2569_v30, %v2569_v30 }
 0xde4   : > { %7172 = vmatprep.subr.bf16.mxu1 %v7965_v1 }
 0xde5   : > { %v2796_v46 = vpop.permute.xlu0 %2795 }
 0xde6   : > { %7163 = vmatmul.mubr.msk.bf16.vlgmr.msra.gmra.mrb[32].mxu1 %vm1499_vm2, %v2456_v37  ;;  %v2801_v48 = vsel %vm1567_vm4, %v2796_v46, 0 }
 0xde7   : > { %7173 = vmatpush3.bf16.msra.mxu1 %v2577_v39  ;;  %7174 = vmatprep.mubr.msk.bf16.mxu1 %vm7966_vm0, %v7965_v1 }
 0xde8   : > { %7184 = vmatprep.subr.bf16.mxu1 %v7965_v1  ;;  %v7759_v41 = vpop.eup %7758 }
 0xde9   : > { %v2681_v43 = vmul.f32 %v7759_v41, %v7751_v5 }
 0xdeb   : > { %v2682_v47 = vpack.c.bf16 %v2681_v43, %v2681_v43 }
 0xdee   : > { %7175 = vmatmul.mubr.msk.bf16.vlgmr.msra.gmra.mrb[36].mxu1 %vm1499_vm2, %v2570_v40  ;;  %v6661_v40 = vld [vmem:[%s9238_s24 + $0x1] ss:$0 sm:$0xff]  ;;  %s9281_s24 = sld [smem:[#allocation34_spill]] }
 0xdef   : > { %7186 = vmatprep.mubr.msk.bf16.mxu1 %vm7966_vm0, %v7965_v1 }
 0xe0a   : > { %v2791_v42 = vpop.xlane.xlu1 %2790 }
 0xe0b   : > { %7760 = vrcp.f32 %v2791_v42  ;;  %v6662_v42 = vld [vmem:[%s9236_s30 + $0x1] ss:$0 sm:$0xff]  ;;  %s9283_s30 = sld [smem:[#allocation30_spill]] }
 0xe0e   : > { %v2684_v44 = vpop.permute.xlu1 %2683 }
 0xe0f   : > { %v2689_v45 = vsel %vm1567_vm4, %v2684_v44, 0 }
 0xe10   : > { %7185 = vmatpush3.bf16.msra.mxu1 %v2689_v45  ;;  %v7680_v45 = vld [vmem:[%s9273_s14] sm:$0xff]  }
 0xe11   : > { %7196 = vmatprep.subr.bf16.mxu1 %v7965_v1 }
 0xe13   : > { %7187 = vmatmul.mubr.msk.bf16.vlgmr.msra.gmra.mrb[40].mxu1 %vm1499_vm2, %v2682_v47  ;;  %v7681_v47 = vld [vmem:[%s9273_s14 + $0x8] sm:$0xff]  }
 0xe14   : > { %7197 = vmatpush3.bf16.msra.mxu1 %v2801_v48  ;;  %7198 = vmatprep.mubr.msk.bf16.mxu1 %vm7966_vm0, %v7965_v1  ;;  %v8541_v48 = vld [vmem:[%s1345_s16] sm:$0xff]  ;;  %s9277_s16 = sld [smem:[#allocation27_spill]] }
 0xe15   : > { %v7761_v49 = vpop.eup %7760  ;;  %7210 = vmatprep.subr.bf16.mxu1 %v7965_v1 }
 0xe16   : > { %v2793_v50 = vmul.f32 %v7761_v49, %v7753_v26  ;;  %v3171_v49 = vpack.c.bf16 %v8541_v48, %v8541_v48 }
 0xe18   : > { %v2794_v51 = vpack.c.bf16 %v2793_v50, %v2793_v50  ;;  %v7682_v50 = vld [vmem:[%s9275_s19] sm:$0xff]  }
 0xe1b   : > { %7199 = vmatmul.mubr.msk.bf16.vlgmr.msra.gmra.mrb[44].mxu1 %vm1499_vm2, %v2794_v51  ;;  %v7683_v51 = vld [vmem:[%s9275_s19 + $0x8] sm:$0xff]  }
 0xe1c   : > { %7214 = vmatprep.mubr.msk.bf16.mxu1 %vm7966_vm0, %v7965_v1  ;;  %7211 = vmatpush3.bf16.msra.mxu1 %v7678_v28 }
 0xe1d   : > { %7212 = vmatprep.subr.bf16.mxu1 %v7965_v1 }
 0xe20   : > { %7213 = vmatpush3.bf16.msra.mxu1 %v7679_v29 }
 0xe21   : > { %7230 = vmatprep.subr.bf16.mxu1 %v7965_v1 }
 0xeb9   : > { %v2500_v52 = vpop.f32.mrb[32].mxu1 }
 0xeba   : > { %v7164_v53 = vpop.f32.mrb[33].mxu1 }
 0xebb   : > { %v2503_v54 = vpop.f32.mrb[34].mxu1  ;;  %v7687_v53 = vld [vmem:[%s9239_s20 + $0x38] sm:$0xff]  }
 0xebc   : > { %v7165_v55 = vpop.f32.mrb[35].mxu1  ;;  %v6677_v54 = vld [vmem:[%s9240_s12 + $0x1] ss:$0 sm:$0xff]  ;;  %s9278_s12 = sld [smem:[#allocation8_spill]] }
 0xec1   : > { %v2613_v56 = vpop.f32.mrb[36].mxu1 }
 0xec2   : > { %2844 = vrot.lane.b32.xlu1 %v2613_v56, %s9270_s11  ;;  %v7176_v57 = vpop.f32.mrb[37].mxu1 }
 0xec3   : > { %v2616_v58 = vpop.f32.mrb[38].mxu1 }
 0xec4   : > { %v7177_v59 = vpop.f32.mrb[39].mxu1 }
 0xee6   : > { %v2725_v62 = vpop.f32.mrb[40].mxu1 }
 0xee7   : > { %2848 = vrot.lane.b32.xlu0 %v2725_v62, %s9271_s26  ;;  %v7188_v63 = vpop.f32.mrb[41].mxu1  ;;  %v6691_v62 = vld [vmem:[%s9276_s6] ss:$0 sm:$0xff] }
 0xee8   : > { %v2728_v0 = vpop.f32.mrb[42].mxu1 }
 0xee9   : > { %v7189_v2 = vpop.f32.mrb[43].mxu1 }
 0xeee   : > { %v2837_v3 = vpop.f32.mrb[44].mxu1 }
 0xeef   : > { %2852 = vrot.lane.b32.xlu1 %v2837_v3, %s9272_s2  ;;  %v7200_v4 = vpop.f32.mrb[45].mxu1 }
 0xef0   : > { %v2840_v6 = vpop.f32.mrb[46].mxu1 }
 0xef1   : > { %v7201_v7 = vpop.f32.mrb[47].mxu1 }
 0xef2   : > { %v6695_v7 = vld [vmem:[%s9277_s16] ss:$0 sm:$0xff] }
 0xf34   : > { %v2845_v8 = vpop.permute.xlu1 %2844 }
 0xf35   : > { %v2855_v10 = vsel %vm1499_vm2, %v2500_v52, %v2845_v8  ;;  %v7686_v52 = vld [vmem:[%s9239_s20 + $0x30] sm:$0xff]  }
 0xf59   : > { %v2849_v9 = vpop.permute.xlu0 %2848 }
 0xf5a   : > { %v2856_v11 = vsel %vm1961_vm5, %v2855_v10, %v2849_v9 }
 0xf61   : > { %v2853_v12 = vpop.permute.xlu1 %2852 }
 0xf62   : > { %v2857_v13 = vsel %vm1963_vm6, %v2856_v11, %v2853_v12 }
 0xf63   : > { %v2858_v15 = vpack.c.bf16 %v2857_v13, %v2857_v13 }
 0xf65   : > { %7207 = vmatmul.mubr.msk.bf16.vlgmr.msra.gmra.mrb[44].mxu0 %vm1395_vm1, %v2858_v15 }
 0xf66   : > { %7226 = vmatprep.mubr.msk.bf16.mxu0 %vm7966_vm0, %v7965_v1 }
0x1038   : > { %v2914_v18 = vpop.f32.mrb[44].mxu0 }
0x1039   : > { %v2915_v19 = vadd.f32 %v6655_v16, %v2914_v18  ;;  %v7208_v20 = vpop.f32.mrb[45].mxu0 }
0x103a   : > { %v2917_v31 = vpop.f32.mrb[46].mxu0 }
0x103b   : > { %v7209_v21 = vpop.f32.mrb[47].mxu0  ;;  %v2924_v5 = vadd.f32 %v2915_v19, %v8411_v14  ;;  %v7684_v14 = vld [vmem:[%s9239_s20 + $0x20] sm:$0xff]   ;;  %s1353_s20 = scalar_lea.vmem %s9278_s12, %s8265_s1  ;;  %s9279_s12 = sld [smem:[#allocation28_spill]] }
0x103c   : > { %7219 = vmatpush3.bf16.msra.mxu0 %v7684_v14  ;;  %v8603_v28 = vld [vmem:[%s1353_s20] sm:$0xff]  ;;  %s9280_s20 = sld [smem:[#allocation29_spill]] }
0x103d   : > { %v2925_v22 = vsel %vm1395_vm1, %v2924_v5, 0.0  ;;  %7220 = vmatprep.subr.bf16.mxu0 %v7965_v1  ;;  %vm3340_vm14 = vcmp.eq.f32.partialorder %v8603_v28, 0.0 }
0x103e   : > { %2926 = vadd.xlane.f32.xlu0 %v2925_v22 }
0x1040   : > { %7221 = vmatpush3.bf16.msra.mxu0 %v7685_v32 }
0x1041   : > { %7222 = vmatprep.subr.bf16.mxu0 %v7965_v1 }
0x1044   : > { %7223 = vmatpush3.bf16.msra.mxu0 %v7686_v52 }
0x1045   : > { %7224 = vmatprep.subr.bf16.mxu0 %v7965_v1 }
0x1048   : > { %7225 = vmatpush3.bf16.msra.mxu0 %v7687_v53 }
0x1049   : > { %7246 = vmatprep.subr.bf16.mxu0 %v7965_v1 }
0x10cb   : > { %v2927_v23 = vpop.xlane.xlu0 %2926 }
0x10cc   : > { %v2928_v24 = vmul.f32 0.03125, %v2927_v23 }
0x10ce   : > { %v2929_v25 = vsub.f32 %v2924_v5, %v2928_v24 }
0x10d0   : > { %v2930_v26 = vmul.f32 %v2929_v25, %v2929_v25 }
0x10d2   : > { %v2931_v27 = vsel %vm1395_vm1, %v2930_v26, 0.0 }
0x10d3   : > { %2932 = vadd.xlane.f32.xlu1 %v2931_v27 }
0x1160   : > { %v2933_v33 = vpop.xlane.xlu1 %2932 }
0x1161   : > { %v2934_v17 = vmul.f32 0.03125, %v2933_v33 }
0x1163   : > { %7762 = vrsqrt.f32 %v2934_v17  ;;  %vm2937_vm12 = vcmp.eq.f32.partialorder %v2934_v17, inf  ;;  %v2940_v36 = vand.u32 2147483648, %v2934_v17  ;;  %vm2939_vm13 = vcmp.eq.f32.partialorder %v2934_v17, 0.0 }
0x116d   : > { %v7763_v34 = vpop.eup %7762 }
0x116e   : > { %v2936_v35 = vmul.f32 %v7763_v34, %v2934_v17 }
0x1170   : > { %v2938_v37 = vsel %vm2937_vm12, %v2934_v17, %v2936_v35 }
0x1171   : > { %v2941_v38 = vsel %vm2939_vm13, %v2940_v36, %v2938_v37 }
0x1172   : > { %v2942_v39 = vadd.f32 1e-06, %v2941_v38 }
0x1174   : > { %7764 = vrsqrt.f32 %v2942_v39 }
0x117e   : > { %v7765_v30 = vpop.eup %7764 }
0x117f   : > { %v2944_v41 = vmul.f32 %v7765_v30, %v2929_v25 }
0x1181   : > { %v2951_v43 = vmul.f32 %v6661_v40, %v2944_v41 }
0x1183   : > { %v8530_v44 = vadd.f32 %v6662_v42, %v2951_v43 }
0x1185   : > { %v2977_v46 = vpack.c.bf16 %v8530_v44, %v8530_v44 }
0x1187   : > { %7215 = vmatmul.mubr.msk.bf16.vlgmr.msra.gmra.mrb[48].mxu1 %vm1395_vm1, %v2977_v46 }
0x1188   : > { %7231 = vmatpush3.bf16.msra.mxu1 %v7680_v45  ;;  %7234 = vmatprep.mubr.msk.bf16.mxu1 %vm7966_vm0, %v7965_v1 }
0x1189   : > { %7232 = vmatprep.subr.bf16.mxu1 %v7965_v1 }
0x118c   : > { %7233 = vmatpush3.bf16.msra.mxu1 %v7681_v47 }
0x118d   : > { %7238 = vmatprep.subr.bf16.mxu1 %v7965_v1 }
0x118f   : > { %7235 = vmatmul.mubr.msk.bf16.vlgmr.msra.gmra.mrb[52].mxu1 %vm1395_vm1, %v3171_v49 }
0x1190   : > { %7239 = vmatpush3.bf16.msra.mxu1 %v7682_v50  ;;  %7242 = vmatprep.mubr.msk.bf16.mxu1 %vm7966_vm0, %v7965_v1 }
0x1191   : > { %7240 = vmatprep.subr.bf16.mxu1 %v7965_v1 }
0x1194   : > { %7241 = vmatpush3.bf16.msra.mxu1 %v7683_v51 }
0x1195   : > { %7252 = vmatprep.subr.bf16.mxu1 %v7965_v1 }
0x1197   : > { %7243 = vmatmul.mubr.msk.bf16.vlgmr.msra.gmra.mrb[56].mxu1 %vm1395_vm1, %v3171_v49 }
0x1198   : > { %7254 = vmatprep.mubr.msk.bf16.mxu1 %vm7966_vm0, %v7965_v1 }
0x125a   : > { %v3033_v55 = vpop.f32.mrb[48].mxu1 }
0x125b   : > { %v3034_v56 = vadd.f32 %v6677_v54, %v3033_v55  ;;  %v7216_v57 = vpop.f32.mrb[49].mxu1 }
0x125c   : > { %v3036_v58 = vpop.f32.mrb[50].mxu1 }
0x125d   : > { %v3039_v59 = vmax.f32 %v3034_v56, 0.0  ;;  %v7217_v60 = vpop.f32.mrb[51].mxu1 }
0x125f   : > { %v3040_v61 = vpack.c.bf16 %v3039_v59, %v3039_v59 }
0x1261   : > { %7227 = vmatmul.mubr.msk.bf16.vlgmr.msra.gmra.mrb[48].mxu0 %vm2173_vm9, %v3040_v61 }
0x1262   : > { %v3227_v63 = vpop.f32.mrb[52].mxu1  ;;  %7248 = vmatprep.mubr.msk.bf16.mxu0 %vm7966_vm0, %v7965_v1 }
0x1263   : > { %v3228_v0 = vadd.f32 %v6691_v62, %v3227_v63  ;;  %v7236_v2 = vpop.f32.mrb[53].mxu1 }
0x1264   : > { %v3230_v3 = vpop.f32.mrb[54].mxu1 }
0x1265   : > { %v3291_v4 = vpack.c.bf16 %v3228_v0, %v3228_v0  ;;  %v7237_v6 = vpop.f32.mrb[55].mxu1 }
0x1267   : > { %3404 = vrot.lane.b32.xlu1 %v3291_v4, %s9263_s7 }
0x126a   : > { %v3285_v8 = vpop.f32.mrb[56].mxu1 }
0x126b   : > { %v3286_v9 = vadd.f32 %v6695_v7, %v3285_v8  ;;  %3516 = vrot.lane.b32.xlu1 %v3291_v4, %s9264_s3  ;;  %v7244_v10 = vpop.f32.mrb[57].mxu1 }
0x126c   : > { %v3288_v11 = vpop.f32.mrb[58].mxu1 }
0x126d   : > { %v8569_v12 = vpack.c.bf16 %v3286_v9, %v3286_v9  ;;  %v7245_v13 = vpop.f32.mrb[59].mxu1 }
0x126f   : > { %3628 = vrot.lane.b32.xlu1 %v3291_v4, %s9265_s5  ;;  %3406 = vrot.lane.b32.xlu0 %v8569_v12, %s9263_s7  ;;  %v3297_v15 = vsel %vm1499_vm2, %v8569_v12, 0 }
0x1270   : > { %7247 = vmatpush3.bf16.xpose.msra.mxu0 %v3297_v15 }
0x1271   : > { %7258 = vmatprep.subr.bf16.mxu0 %v7965_v1 }
0x1273   : > { %3518 = vrot.lane.b32.xlu0 %v8569_v12, %s9264_s3 }
0x1277   : > { %3630 = vrot.lane.b32.xlu0 %v8569_v12, %s9265_s5  ;;  %7249 = vmatmul.mubr.msk.bf16.vlgmr.msra.gmra.mrb[52].mxu0 %vm1499_vm2, %v3291_v4 }
0x1278   : > { %7260 = vmatprep.mubr.msk.bf16.mxu0 %vm7966_vm0, %v7965_v1 }
0x12d9   : > { %v3405_v20 = vpop.permute.xlu1 %3404 }
0x12dd   : > { %v3517_v5 = vpop.permute.xlu1 %3516 }
0x12e1   : > { %v3407_v16 = vpop.permute.xlu0 %3406  ;;  %v3629_v23 = vpop.permute.xlu1 %3628 }
0x12e2   : > { %v3412_v18 = vsel %vm1499_vm2, %v3407_v16, 0 }
0x12e3   : > { %7259 = vmatpush3.bf16.xpose.msra.mxu0 %v3412_v18 }
0x12e4   : > { %7270 = vmatprep.subr.bf16.mxu0 %v7965_v1 }
0x12e5   : > { %v3519_v19 = vpop.permute.xlu0 %3518 }
0x12e6   : > { %v3524_v31 = vsel %vm1499_vm2, %v3519_v19, 0 }
0x12e9   : > { %v3631_v21 = vpop.permute.xlu0 %3630 }
0x12ea   : > { %7261 = vmatmul.mubr.msk.bf16.vlgmr.msra.gmra.mrb[56].mxu0 %vm1499_vm2, %v3405_v20  ;;  %v3636_v22 = vsel %vm1499_vm2, %v3631_v21, 0 }
0x12eb   : > { %7271 = vmatpush3.bf16.xpose.msra.mxu0 %v3524_v31  ;;  %7272 = vmatprep.mubr.msk.bf16.mxu0 %vm7966_vm0, %v7965_v1 }
0x12ec   : > { %7282 = vmatprep.subr.bf16.mxu0 %v7965_v1 }
0x12f2   : > { %7273 = vmatmul.mubr.msk.bf16.vlgmr.msra.gmra.mrb[60].mxu0 %vm1499_vm2, %v3517_v5 }
0x12f3   : > { %7283 = vmatpush3.bf16.xpose.msra.mxu0 %v3636_v22  ;;  %7284 = vmatprep.mubr.msk.bf16.mxu0 %vm7966_vm0, %v7965_v1 }
0x12f4   : > { %7294 = vmatprep.subr.bf16.mxu0 %v7965_v1 }
0x12fa   : > { %7285 = vmatmul.mubr.msk.bf16.vlgmr.msra.gmra.mrb[64].mxu0 %vm1499_vm2, %v3629_v23 }
0x12fb   : > { %7298 = vmatprep.mubr.msk.bf16.mxu0 %vm7966_vm0, %v7965_v1 }
0x1334   : > { %v8599_v24 = vpop.f32.mrb[48].mxu0 }
0x1335   : > { %v7228_v25 = vpop.f32.mrb[49].mxu0 }
0x1336   : > { %v3111_v26 = vpop.f32.mrb[50].mxu0 }
0x1337   : > { %v7229_v27 = vpop.f32.mrb[51].mxu0 }
0x134a   : > { %v3333_v29 = vpop.f32.mrb[52].mxu0 }
0x134b   : > { %v3339_v14 = vmul.f32 0.35355338, %v3333_v29  ;;  %v7250_v32 = vpop.f32.mrb[53].mxu0 }
0x134c   : > { %v3336_v33 = vpop.f32.mrb[54].mxu0 }
0x134d   : > { %v7251_v17 = vpop.f32.mrb[55].mxu0  ;;  %v3341_v34 = vsel %vm3340_vm14, -1000000.0, %v3339_v14 }
0x134e   : > { %v3342_v35 = vsel %vm1499_vm2, %v3341_v34, -inf }
0x134f   : > { %3343 = vmax.xlane.f32.xlu0 %v3342_v35 }
0x13bd   : > { %v3448_v36 = vpop.f32.mrb[56].mxu0 }
0x13be   : > { %v3454_v37 = vmul.f32 0.35355338, %v3448_v36  ;;  %v7262_v38 = vpop.f32.mrb[57].mxu0 }
0x13bf   : > { %v3451_v39 = vpop.f32.mrb[58].mxu0 }
0x13c0   : > { %v7263_v30 = vpop.f32.mrb[59].mxu0  ;;  %v3455_v40 = vsel %vm3340_vm14, -1000000.0, %v3454_v37 }
0x13c1   : > { %v3456_v41 = vsel %vm1499_vm2, %v3455_v40, -inf }
0x13c2   : > { %3457 = vmax.xlane.f32.xlu1 %v3456_v41 }
0x13c5   : > { %v3560_v42 = vpop.f32.mrb[60].mxu0 }
0x13c6   : > { %v3566_v43 = vmul.f32 0.35355338, %v3560_v42  ;;  %v7274_v45 = vpop.f32.mrb[61].mxu0 }
0x13c7   : > { %v3563_v46 = vpop.f32.mrb[62].mxu0 }
0x13c8   : > { %v7275_v47 = vpop.f32.mrb[63].mxu0  ;;  %v3567_v49 = vsel %vm3340_vm14, -1000000.0, %v3566_v43  ;;  %v7688_v46 = vld [vmem:[%s9279_s12] sm:$0xff]  }
0x13c9   : > { %v3568_v50 = vsel %vm1499_vm2, %v3567_v49, -inf  ;;  %7295 = vmatpush3.bf16.msra.mxu0 %v7688_v46 }
0x13ca   : > { %3569 = vmax.xlane.f32.xlu0 %v3568_v50  ;;  %7296 = vmatprep.subr.bf16.mxu0 %v7965_v1 }
0x13cd   : > { %v3672_v51 = vpop.f32.mrb[64].mxu0 }
0x13ce   : > { %v3678_v52 = vmul.f32 0.35355338, %v3672_v51  ;;  %v7286_v53 = vpop.f32.mrb[65].mxu0 }
0x13cf   : > { %v3675_v54 = vpop.f32.mrb[66].mxu0 }
0x13d0   : > { %v7287_v55 = vpop.f32.mrb[67].mxu0  ;;  %v3679_v56 = vsel %vm3340_vm14, -1000000.0, %v3678_v52  ;;  %v7689_v52 = vld [vmem:[%s9279_s12 + $0x8] sm:$0xff]  }
0x13d1   : > { %v3680_v57 = vsel %vm1499_vm2, %v3679_v56, -inf  ;;  %7297 = vmatpush3.bf16.msra.mxu0 %v7689_v52 }
0x13d2   : > { %3681 = vmax.xlane.f32.xlu0 %v3680_v57  ;;  %7310 = vmatprep.subr.bf16.mxu0 %v7965_v1 }
0x13dc   : > { %v3344_v58 = vpop.xlane.xlu0 %3343 }
0x13dd   : > { %v3345_v59 = vsub.f32 %v3341_v34, %v3344_v58 }
0x13df   : > { %v3346_v60 = vmul.f32 1.442695, %v3345_v59 }
0x13e1   : > { %7766 = vpow2.f32 %v3346_v60 }
0x13eb   : > { %v7767_v61 = vpop.eup %7766 }
0x13ec   : > { %v3348_v62 = vsel %vm1499_vm2, %v7767_v61, 0.0 }
0x13ed   : > { %3349 = vadd.xlane.f32.xlu1 %v3348_v62 }
0x13fe   : > { %3355 = vrot.lane.b32.xlu1 %v8569_v12, %s9267_s13 }
0x144f   : > { %v3458_v63 = vpop.xlane.xlu1 %3457 }
0x1450   : > { %v3459_v0 = vsub.f32 %v3455_v40, %v3458_v63 }
0x1452   : > { %v3460_v2 = vmul.f32 1.442695, %v3459_v0 }
0x1454   : > { %7768 = vpow2.f32 %v3460_v2 }
0x1457   : > { %v3570_v3 = vpop.xlane.xlu0 %3569 }
0x1458   : > { %v3571_v4 = vsub.f32 %v3567_v49, %v3570_v3 }
0x145a   : > { %v3572_v6 = vmul.f32 1.442695, %v3571_v4 }
0x145c   : > { %7770 = vpow2.f32 %v3572_v6 }
0x145e   : > { %v7769_v7 = vpop.eup %7768 }
0x145f   : > { %v3682_v8 = vpop.xlane.xlu0 %3681  ;;  %v3462_v9 = vsel %vm1499_vm2, %v7769_v7, 0.0 }
0x1460   : > { %v3683_v10 = vsub.f32 %v3679_v56, %v3682_v8  ;;  %3463 = vadd.xlane.f32.xlu0 %v3462_v9 }
0x1462   : > { %v3684_v11 = vmul.f32 1.442695, %v3683_v10  ;;  %v6707_v10 = vld [vmem:[%s9280_s20] ss:$0 sm:$0xff] }
0x1464   : > { %7772 = vpow2.f32 %v3684_v11 }
0x1466   : > { %v7771_v13 = vpop.eup %7770 }
0x1467   : > { %v3574_v15 = vsel %vm1499_vm2, %v7771_v13, 0.0 }
0x1468   : > { %3575 = vadd.xlane.f32.xlu1 %v3574_v15 }
0x146e   : > { %v7773_v16 = vpop.eup %7772 }
0x146f   : > { %v3686_v18 = vsel %vm1499_vm2, %v7773_v16, 0.0 }
0x1470   : > { %3687 = vadd.xlane.f32.xlu0 %v3686_v18 }
0x1479   : > { %3580 = vrot.lane.b32.xlu1 %v8569_v12, %s9269_s29 }
0x147a   : > { %v3350_v19 = vpop.xlane.xlu1 %3349 }
0x147b   : > { %7774 = vrcp.f32 %v3350_v19 }
0x147d   : > { %3692 = vrot.lane.b32.xlu1 %v8569_v12, %s9268_s25 }
0x147e   : > { %v3356_v20 = vpop.permute.xlu1 %3355 }
0x147f   : > { %v3361_v31 = vsel %vm1567_vm4, %v3356_v20, 0 }
0x1480   : > { %7253 = vmatpush3.bf16.msra.mxu1 %v3361_v31 }
0x1481   : > { %7264 = vmatprep.subr.bf16.mxu1 %v7965_v1 }
0x1485   : > { %v7775_v21 = vpop.eup %7774 }
0x1486   : > { %v3352_v5 = vmul.f32 %v7775_v21, %v7767_v61  ;;  %3468 = vrot.lane.b32.xlu0 %v8569_v12, %s9266_s8  ;;  %v6681_v61 = vld [vmem:[%s9237_s27 + $0x1] ss:$0 sm:$0xff]  ;;  %s9282_s27 = sld [smem:[#allocation32_spill]] }
0x1487   : > { %v3109_v62 = vadd.f32 %v6681_v61, %v8599_v24 }
0x1488   : > { %v3353_v22 = vpack.c.bf16 %v3352_v5, %v3352_v5 }
0x1489   : > { %v3118_v63 = vadd.f32 %v3109_v62, %v8530_v44 }
0x148a   : > { %7255 = vmatmul.mubr.msk.bf16.vlgmr.msra.gmra.mrb[60].mxu1 %vm1499_vm2, %v3353_v22  ;;  %v7690_v22 = vld [vmem:[%s9281_s24] sm:$0xff]  }
0x148b   : > { %7266 = vmatprep.mubr.msk.bf16.mxu1 %vm7966_vm0, %v7965_v1  ;;  %v3119_v0 = vsel %vm1395_vm1, %v3118_v63, 0.0 }
0x14ed   : > { %v3464_v23 = vpop.xlane.xlu0 %3463 }
0x14ee   : > { %7776 = vrcp.f32 %v3464_v23  ;;  %v7691_v23 = vld [vmem:[%s9281_s24 + $0x8] sm:$0xff]  }
0x14f5   : > { %v3576_v25 = vpop.xlane.xlu1 %3575 }
0x14f6   : > { %7778 = vrcp.f32 %v3576_v25 }
0x14f8   : > { %v7777_v26 = vpop.eup %7776 }
0x14f9   : > { %v3466_v29 = vmul.f32 %v7777_v26, %v7769_v7  ;;  %v3581_v33 = vpop.permute.xlu1 %3580 }
0x14fa   : > { %v3586_v34 = vsel %vm1567_vm4, %v3581_v33, 0 }
0x14fb   : > { %v3467_v12 = vpack.c.bf16 %v3466_v29, %v3466_v29 }
0x14fd   : > { %v3688_v27 = vpop.xlane.xlu0 %3687  ;;  %v3693_v36 = vpop.permute.xlu1 %3692 }
0x14fe   : > { %7780 = vrcp.f32 %v3688_v27  ;;  %v3698_v39 = vsel %vm1567_vm4, %v3693_v36, 0 }
0x1500   : > { %v7779_v17 = vpop.eup %7778 }
0x1501   : > { %v3469_v14 = vpop.permute.xlu0 %3468  ;;  %v3578_v35 = vmul.f32 %v7779_v17, %v7771_v13 }
0x1502   : > { %v3474_v32 = vsel %vm1567_vm4, %v3469_v14, 0 }
0x1503   : > { %7265 = vmatpush3.bf16.msra.mxu1 %v3474_v32  ;;  %v3579_v37 = vpack.c.bf16 %v3578_v35, %v3578_v35 }
0x1504   : > { %7276 = vmatprep.subr.bf16.mxu1 %v7965_v1 }
0x1506   : > { %7267 = vmatmul.mubr.msk.bf16.vlgmr.msra.gmra.mrb[64].mxu1 %vm1499_vm2, %v3467_v12 }
0x1507   : > { %7277 = vmatpush3.bf16.msra.mxu1 %v3586_v34  ;;  %7278 = vmatprep.mubr.msk.bf16.mxu1 %vm7966_vm0, %v7965_v1 }
0x1508   : > { %7288 = vmatprep.subr.bf16.mxu1 %v7965_v1  ;;  %v7781_v38 = vpop.eup %7780 }
0x1509   : > { %v3690_v30 = vmul.f32 %v7781_v38, %v7773_v16  ;;  %v6689_v38 = vld [vmem:[%s9261_s18 + $0x1] ss:$0 sm:$0xff]  ;;  %s9285_s18 = sld [smem:[#allocation35_spill]] }
0x150b   : > { %v3691_v40 = vpack.c.bf16 %v3690_v30, %v3690_v30  ;;  %v6690_v30 = vld [vmem:[%s9262_s10 + $0x1] ss:$0 sm:$0xff]  ;;  %s9284_s10 = sld [smem:[#allocation31_spill]] }
0x150e   : > { %7279 = vmatmul.mubr.msk.bf16.vlgmr.msra.gmra.mrb[68].mxu1 %vm1499_vm2, %v3579_v37 }
0x150f   : > { %7289 = vmatpush3.bf16.msra.mxu1 %v3698_v39  ;;  %7290 = vmatprep.mubr.msk.bf16.mxu1 %vm7966_vm0, %v7965_v1  ;;  %v6717_v62 = vld [vmem:[%s9285_s18] ss:$0 sm:$0xff] }
0x1510   : > { %7302 = vmatprep.subr.bf16.mxu1 %v7965_v1 }
0x1516   : > { %7291 = vmatmul.mubr.msk.bf16.vlgmr.msra.gmra.mrb[72].mxu1 %vm1499_vm2, %v3691_v40 }
0x1517   : > { %7306 = vmatprep.mubr.msk.bf16.mxu1 %vm7966_vm0, %v7965_v1 }
0x155d   : > { %v3397_v41 = vpop.f32.mrb[60].mxu1 }
0x155e   : > { %v7256_v42 = vpop.f32.mrb[61].mxu1 }
0x155f   : > { %v3400_v43 = vpop.f32.mrb[62].mxu1 }
0x1560   : > { %v7257_v45 = vpop.f32.mrb[63].mxu1  ;;  %v7692_v43 = vld [vmem:[%s9282_s27] sm:$0xff]  }
0x1561   : > { %7303 = vmatpush3.bf16.msra.mxu1 %v7692_v43  ;;  %v7693_v45 = vld [vmem:[%s9282_s27 + $0x8] sm:$0xff]  }
0x1562   : > { %7304 = vmatprep.subr.bf16.mxu1 %v7965_v1 }
0x1565   : > { %7305 = vmatpush3.bf16.msra.mxu1 %v7693_v45 }
0x1566   : > { %7318 = vmatprep.subr.bf16.mxu1 %v7965_v1 }
0x15d9   : > { %v3510_v47 = vpop.f32.mrb[64].mxu1 }
0x15da   : > { %3741 = vrot.lane.b32.xlu0 %v3510_v47, %s9270_s11  ;;  %v7268_v49 = vpop.f32.mrb[65].mxu1 }
0x15db   : > { %v3513_v50 = vpop.f32.mrb[66].mxu1 }
0x15dc   : > { %v7269_v51 = vpop.f32.mrb[67].mxu1 }
0x15e1   : > { %v3622_v53 = vpop.f32.mrb[68].mxu1 }
0x15e2   : > { %3745 = vrot.lane.b32.xlu1 %v3622_v53, %s9271_s26  ;;  %v7280_v54 = vpop.f32.mrb[69].mxu1 }
0x15e3   : > { %v3625_v55 = vpop.f32.mrb[70].mxu1 }
0x15e4   : > { %v7281_v56 = vpop.f32.mrb[71].mxu1 }
0x15e5   : > { %v6711_v56 = vld [vmem:[%s9283_s30] ss:$0 sm:$0xff] }
0x15e9   : > { %v3734_v57 = vpop.f32.mrb[72].mxu1 }
0x15ea   : > { %3749 = vrot.lane.b32.xlu0 %v3734_v57, %s9272_s2  ;;  %v7292_v58 = vpop.f32.mrb[73].mxu1 }
0x15eb   : > { %v3737_v59 = vpop.f32.mrb[74].mxu1  ;;  %v6712_v58 = vld [vmem:[%s9284_s10] ss:$0 sm:$0xff] }
0x15ec   : > { %v7293_v60 = vpop.f32.mrb[75].mxu1 }
0x1606   : > { %3120 = vadd.xlane.f32.xlu1 %v3119_v0 }
0x164c   : > { %v3742_v2 = vpop.permute.xlu0 %3741 }
0x164d   : > { %v3752_v4 = vsel %vm1499_vm2, %v3397_v41, %v3742_v2 }
0x1654   : > { %v3746_v3 = vpop.permute.xlu1 %3745 }
0x1655   : > { %v3753_v6 = vsel %vm1961_vm5, %v3752_v4, %v3746_v3 }
0x165c   : > { %v3750_v7 = vpop.permute.xlu0 %3749 }
0x165d   : > { %v3754_v8 = vsel %vm1963_vm6, %v3753_v6, %v3750_v7 }
0x165e   : > { %v3755_v9 = vpack.c.bf16 %v3754_v8, %v3754_v8  ;;  %v6713_v8 = vld [vmem:[%s9286_s22] ss:$0 sm:$0xff]  ;;  %s9288_s22 = sld [smem:[#allocation9_spill]] }
0x1660   : > { %7299 = vmatmul.mubr.msk.bf16.vlgmr.msra.gmra.mrb[68].mxu0 %vm1395_vm1, %v3755_v9 }
0x1661   : > { %7314 = vmatprep.mubr.msk.bf16.mxu0 %vm7966_vm0, %v7965_v1  ;;  %7311 = vmatpush3.bf16.msra.mxu0 %v7690_v22 }
0x1662   : > { %7312 = vmatprep.subr.bf16.mxu0 %v7965_v1 }
0x1664   : > { %s1357_s28 = scalar_lea.vmem %s9288_s22, %s8265_s1  ;;  %s9291_s22 = sld [smem:[#allocation37_spill]] }
0x1665   : > { %7313 = vmatpush3.bf16.msra.mxu0 %v7691_v23  ;;  %v8733_v23 = vld [vmem:[%s1357_s28] sm:$0xff]  ;;  %s9289_s28 = sld [smem:[#allocation36_spill]] }
0x1666   : > { %7324 = vmatprep.subr.bf16.mxu0 %v7965_v1  ;;  %vm4042_vm10 = vcmp.eq.f32.partialorder %v8733_v23, 0.0 }
0x166b   : > { %s9290_s1 = smov %s9289_s28 }
0x1693   : > { %v3121_v44 = vpop.xlane.xlu1 %3120 }
0x1694   : > { %v3122_v24 = vmul.f32 0.03125, %v3121_v44 }
0x1696   : > { %v3123_v13 = vsub.f32 %v3118_v63, %v3122_v24 }
0x1698   : > { %v3124_v21 = vmul.f32 %v3123_v13, %v3123_v13 }
0x169a   : > { %v3125_v5 = vsel %vm1395_vm1, %v3124_v21, 0.0 }
0x1733   : > { %v3811_v11 = vpop.f32.mrb[68].mxu0 }
0x1734   : > { %v3812_v15 = vadd.f32 %v6707_v10, %v3811_v11  ;;  %v7300_v16 = vpop.f32.mrb[69].mxu0 }
0x1735   : > { %v3814_v18 = vpop.f32.mrb[70].mxu0 }
0x1736   : > { %v7301_v19 = vpop.f32.mrb[71].mxu0  ;;  %v3819_v20 = vadd.f32 %v3812_v15, %v8541_v48 }
0x1738   : > { %v3820_v31 = vsel %vm1395_vm1, %v3819_v20, 0.0 }
0x1739   : > { %3821 = vadd.xlane.f32.xlu0 %v3820_v31 }
0x173d   : > { %3126 = vadd.xlane.f32.xlu0 %v3125_v5 }
0x17c6   : > { %v3822_v25 = vpop.xlane.xlu0 %3821 }
0x17c7   : > { %v3823_v26 = vmul.f32 0.03125, %v3822_v25 }
0x17c9   : > { %v3824_v27 = vsub.f32 %v3819_v20, %v3823_v26 }
0x17ca   : > { %v3127_v29 = vpop.xlane.xlu0 %3126 }
0x17cb   : > { %v3128_v48 = vmul.f32 0.03125, %v3127_v29  ;;  %v3825_v14 = vmul.f32 %v3824_v27, %v3824_v27 }
0x17cd   : > { %7782 = vrsqrt.f32 %v3128_v48  ;;  %v3826_v32 = vsel %vm1395_vm1, %v3825_v14, 0.0  ;;  %vm3131_vm15 = vcmp.eq.f32.partialorder %v3128_v48, inf  ;;  %v3134_v17 = vand.u32 2147483648, %v3128_v48 }
0x17ce   : > { %3827 = vadd.xlane.f32.xlu1 %v3826_v32  ;;  %vm3133_vm3 = vcmp.eq.f32.partialorder %v3128_v48, 0.0 }
0x17d7   : > { %v7783_v33 = vpop.eup %7782 }
0x17d8   : > { %v3130_v12 = vmul.f32 %v7783_v33, %v3128_v48 }
0x17da   : > { %v3132_v34 = vsel %vm3131_vm15, %v3128_v48, %v3130_v12 }
0x17db   : > { %v3135_v35 = vsel %vm3133_vm3, %v3134_v17, %v3132_v34 }
0x17dc   : > { %v3136_v36 = vadd.f32 1e-06, %v3135_v35 }
0x17de   : > { %7784 = vrsqrt.f32 %v3136_v36 }
0x17e8   : > { %v7785_v37 = vpop.eup %7784 }
0x17e9   : > { %v3138_v39 = vmul.f32 %v7785_v37, %v3123_v13 }
0x17eb   : > { %v3145_v40 = vmul.f32 %v6689_v38, %v3138_v39 }
0x17ed   : > { %v3152_v41 = vadd.f32 %v6690_v30, %v3145_v40 }
0x17ef   : > { %v8678_v42 = vpack.c.bf16 %v3152_v41, %v3152_v41 }
0x17f1   : > { %7315 = vmatmul.mubr.msk.bf16.vlgmr.msra.gmra.mrb[72].mxu0 %vm1395_vm1, %v8678_v42 }
0x17f2   : > { %7326 = vmatprep.mubr.msk.bf16.mxu0 %vm7966_vm0, %v7965_v1 }
0x185b   : > { %v3828_v46 = vpop.xlane.xlu1 %3827 }
0x185c   : > { %v3829_v47 = vmul.f32 0.03125, %v3828_v46 }
0x185e   : > { %7786 = vrsqrt.f32 %v3829_v47  ;;  %vm3832_vm7 = vcmp.eq.f32.partialorder %v3829_v47, inf  ;;  %v3835_v51 = vand.u32 2147483648, %v3829_v47  ;;  %vm3834_vm8 = vcmp.eq.f32.partialorder %v3829_v47, 0.0 }
0x1868   : > { %v7787_v49 = vpop.eup %7786 }
0x1869   : > { %v3831_v50 = vmul.f32 %v7787_v49, %v3829_v47 }
0x186b   : > { %v3833_v52 = vsel %vm3832_vm7, %v3829_v47, %v3831_v50 }
0x186c   : > { %v3836_v53 = vsel %vm3834_vm8, %v3835_v51, %v3833_v52 }
0x186d   : > { %v3837_v54 = vadd.f32 1e-06, %v3836_v53 }
0x186f   : > { %7788 = vrsqrt.f32 %v3837_v54 }
0x1879   : > { %v7789_v55 = vpop.eup %7788 }
0x187a   : > { %v3839_v57 = vmul.f32 %v7789_v55, %v3824_v27 }
0x187c   : > { %v3846_v59 = vmul.f32 %v6711_v56, %v3839_v57 }
0x187e   : > { %v8690_v60 = vadd.f32 %v6712_v58, %v3846_v59 }
0x1880   : > { %v3869_v61 = vpack.c.bf16 %v8690_v60, %v8690_v60 }
0x1882   : > { %7307 = vmatmul.mubr.msk.bf16.vlgmr.msra.gmra.mrb[76].mxu1 %vm1395_vm1, %v3869_v61 }
0x1883   : > { %7320 = vmatprep.mubr.msk.bf16.mxu1 %vm7966_vm0, %v7965_v1 }
0x18c4   : > { %v3987_v63 = vpop.f32.mrb[72].mxu0 }
0x18c5   : > { %v3988_v0 = vadd.f32 %v6717_v62, %v3987_v63  ;;  %v7316_v2 = vpop.f32.mrb[73].mxu0 }
0x18c6   : > { %v3990_v3 = vpop.f32.mrb[74].mxu0 }
0x18c7   : > { %v8698_v4 = vpack.c.bf16 %v3988_v0, %v3988_v0  ;;  %v7317_v6 = vpop.f32.mrb[75].mxu0 }
0x18c9   : > { %4108 = vrot.lane.b32.xlu0 %v8698_v4, %s9263_s7  ;;  %v3999_v7 = vsel %vm1499_vm2, %v8698_v4, 0 }
0x18ca   : > { %7319 = vmatpush3.bf16.xpose.msra.mxu1 %v3999_v7 }
0x18cb   : > { %7330 = vmatprep.subr.bf16.mxu1 %v7965_v1 }
0x193b   : > { %v4109_v11 = vpop.permute.xlu0 %4108 }
0x193c   : > { %v4114_v16 = vsel %vm1499_vm2, %v4109_v11, 0 }
0x1955   : > { %v3925_v9 = vpop.f32.mrb[76].mxu1 }
0x1956   : > { %v3926_v44 = vadd.f32 %v6713_v8, %v3925_v9  ;;  %v7308_v24 = vpop.f32.mrb[77].mxu1 }
0x1957   : > { %v3928_v10 = vpop.f32.mrb[78].mxu1 }
0x1958   : > { %v3993_v13 = vpack.c.bf16 %v3926_v44, %v3926_v44  ;;  %v7309_v15 = vpop.f32.mrb[79].mxu1 }
0x195a   : > { %4106 = vrot.lane.b32.xlu1 %v3993_v13, %s9263_s7  ;;  %4218 = vrot.lane.b32.xlu0 %v3993_v13, %s9264_s3 }
0x195b   : > { %7321 = vmatmul.mubr.msk.bf16.vlgmr.msra.gmra.mrb[80].mxu1 %vm1499_vm2, %v3993_v13 }
0x195c   : > { %7331 = vmatpush3.bf16.xpose.msra.mxu1 %v4114_v16  ;;  %7332 = vmatprep.mubr.msk.bf16.mxu1 %vm7966_vm0, %v7965_v1 }
0x195d   : > { %7342 = vmatprep.subr.bf16.mxu1 %v7965_v1 }
0x195e   : > { %4220 = vrot.lane.b32.xlu1 %v8698_v4, %s9264_s3  ;;  %4330 = vrot.lane.b32.xlu0 %v3993_v13, %s9265_s5 }
0x1962   : > { %4332 = vrot.lane.b32.xlu1 %v8698_v4, %s9265_s5 }
0x19cc   : > { %v4107_v18 = vpop.permute.xlu1 %4106  ;;  %v4219_v21 = vpop.permute.xlu0 %4218 }
0x19cd   : > { %7333 = vmatmul.mubr.msk.bf16.vlgmr.msra.gmra.mrb[84].mxu1 %vm1499_vm2, %v4107_v18 }
0x19ce   : > { %7344 = vmatprep.mubr.msk.bf16.mxu1 %vm7966_vm0, %v7965_v1 }
0x19d0   : > { %v4221_v19 = vpop.permute.xlu1 %4220  ;;  %v4331_v22 = vpop.permute.xlu0 %4330 }
0x19d1   : > { %v4226_v20 = vsel %vm1499_vm2, %v4221_v19, 0 }
0x19d2   : > { %7343 = vmatpush3.bf16.xpose.msra.mxu1 %v4226_v20 }
0x19d3   : > { %7354 = vmatprep.subr.bf16.mxu1 %v7965_v1 }
0x19d4   : > { %v4333_v31 = vpop.permute.xlu1 %4332 }
0x19d5   : > { %v4338_v5 = vsel %vm1499_vm2, %v4333_v31, 0 }
0x19d9   : > { %7345 = vmatmul.mubr.msk.bf16.vlgmr.msra.gmra.mrb[88].mxu1 %vm1499_vm2, %v4219_v21 }
0x19da   : > { %7355 = vmatpush3.bf16.xpose.msra.mxu1 %v4338_v5  ;;  %7356 = vmatprep.mubr.msk.bf16.mxu1 %vm7966_vm0, %v7965_v1 }
0x19db   : > { %7366 = vmatprep.subr.bf16.mxu1 %v7965_v1 }
0x19e1   : > { %7357 = vmatmul.mubr.msk.bf16.vlgmr.msra.gmra.mrb[92].mxu1 %vm1499_vm2, %v4331_v22 }
0x19e2   : > { %7370 = vmatprep.mubr.msk.bf16.mxu1 %vm7966_vm0, %v7965_v1 }
0x1a2e   : > { %v4035_v25 = vpop.f32.mrb[80].mxu1 }
0x1a2f   : > { %v4041_v26 = vmul.f32 0.35355338, %v4035_v25  ;;  %v7322_v27 = vpop.f32.mrb[81].mxu1 }
0x1a30   : > { %v4038_v29 = vpop.f32.mrb[82].mxu1 }
0x1a31   : > { %v7323_v48 = vpop.f32.mrb[83].mxu1  ;;  %v4043_v14 = vsel %vm4042_vm10, -1000000.0, %v4041_v26 }
0x1a32   : > { %v4044_v32 = vsel %vm1499_vm2, %v4043_v14, -inf }
0x1a33   : > { %4045 = vmax.xlane.f32.xlu1 %v4044_v32 }
0x1aa0   : > { %v4150_v33 = vpop.f32.mrb[84].mxu1 }
0x1aa1   : > { %v4156_v12 = vmul.f32 0.35355338, %v4150_v33  ;;  %v7334_v17 = vpop.f32.mrb[85].mxu1 }
0x1aa2   : > { %v4153_v34 = vpop.f32.mrb[86].mxu1 }
0x1aa3   : > { %v7335_v35 = vpop.f32.mrb[87].mxu1  ;;  %v4157_v36 = vsel %vm4042_vm10, -1000000.0, %v4156_v12 }
0x1aa4   : > { %v4158_v37 = vsel %vm1499_vm2, %v4157_v36, -inf }
0x1aa5   : > { %4159 = vmax.xlane.f32.xlu0 %v4158_v37 }
0x1aac   : > { %v4262_v38 = vpop.f32.mrb[88].mxu1 }
0x1aad   : > { %v4268_v39 = vmul.f32 0.35355338, %v4262_v38  ;;  %v7346_v30 = vpop.f32.mrb[89].mxu1 }
0x1aae   : > { %v4265_v40 = vpop.f32.mrb[90].mxu1 }
0x1aaf   : > { %v7347_v41 = vpop.f32.mrb[91].mxu1  ;;  %v4269_v43 = vsel %vm4042_vm10, -1000000.0, %v4268_v39 }
0x1ab0   : > { %v4270_v45 = vsel %vm1499_vm2, %v4269_v43, -inf }
0x1ab1   : > { %4271 = vmax.xlane.f32.xlu0 %v4270_v45 }
0x1ab4   : > { %v4374_v46 = vpop.f32.mrb[92].mxu1 }
0x1ab5   : > { %v4380_v47 = vmul.f32 0.35355338, %v4374_v46  ;;  %v7358_v49 = vpop.f32.mrb[93].mxu1  ;;  %v7694_v46 = vld [vmem:[%s9289_s28] sm:$0xff]   ;;  %s9292_s28 = sld [smem:[#allocation40_spill]] }
0x1ab6   : > { %v4377_v50 = vpop.f32.mrb[94].mxu1  ;;  %7367 = vmatpush3.bf16.msra.mxu1 %v7694_v46 }
0x1ab7   : > { %v7359_v51 = vpop.f32.mrb[95].mxu1  ;;  %v4381_v52 = vsel %vm4042_vm10, -1000000.0, %v4380_v47  ;;  %7368 = vmatprep.subr.bf16.mxu1 %v7965_v1  ;;  %v7695_v47 = vld [vmem:[%s9290_s1 + $0x8] sm:$0xff]  }
0x1ab8   : > { %v4382_v53 = vsel %vm1499_vm2, %v4381_v52, -inf }
0x1ab9   : > { %4383 = vmax.xlane.f32.xlu1 %v4382_v53 }
0x1aba   : > { %7369 = vmatpush3.bf16.msra.mxu1 %v7695_v47 }
0x1abb   : > { %7382 = vmatprep.subr.bf16.mxu1 %v7965_v1  ;;  %s9293_s0 = smov %s9292_s28 }
0x1ac0   : > { %v4046_v54 = vpop.xlane.xlu1 %4045 }
0x1ac1   : > { %v4047_v55 = vsub.f32 %v4043_v14, %v4046_v54 }
0x1ac3   : > { %v4048_v56 = vmul.f32 1.442695, %v4047_v55 }
0x1ac5   : > { %7790 = vpow2.f32 %v4048_v56 }
0x1acf   : > { %v7791_v57 = vpop.eup %7790 }
0x1ad0   : > { %v4050_v58 = vsel %vm1499_vm2, %v7791_v57, 0.0 }
0x1ad1   : > { %4051 = vadd.xlane.f32.xlu0 %v4050_v58 }
0x1b32   : > { %v4160_v59 = vpop.xlane.xlu0 %4159 }
0x1b33   : > { %v4161_v61 = vsub.f32 %v4157_v36, %v4160_v59 }
0x1b35   : > { %v4162_v62 = vmul.f32 1.442695, %v4161_v61 }
0x1b37   : > { %7792 = vpow2.f32 %v4162_v62 }
0x1b3e   : > { %v4272_v63 = vpop.xlane.xlu0 %4271 }
0x1b3f   : > { %v4273_v0 = vsub.f32 %v4269_v43, %v4272_v63 }
0x1b41   : > { %v7793_v2 = vpop.eup %7792  ;;  %v4274_v3 = vmul.f32 1.442695, %v4273_v0 }
0x1b42   : > { %v4164_v6 = vsel %vm1499_vm2, %v7793_v2, 0.0 }
0x1b43   : > { %7794 = vpow2.f32 %v4274_v3  ;;  %4165 = vadd.xlane.f32.xlu1 %v4164_v6 }
0x1b46   : > { %v4384_v9 = vpop.xlane.xlu1 %4383 }
0x1b47   : > { %v4385_v44 = vsub.f32 %v4381_v52, %v4384_v9 }
0x1b49   : > { %v4386_v24 = vmul.f32 1.442695, %v4385_v44 }
0x1b4b   : > { %7796 = vpow2.f32 %v4386_v24 }
0x1b4d   : > { %v7795_v7 = vpop.eup %7794 }
0x1b4e   : > { %v4276_v8 = vsel %vm1499_vm2, %v7795_v7, 0.0 }
0x1b4f   : > { %4277 = vadd.xlane.f32.xlu0 %v4276_v8 }
0x1b54   : > { %4170 = vrot.lane.b32.xlu1 %v8698_v4, %s9266_s8 }
0x1b55   : > { %v7797_v10 = vpop.eup %7796 }
0x1b56   : > { %v4388_v11 = vsel %vm1499_vm2, %v7797_v10, 0.0 }
0x1b5e   : > { %v4052_v13 = vpop.xlane.xlu0 %4051 }
0x1b5f   : > { %7798 = vrcp.f32 %v4052_v13 }
0x1b65   : > { %4057 = vrot.lane.b32.xlu0 %v8698_v4, %s9267_s13 }
0x1b69   : > { %4394 = vrot.lane.b32.xlu0 %v8698_v4, %s9268_s25  ;;  %v7799_v16 = vpop.eup %7798 }
0x1b6a   : > { %v4054_v19 = vmul.f32 %v7799_v16, %v7791_v57 }
0x1b6c   : > { %v4055_v5 = vpack.c.bf16 %v4054_v19, %v4054_v19  ;;  %v7697_v19 = vld [vmem:[%s9293_s0 + $0x8] sm:$0xff]  }
0x1b78   : > { %4389 = vadd.xlane.f32.xlu1 %v4388_v11 }
0x1b89   : > { %4282 = vrot.lane.b32.xlu1 %v8698_v4, %s9269_s29 }
0x1bd0   : > { %v4166_v15 = vpop.xlane.xlu1 %4165 }
0x1bd1   : > { %7800 = vrcp.f32 %v4166_v15 }
0x1bd4   : > { %v4171_v21 = vpop.permute.xlu1 %4170 }
0x1bd5   : > { %v4176_v25 = vsel %vm1567_vm4, %v4171_v21, 0 }
0x1bdb   : > { %v7801_v22 = vpop.eup %7800 }
0x1bdc   : > { %v4278_v18 = vpop.xlane.xlu0 %4277  ;;  %v4168_v4 = vmul.f32 %v7801_v22, %v7793_v2  ;;  %v6729_v2 = vld [vmem:[%s9291_s22] ss:$0 sm:$0xff]  ;;  %s9295_s22 = sld [smem:[#allocation38_spill]] }
0x1bdd   : > { %7802 = vrcp.f32 %v4278_v18  ;;  %v7696_v18 = vld [vmem:[%s9292_s28] sm:$0xff]   ;;  %s9298_s28 = sld [smem:[#allocation41_spill]] }
0x1bde   : > { %v4169_v26 = vpack.c.bf16 %v4168_v4, %v4168_v4 }
0x1be0   : > { %v4058_v20 = vpop.permute.xlu0 %4057 }
0x1be1   : > { %v4063_v31 = vsel %vm1567_vm4, %v4058_v20, 0  ;;  %v7699_v20 = vld [vmem:[%s9294_s21 + $0x8] sm:$0xff]  }
0x1be2   : > { %7325 = vmatpush3.bf16.msra.mxu0 %v4063_v31  ;;  %s9296_s4 = smov %s9295_s22 }
0x1be3   : > { %7336 = vmatprep.subr.bf16.mxu0 %v7965_v1  ;;  %s9299_s0 = smov %s9298_s28 }
0x1be4   : > { %v4395_v33 = vpop.permute.xlu0 %4394 }
0x1be5   : > { %7327 = vmatmul.mubr.msk.bf16.vlgmr.msra.gmra.mrb[76].mxu0 %vm1499_vm2, %v4055_v5  ;;  %v4400_v17 = vsel %vm1567_vm4, %v4395_v33, 0 }
0x1be6   : > { %7337 = vmatpush3.bf16.msra.mxu0 %v4176_v25  ;;  %7338 = vmatprep.mubr.msk.bf16.mxu0 %vm7966_vm0, %v7965_v1 }
0x1be7   : > { %7348 = vmatprep.subr.bf16.mxu0 %v7965_v1  ;;  %v7803_v27 = vpop.eup %7802 }
0x1be8   : > { %v4280_v48 = vmul.f32 %v7803_v27, %v7795_v7 }
0x1bea   : > { %v4281_v12 = vpack.c.bf16 %v4280_v48, %v4280_v48  ;;  %v6733_v48 = vld [vmem:[%s9295_s22] ss:$0 sm:$0xff] }
0x1bed   : > { %7339 = vmatmul.mubr.msk.bf16.vlgmr.msra.gmra.mrb[80].mxu0 %vm1499_vm2, %v4169_v26 }
0x1bee   : > { %7350 = vmatprep.mubr.msk.bf16.mxu0 %vm7966_vm0, %v7965_v1 }
0x1c05   : > { %v4390_v29 = vpop.xlane.xlu1 %4389 }
0x1c06   : > { %7804 = vrcp.f32 %v4390_v29 }
0x1c09   : > { %v4283_v14 = vpop.permute.xlu1 %4282 }
0x1c0a   : > { %v4288_v32 = vsel %vm1567_vm4, %v4283_v14, 0 }
0x1c0b   : > { %7349 = vmatpush3.bf16.msra.mxu0 %v4288_v32  ;;  %v6734_v32 = vld [vmem:[%s9297_s23] ss:$0 sm:$0xff]  ;;  %s9301_s23 = sld [smem:[#allocation44_spill]] }
0x1c0c   : > { %7360 = vmatprep.subr.bf16.mxu0 %v7965_v1 }
0x1c0e   : > { %7351 = vmatmul.mubr.msk.bf16.vlgmr.msra.gmra.mrb[84].mxu0 %vm1499_vm2, %v4281_v12 }
0x1c0f   : > { %7361 = vmatpush3.bf16.msra.mxu0 %v4400_v17  ;;  %7362 = vmatprep.mubr.msk.bf16.mxu0 %vm7966_vm0, %v7965_v1 }
0x1c10   : > { %v7805_v34 = vpop.eup %7804  ;;  %7374 = vmatprep.subr.bf16.mxu0 %v7965_v1 }
0x1c11   : > { %v4392_v35 = vmul.f32 %v7805_v34, %v7797_v10  ;;  %v7700_v34 = vld [vmem:[%s9294_s21 + $0x10] sm:$0xff]  }
0x1c13   : > { %v4393_v36 = vpack.c.bf16 %v4392_v35, %v4392_v35  ;;  %v7701_v35 = vld [vmem:[%s9294_s21 + $0x18] sm:$0xff]  }
0x1c16   : > { %7363 = vmatmul.mubr.msk.bf16.vlgmr.msra.gmra.mrb[88].mxu0 %vm1499_vm2, %v4393_v36  ;;  %v6735_v36 = vld [vmem:[%s9298_s28] ss:$0 sm:$0xff] }
0x1c17   : > { %7378 = vmatprep.mubr.msk.bf16.mxu0 %vm7966_vm0, %v7965_v1  ;;  %7375 = vmatpush3.bf16.msra.mxu0 %v7696_v18  ;;  %v7705_v18 = vld [vmem:[%s9275_s19 + $0x18] sm:$0xff]  }
0x1c18   : > { %7376 = vmatprep.subr.bf16.mxu0 %v7965_v1 }
0x1c1b   : > { %7377 = vmatpush3.bf16.msra.mxu0 %v7697_v19  ;;  %v6762_v19 = vld [vmem:[%s9276_s6 + $0x1] ss:$0 sm:$0xff] }
0x1c1c   : > { %7394 = vmatprep.subr.bf16.mxu0 %v7965_v1 }
0x1cb8   : > { %v4099_v37 = vpop.f32.mrb[76].mxu0 }
0x1cb9   : > { %v7328_v38 = vpop.f32.mrb[77].mxu0 }
0x1cba   : > { %v4102_v39 = vpop.f32.mrb[78].mxu0 }
0x1cbb   : > { %v7329_v30 = vpop.f32.mrb[79].mxu0 }
0x1cc0   : > { %v4212_v40 = vpop.f32.mrb[80].mxu0 }
0x1cc1   : > { %4443 = vrot.lane.b32.xlu1 %v4212_v40, %s9270_s11  ;;  %v7340_v41 = vpop.f32.mrb[81].mxu0 }
0x1cc2   : > { %v4215_v43 = vpop.f32.mrb[82].mxu0 }
0x1cc3   : > { %v7341_v45 = vpop.f32.mrb[83].mxu0 }
0x1cc4   : > { %v6739_v45 = vld [vmem:[%s9300_s17] ss:$0 sm:$0xff]  ;;  %s9302_s17 = smov %s9301_s23 }
0x1ce1   : > { %v4324_v49 = vpop.f32.mrb[84].mxu0 }
0x1ce2   : > { %4447 = vrot.lane.b32.xlu0 %v4324_v49, %s9271_s26  ;;  %v7352_v50 = vpop.f32.mrb[85].mxu0 }
0x1ce3   : > { %v4327_v51 = vpop.f32.mrb[86].mxu0 }
0x1ce4   : > { %v7353_v52 = vpop.f32.mrb[87].mxu0 }
0x1ce9   : > { %v4436_v53 = vpop.f32.mrb[88].mxu0 }
0x1cea   : > { %4451 = vrot.lane.b32.xlu1 %v4436_v53, %s9272_s2  ;;  %v7364_v54 = vpop.f32.mrb[89].mxu0 }
0x1ceb   : > { %v4439_v55 = vpop.f32.mrb[90].mxu0 }
0x1cec   : > { %v7365_v56 = vpop.f32.mrb[91].mxu0 }
0x1d33   : > { %v4444_v57 = vpop.permute.xlu1 %4443 }
0x1d34   : > { %v4454_v59 = vsel %vm1499_vm2, %v4099_v37, %v4444_v57 }
0x1d54   : > { %v4448_v58 = vpop.permute.xlu0 %4447 }
0x1d55   : > { %v4455_v61 = vsel %vm1961_vm5, %v4454_v59, %v4448_v58  ;;  %v7702_v59 = vld [vmem:[%s9273_s14 + $0x10] sm:$0xff]  }
0x1d5c   : > { %v4452_v62 = vpop.permute.xlu1 %4451 }
0x1d5d   : > { %v4456_v63 = vsel %vm1963_vm6, %v4455_v61, %v4452_v62  ;;  %v7703_v61 = vld [vmem:[%s9273_s14 + $0x18] sm:$0xff]  }
0x1d5e   : > { %v4457_v0 = vpack.c.bf16 %v4456_v63, %v4456_v63 }
0x1d60   : > { %7371 = vmatmul.mubr.msk.bf16.vlgmr.msra.gmra.mrb[96].mxu1 %vm1395_vm1, %v4457_v0 }
0x1d61   : > { %7390 = vmatprep.mubr.msk.bf16.mxu1 %vm7966_vm0, %v7965_v1 }
0x1e33   : > { %v4513_v3 = vpop.f32.mrb[96].mxu1 }
0x1e34   : > { %v4514_v6 = vadd.f32 %v6729_v2, %v4513_v3  ;;  %v7372_v7 = vpop.f32.mrb[97].mxu1 }
0x1e35   : > { %v4516_v8 = vpop.f32.mrb[98].mxu1 }
0x1e36   : > { %v7373_v9 = vpop.f32.mrb[99].mxu1  ;;  %v4521_v44 = vadd.f32 %v4514_v6, %v8690_v60  ;;  %v7698_v60 = vld [vmem:[%s9294_s21] sm:$0xff]  }
0x1e37   : > { %7383 = vmatpush3.bf16.msra.mxu1 %v7698_v60 }
0x1e38   : > { %v4522_v24 = vsel %vm1395_vm1, %v4521_v44, 0.0  ;;  %7384 = vmatprep.subr.bf16.mxu1 %v7965_v1 }
0x1e39   : > { %4523 = vadd.xlane.f32.xlu0 %v4522_v24 }
0x1e3b   : > { %7385 = vmatpush3.bf16.msra.mxu1 %v7699_v20 }
0x1e3c   : > { %7386 = vmatprep.subr.bf16.mxu1 %v7965_v1 }
0x1e3f   : > { %7387 = vmatpush3.bf16.msra.mxu1 %v7700_v34 }
0x1e40   : > { %7388 = vmatprep.subr.bf16.mxu1 %v7965_v1 }
0x1e43   : > { %7389 = vmatpush3.bf16.msra.mxu1 %v7701_v35 }
0x1e44   : > { %7410 = vmatprep.subr.bf16.mxu1 %v7965_v1 }
0x1ec6   : > { %v4524_v10 = vpop.xlane.xlu0 %4523 }
0x1ec7   : > { %v4525_v11 = vmul.f32 0.03125, %v4524_v10  ;;  %v6746_v10 = vld [vmem:[%s8186_s9] ss:$0 sm:$0xff] }
0x1ec9   : > { %v4526_v13 = vsub.f32 %v4521_v44, %v4525_v11  ;;  %v6745_v44 = vld [vmem:[%s9301_s23] ss:$0 sm:$0xff] }
0x1ecb   : > { %v4527_v15 = vmul.f32 %v4526_v13, %v4526_v13 }
0x1ecd   : > { %v4528_v16 = vsel %vm1395_vm1, %v4527_v15, 0.0  ;;  %v7704_v15 = vld [vmem:[%s9275_s19 + $0x10] sm:$0xff]  }
0x1ece   : > { %4529 = vadd.xlane.f32.xlu1 %v4528_v16 }
0x1f5b   : > { %v4530_v31 = vpop.xlane.xlu1 %4529 }
0x1f5c   : > { %v4531_v21 = vmul.f32 0.03125, %v4530_v31 }
0x1f5e   : > { %7806 = vrsqrt.f32 %v4531_v21  ;;  %vm4534_vm11 = vcmp.eq.f32.partialorder %v4531_v21, inf  ;;  %v4537_v25 = vand.u32 2147483648, %v4531_v21  ;;  %vm4536_vm12 = vcmp.eq.f32.partialorder %v4531_v21, 0.0 }
0x1f68   : > { %v7807_v5 = vpop.eup %7806 }
0x1f69   : > { %v4533_v22 = vmul.f32 %v7807_v5, %v4531_v21 }
0x1f6b   : > { %v4535_v4 = vsel %vm4534_vm11, %v4531_v21, %v4533_v22 }
0x1f6c   : > { %v4538_v26 = vsel %vm4536_vm12, %v4537_v25, %v4535_v4  ;;  %v6766_v25 = vld [vmem:[%s9277_s16 + $0x1] ss:$0 sm:$0xff] }
0x1f6d   : > { %v4539_v27 = vadd.f32 1e-06, %v4538_v26 }
0x1f6f   : > { %7808 = vrsqrt.f32 %v4539_v27 }
0x1f79   : > { %v7809_v29 = vpop.eup %7808 }
0x1f7a   : > { %v4541_v14 = vmul.f32 %v7809_v29, %v4526_v13 }
0x1f7c   : > { %v4548_v33 = vmul.f32 %v6733_v48, %v4541_v14 }
0x1f7e   : > { %v4555_v12 = vadd.f32 %v6734_v32, %v4548_v33 }
0x1f80   : > { %v4570_v17 = vpack.c.bf16 %v4555_v12, %v4555_v12 }
0x1f82   : > { %7379 = vmatmul.mubr.msk.bf16.vlgmr.msra.gmra.mrb[92].mxu0 %vm1395_vm1, %v4570_v17 }
0x1f83   : > { %7398 = vmatprep.mubr.msk.bf16.mxu0 %vm7966_vm0, %v7965_v1  ;;  %7395 = vmatpush3.bf16.msra.mxu0 %v7702_v59 }
0x1f84   : > { %7396 = vmatprep.subr.bf16.mxu0 %v7965_v1 }
0x1f87   : > { %7397 = vmatpush3.bf16.msra.mxu0 %v7703_v61 }
0x1f88   : > { %7402 = vmatprep.subr.bf16.mxu0 %v7965_v1 }
0x2055   : > { %v4626_v37 = vpop.f32.mrb[92].mxu0 }
0x2056   : > { %v4627_v38 = vadd.f32 %v6735_v36, %v4626_v37  ;;  %v7380_v39 = vpop.f32.mrb[93].mxu0 }
0x2057   : > { %v4629_v30 = vpop.f32.mrb[94].mxu0 }
0x2058   : > { %v4632_v40 = vmax.f32 %v4627_v38, 0.0  ;;  %v7381_v41 = vpop.f32.mrb[95].mxu0 }
0x205a   : > { %v4633_v43 = vpack.c.bf16 %v4632_v40, %v4632_v40 }
0x205c   : > { %7391 = vmatmul.mubr.msk.bf16.vlgmr.msra.gmra.mrb[100].mxu1 %vm2173_vm9, %v4633_v43 }
0x205d   : > { %7412 = vmatprep.mubr.msk.bf16.mxu1 %vm7966_vm0, %v7965_v1 }
0x212f   : > { %v4701_v46 = vpop.f32.mrb[100].mxu1 }
0x2130   : > { %v4702_v47 = vadd.f32 %v6739_v45, %v4701_v46  ;;  %v7392_v49 = vpop.f32.mrb[101].mxu1 }
0x2131   : > { %v4704_v50 = vpop.f32.mrb[102].mxu1 }
0x2132   : > { %v7393_v51 = vpop.f32.mrb[103].mxu1  ;;  %v4709_v52 = vadd.f32 %v4702_v47, %v4555_v12 }
0x2134   : > { %v4710_v53 = vsel %vm1395_vm1, %v4709_v52, 0.0 }
0x2135   : > { %4711 = vadd.xlane.f32.xlu0 %v4710_v53 }
0x21c2   : > { %v4712_v54 = vpop.xlane.xlu0 %4711 }
0x21c3   : > { %v4713_v55 = vmul.f32 0.03125, %v4712_v54 }
0x21c5   : > { %v4714_v56 = vsub.f32 %v4709_v52, %v4713_v55 }
0x21c7   : > { %v4715_v57 = vmul.f32 %v4714_v56, %v4714_v56 }
0x21c9   : > { %v4716_v58 = vsel %vm1395_vm1, %v4715_v57, 0.0 }
0x21ca   : > { %4717 = vadd.xlane.f32.xlu0 %v4716_v58 }
0x2257   : > { %v4718_v62 = vpop.xlane.xlu0 %4717 }
0x2258   : > { %v4719_v63 = vmul.f32 0.03125, %v4718_v62 }
0x225a   : > { %7810 = vrsqrt.f32 %v4719_v63  ;;  %vm4722_vm13 = vcmp.eq.f32.partialorder %v4719_v63, inf  ;;  %v4725_v3 = vand.u32 2147483648, %v4719_v63  ;;  %vm4724_vm15 = vcmp.eq.f32.partialorder %v4719_v63, 0.0 }
0x2264   : > { %v7811_v0 = vpop.eup %7810 }
0x2265   : > { %v4721_v2 = vmul.f32 %v7811_v0, %v4719_v63 }
0x2267   : > { %v4723_v6 = vsel %vm4722_vm13, %v4719_v63, %v4721_v2 }
0x2268   : > { %v4726_v7 = vsel %vm4724_vm15, %v4725_v3, %v4723_v6 }
0x2269   : > { %v4727_v8 = vadd.f32 1e-06, %v4726_v7 }
0x226b   : > { %7812 = vrsqrt.f32 %v4727_v8 }
0x2275   : > { %v7813_v9 = vpop.eup %7812 }
0x2276   : > { %v4729_v24 = vmul.f32 %v7813_v9, %v4714_v56 }
0x2278   : > { %v4736_v11 = vmul.f32 %v6745_v44, %v4729_v24 }
0x227a   : > { %v8827_v13 = vadd.f32 %v6746_v10, %v4736_v11 }
0x227c   : > { %v4765_v16 = vpack.c.bf16 %v8827_v13, %v8827_v13 }
0x227e   : > { %7399 = vmatmul.mubr.msk.bf16.vlgmr.msra.gmra.mrb[96].mxu0 %vm1395_vm1, %v4765_v16 }
0x227f   : > { %7403 = vmatpush3.bf16.msra.mxu0 %v7704_v15  ;;  %7406 = vmatprep.mubr.msk.bf16.mxu0 %vm7966_vm0, %v7965_v1 }
0x2280   : > { %7404 = vmatprep.subr.bf16.mxu0 %v7965_v1 }
0x2283   : > { %7405 = vmatpush3.bf16.msra.mxu0 %v7705_v18 }
0x2284   : > { %7416 = vmatprep.subr.bf16.mxu0 %v7965_v1 }
0x2286   : > { %7407 = vmatmul.mubr.msk.bf16.vlgmr.msra.gmra.mrb[100].mxu0 %vm1395_vm1, %v4765_v16 }
0x2287   : > { %7418 = vmatprep.mubr.msk.bf16.mxu0 %vm7966_vm0, %v7965_v1 }
0x2351   : > { %v4821_v60 = vpop.f32.mrb[96].mxu0 }
0x2352   : > { %v4822_v20 = vadd.f32 %v6762_v19, %v4821_v60  ;;  %v7400_v31 = vpop.f32.mrb[97].mxu0 }
0x2353   : > { %v4824_v21 = vpop.f32.mrb[98].mxu0 }
0x2354   : > { %v4885_v5 = vpack.c.bf16 %v4822_v20, %v4822_v20  ;;  %v7401_v22 = vpop.f32.mrb[99].mxu0 }
0x2356   : > { %4997 = vrot.lane.b32.xlu0 %v4885_v5, %s9263_s7 }
0x2359   : > { %v4879_v4 = vpop.f32.mrb[100].mxu0 }
0x235a   : > { %v4880_v26 = vadd.f32 %v6766_v25, %v4879_v4  ;;  %v7408_v27 = vpop.f32.mrb[101].mxu0 }
0x235b   : > { %v4882_v29 = vpop.f32.mrb[102].mxu0 }
0x235c   : > { %v8844_v48 = vpack.c.bf16 %v4880_v26, %v4880_v26  ;;  %v7409_v14 = vpop.f32.mrb[103].mxu0 }
0x235e   : > { %5223 = vrot.lane.b32.xlu0 %v8844_v48, %s9265_s5  ;;  %4999 = vrot.lane.b32.xlu1 %v8844_v48, %s9263_s7  ;;  %v4891_v32 = vsel %vm1499_vm2, %v8844_v48, 0 }
0x235f   : > { %7411 = vmatpush3.bf16.xpose.msra.mxu1 %v4891_v32 }
0x2360   : > { %7422 = vmatprep.subr.bf16.mxu1 %v7965_v1 }
0x2362   : > { %5111 = vrot.lane.b32.xlu1 %v8844_v48, %s9264_s3 }
0x2366   : > { %5109 = vrot.lane.b32.xlu1 %v4885_v5, %s9264_s3  ;;  %7413 = vmatmul.mubr.msk.bf16.vlgmr.msra.gmra.mrb[104].mxu1 %vm1499_vm2, %v4885_v5 }
0x2367   : > { %7424 = vmatprep.mubr.msk.bf16.mxu1 %vm7966_vm0, %v7965_v1 }
0x236a   : > { %5221 = vrot.lane.b32.xlu1 %v4885_v5, %s9265_s5 }
0x23c8   : > { %v4998_v34 = vpop.permute.xlu0 %4997 }
0x23d0   : > { %v5000_v33 = vpop.permute.xlu1 %4999  ;;  %v5224_v36 = vpop.permute.xlu0 %5223 }
0x23d1   : > { %v5005_v12 = vsel %vm1499_vm2, %v5000_v33, 0  ;;  %v5229_v38 = vsel %vm1499_vm2, %v5224_v36, 0 }
0x23d2   : > { %7423 = vmatpush3.bf16.xpose.msra.mxu1 %v5005_v12 }
0x23d3   : > { %7434 = vmatprep.subr.bf16.mxu1 %v7965_v1 }
0x23d4   : > { %v5112_v17 = vpop.permute.xlu1 %5111 }
0x23d5   : > { %v5117_v35 = vsel %vm1499_vm2, %v5112_v17, 0 }
0x23d8   : > { %v5110_v37 = vpop.permute.xlu1 %5109 }
0x23d9   : > { %7425 = vmatmul.mubr.msk.bf16.vlgmr.msra.gmra.mrb[108].mxu1 %vm1499_vm2, %v4998_v34 }
0x23da   : > { %7435 = vmatpush3.bf16.xpose.msra.mxu1 %v5117_v35  ;;  %7436 = vmatprep.mubr.msk.bf16.mxu1 %vm7966_vm0, %v7965_v1 }
0x23db   : > { %7446 = vmatprep.subr.bf16.mxu1 %v7965_v1 }
0x23dc   : > { %v5222_v39 = vpop.permute.xlu1 %5221 }
0x23e1   : > { %7437 = vmatmul.mubr.msk.bf16.vlgmr.msra.gmra.mrb[112].mxu1 %vm1499_vm2, %v5110_v37 }
0x23e2   : > { %7447 = vmatpush3.bf16.xpose.msra.mxu1 %v5229_v38  ;;  %7448 = vmatprep.mubr.msk.bf16.mxu1 %vm7966_vm0, %v7965_v1 }
0x23e3   : > { %7458 = vmatprep.subr.bf16.mxu1 %v7965_v1 }
0x23e9   : > { %7449 = vmatmul.mubr.msk.bf16.vlgmr.msra.gmra.mrb[116].mxu1 %vm1499_vm2, %v5222_v39 }
0x23ea   : > { %7462 = vmatprep.mubr.msk.bf16.mxu1 %vm7966_vm0, %v7965_v1 }
0x2439   : > { %v4927_v30 = vpop.f32.mrb[104].mxu1 }
0x243a   : > { %v4933_v40 = vmul.f32 0.35355338, %v4927_v30  ;;  %v7414_v41 = vpop.f32.mrb[105].mxu1 }
0x243b   : > { %v4930_v43 = vpop.f32.mrb[106].mxu1 }
0x243c   : > { %v4934_v45 = vsel %vm3340_vm14, -1000000.0, %v4933_v40  ;;  %v7415_v46 = vpop.f32.mrb[107].mxu1 }
0x243d   : > { %v4935_v47 = vsel %vm1499_vm2, %v4934_v45, -inf }
0x243e   : > { %4936 = vmax.xlane.f32.xlu0 %v4935_v47 }
0x24ac   : > { %v5041_v49 = vpop.f32.mrb[108].mxu1 }
0x24ad   : > { %v5047_v50 = vmul.f32 0.35355338, %v5041_v49  ;;  %v7426_v51 = vpop.f32.mrb[109].mxu1 }
0x24ae   : > { %v5044_v52 = vpop.f32.mrb[110].mxu1 }
0x24af   : > { %v5048_v53 = vsel %vm3340_vm14, -1000000.0, %v5047_v50  ;;  %v7427_v54 = vpop.f32.mrb[111].mxu1 }
0x24b0   : > { %v5049_v55 = vsel %vm1499_vm2, %v5048_v53, -inf }
0x24b1   : > { %5050 = vmax.xlane.f32.xlu1 %v5049_v55 }
0x24b4   : > { %v5153_v56 = vpop.f32.mrb[112].mxu1 }
0x24b5   : > { %v5159_v57 = vmul.f32 0.35355338, %v5153_v56  ;;  %v7438_v58 = vpop.f32.mrb[113].mxu1 }
0x24b6   : > { %v5156_v59 = vpop.f32.mrb[114].mxu1  ;;  %v7706_v58 = vld [vmem:[%s9279_s12 + $0x10] sm:$0xff]  }
0x24b7   : > { %v5160_v61 = vsel %vm3340_vm14, -1000000.0, %v5159_v57  ;;  %v7439_v62 = vpop.f32.mrb[115].mxu1  ;;  %7459 = vmatpush3.bf16.msra.mxu1 %v7706_v58 }
0x24b8   : > { %v5161_v63 = vsel %vm1499_vm2, %v5160_v61, -inf  ;;  %7460 = vmatprep.subr.bf16.mxu1 %v7965_v1 }
0x24b9   : > { %5162 = vmax.xlane.f32.xlu0 %v5161_v63 }
0x24bc   : > { %v5265_v0 = vpop.f32.mrb[116].mxu1 }
0x24bd   : > { %v5271_v2 = vmul.f32 0.35355338, %v5265_v0  ;;  %v7450_v3 = vpop.f32.mrb[117].mxu1  ;;  %v7707_v0 = vld [vmem:[%s9279_s12 + $0x18] sm:$0xff]  }
0x24be   : > { %v5268_v6 = vpop.f32.mrb[118].mxu1  ;;  %7461 = vmatpush3.bf16.msra.mxu1 %v7707_v0 }
0x24bf   : > { %v5272_v7 = vsel %vm3340_vm14, -1000000.0, %v5271_v2  ;;  %v7451_v8 = vpop.f32.mrb[119].mxu1  ;;  %7474 = vmatprep.subr.bf16.mxu1 %v7965_v1 }
0x24c0   : > { %v5273_v9 = vsel %vm1499_vm2, %v5272_v7, -inf }
0x24c1   : > { %5274 = vmax.xlane.f32.xlu0 %v5273_v9 }
0x24cb   : > { %v4937_v44 = vpop.xlane.xlu0 %4936 }
0x24cc   : > { %v4938_v24 = vsub.f32 %v4934_v45, %v4937_v44 }
0x24ce   : > { %v4939_v10 = vmul.f32 1.442695, %v4938_v24 }
0x24d0   : > { %7814 = vpow2.f32 %v4939_v10 }
0x24da   : > { %v7815_v11 = vpop.eup %7814 }
0x24db   : > { %v4941_v15 = vsel %vm1499_vm2, %v7815_v11, 0.0 }
0x24dc   : > { %4942 = vadd.xlane.f32.xlu1 %v4941_v15 }
0x24ed   : > { %4948 = vrot.lane.b32.xlu1 %v8844_v48, %s9267_s13 }
0x253e   : > { %v5051_v16 = vpop.xlane.xlu1 %5050 }
0x253f   : > { %v5052_v18 = vsub.f32 %v5048_v53, %v5051_v16 }
0x2541   : > { %v5053_v19 = vmul.f32 1.442695, %v5052_v18 }
0x2543   : > { %7816 = vpow2.f32 %v5053_v19 }
0x2546   : > { %v5163_v28 = vpop.xlane.xlu0 %5162 }
0x2547   : > { %v5164_v60 = vsub.f32 %v5160_v61, %v5163_v28  ;;  %v7708_v28 = vld [vmem:[%s9281_s24 + $0x10] sm:$0xff]  }
0x2549   : > { %v5165_v20 = vmul.f32 1.442695, %v5164_v60 }
0x254b   : > { %7818 = vpow2.f32 %v5165_v20  ;;  %v7709_v20 = vld [vmem:[%s9281_s24 + $0x18] sm:$0xff]  }
0x254d   : > { %v7817_v31 = vpop.eup %7816 }
0x254e   : > { %v5275_v21 = vpop.xlane.xlu0 %5274  ;;  %v5055_v5 = vsel %vm1499_vm2, %v7817_v31, 0.0 }
0x254f   : > { %v5276_v22 = vsub.f32 %v5272_v7, %v5275_v21  ;;  %5056 = vadd.xlane.f32.xlu0 %v5055_v5 }
0x2551   : > { %v5277_v25 = vmul.f32 1.442695, %v5276_v22 }
0x2553   : > { %7820 = vpow2.f32 %v5277_v25 }
0x2555   : > { %v7819_v4 = vpop.eup %7818 }
0x2556   : > { %v5167_v26 = vsel %vm1499_vm2, %v7819_v4, 0.0 }
0x2557   : > { %5168 = vadd.xlane.f32.xlu1 %v5167_v26 }
0x255d   : > { %v7821_v27 = vpop.eup %7820 }
0x255e   : > { %v5279_v29 = vsel %vm1499_vm2, %v7821_v27, 0.0 }
0x255f   : > { %5280 = vadd.xlane.f32.xlu0 %v5279_v29 }
0x2568   : > { %5173 = vrot.lane.b32.xlu1 %v8844_v48, %s9269_s29 }
0x2569   : > { %v4943_v14 = vpop.xlane.xlu1 %4942 }
0x256a   : > { %7822 = vrcp.f32 %v4943_v14 }
0x256c   : > { %5285 = vrot.lane.b32.xlu1 %v8844_v48, %s9268_s25 }
0x256d   : > { %v4949_v32 = vpop.permute.xlu1 %4948 }
0x256e   : > { %v4954_v33 = vsel %vm1567_vm4, %v4949_v32, 0 }
0x256f   : > { %7417 = vmatpush3.bf16.msra.mxu0 %v4954_v33 }
0x2570   : > { %7428 = vmatprep.subr.bf16.mxu0 %v7965_v1 }
0x2574   : > { %v7823_v12 = vpop.eup %7822 }
0x2575   : > { %v4945_v17 = vmul.f32 %v7823_v12, %v7815_v11  ;;  %5061 = vrot.lane.b32.xlu0 %v8844_v48, %s9266_s8 }
0x2577   : > { %v4946_v34 = vpack.c.bf16 %v4945_v17, %v4945_v17 }
0x2579   : > { %7419 = vmatmul.mubr.msk.bf16.vlgmr.msra.gmra.mrb[104].mxu0 %vm1499_vm2, %v4946_v34 }
0x257a   : > { %7430 = vmatprep.mubr.msk.bf16.mxu0 %vm7966_vm0, %v7965_v1 }
0x25dc   : > { %v5057_v35 = vpop.xlane.xlu0 %5056 }
0x25dd   : > { %7824 = vrcp.f32 %v5057_v35 }
0x25e4   : > { %v5169_v36 = vpop.xlane.xlu1 %5168 }
0x25e5   : > { %7826 = vrcp.f32 %v5169_v36  ;;  %v6805_v36 = vld [vmem:[%s9285_s18 + $0x1] ss:$0 sm:$0xff] }
0x25e7   : > { %v7825_v37 = vpop.eup %7824 }
0x25e8   : > { %v5059_v39 = vmul.f32 %v7825_v37, %v7817_v31  ;;  %v5174_v41 = vpop.permute.xlu1 %5173  ;;  %v6778_v31 = vld [vmem:[%s9280_s20 + $0x1] ss:$0 sm:$0xff] }
0x25e9   : > { %v5179_v45 = vsel %vm1567_vm4, %v5174_v41, 0 }
0x25ea   : > { %v5060_v48 = vpack.c.bf16 %v5059_v39, %v5059_v39  ;;  %v7711_v39 = vld [vmem:[%s9282_s27 + $0x18] sm:$0xff]  }
0x25ec   : > { %v5281_v38 = vpop.xlane.xlu0 %5280  ;;  %v5286_v47 = vpop.permute.xlu1 %5285 }
0x25ed   : > { %7828 = vrcp.f32 %v5281_v38  ;;  %v5291_v51 = vsel %vm1567_vm4, %v5286_v47, 0  ;;  %v7710_v38 = vld [vmem:[%s9282_s27 + $0x10] sm:$0xff]  }
0x25ef   : > { %v7827_v43 = vpop.eup %7826 }
0x25f0   : > { %v5062_v30 = vpop.permute.xlu0 %5061  ;;  %v5171_v46 = vmul.f32 %v7827_v43, %v7819_v4 }
0x25f1   : > { %v5067_v40 = vsel %vm1567_vm4, %v5062_v30, 0 }
0x25f2   : > { %7429 = vmatpush3.bf16.msra.mxu0 %v5067_v40  ;;  %v5172_v49 = vpack.c.bf16 %v5171_v46, %v5171_v46 }
0x25f3   : > { %7440 = vmatprep.subr.bf16.mxu0 %v7965_v1 }
0x25f5   : > { %7431 = vmatmul.mubr.msk.bf16.vlgmr.msra.gmra.mrb[108].mxu0 %vm1499_vm2, %v5060_v48 }
0x25f6   : > { %7441 = vmatpush3.bf16.msra.mxu0 %v5179_v45  ;;  %7442 = vmatprep.mubr.msk.bf16.mxu0 %vm7966_vm0, %v7965_v1 }
0x25f7   : > { %7452 = vmatprep.subr.bf16.mxu0 %v7965_v1  ;;  %v7829_v50 = vpop.eup %7828 }
0x25f8   : > { %v5283_v52 = vmul.f32 %v7829_v50, %v7821_v27  ;;  %v6784_v50 = vld [vmem:[%s9283_s30 + $0x1] ss:$0 sm:$0xff] }
0x25fa   : > { %v5284_v53 = vpack.c.bf16 %v5283_v52, %v5283_v52  ;;  %v6785_v52 = vld [vmem:[%s9284_s10 + $0x1] ss:$0 sm:$0xff] }
0x25fd   : > { %7443 = vmatmul.mubr.msk.bf16.vlgmr.msra.gmra.mrb[112].mxu0 %vm1499_vm2, %v5172_v49 }
0x25fe   : > { %7453 = vmatpush3.bf16.msra.mxu0 %v5291_v51  ;;  %7454 = vmatprep.mubr.msk.bf16.mxu0 %vm7966_vm0, %v7965_v1 }
0x25ff   : > { %7466 = vmatprep.subr.bf16.mxu0 %v7965_v1 }
0x2605   : > { %7455 = vmatmul.mubr.msk.bf16.vlgmr.msra.gmra.mrb[116].mxu0 %vm1499_vm2, %v5284_v53 }
0x2606   : > { %7470 = vmatprep.mubr.msk.bf16.mxu0 %vm7966_vm0, %v7965_v1  ;;  %7467 = vmatpush3.bf16.msra.mxu0 %v7710_v38 }
0x2607   : > { %7468 = vmatprep.subr.bf16.mxu0 %v7965_v1 }
0x260a   : > { %7469 = vmatpush3.bf16.msra.mxu0 %v7711_v39 }
0x260b   : > { %7482 = vmatprep.subr.bf16.mxu0 %v7965_v1 }
0x264c   : > { %v4990_v54 = vpop.f32.mrb[104].mxu0 }
0x264d   : > { %v7420_v55 = vpop.f32.mrb[105].mxu0 }
0x264e   : > { %v4993_v56 = vpop.f32.mrb[106].mxu0 }
0x264f   : > { %v7421_v57 = vpop.f32.mrb[107].mxu0 }
0x2650   : > { %v6801_v57 = vld [vmem:[%s9287_s15 + $0x1] ss:$0 sm:$0xff] }
0x26c8   : > { %v5103_v59 = vpop.f32.mrb[108].mxu0 }
0x26c9   : > { %5334 = vrot.lane.b32.xlu0 %v5103_v59, %s9270_s11  ;;  %v7432_v61 = vpop.f32.mrb[109].mxu0 }
0x26ca   : > { %v5106_v62 = vpop.f32.mrb[110].mxu0 }
0x26cb   : > { %v7433_v63 = vpop.f32.mrb[111].mxu0 }
0x26d0   : > { %v5215_v2 = vpop.f32.mrb[112].mxu0 }
0x26d1   : > { %5338 = vrot.lane.b32.xlu1 %v5215_v2, %s9271_s26  ;;  %v7444_v3 = vpop.f32.mrb[113].mxu0 }
0x26d2   : > { %v5218_v6 = vpop.f32.mrb[114].mxu0 }
0x26d3   : > { %v7445_v7 = vpop.f32.mrb[115].mxu0 }
0x26d8   : > { %v5327_v8 = vpop.f32.mrb[116].mxu0 }
0x26d9   : > { %5342 = vrot.lane.b32.xlu0 %v5327_v8, %s9272_s2  ;;  %v7456_v9 = vpop.f32.mrb[117].mxu0 }
0x26da   : > { %v5330_v44 = vpop.f32.mrb[118].mxu0 }
0x26db   : > { %v7457_v24 = vpop.f32.mrb[119].mxu0 }
0x273b   : > { %v5335_v10 = vpop.permute.xlu0 %5334 }
0x273c   : > { %v5345_v15 = vsel %vm1499_vm2, %v4990_v54, %v5335_v10 }
0x2743   : > { %v5339_v11 = vpop.permute.xlu1 %5338 }
0x2744   : > { %v5346_v16 = vsel %vm1961_vm5, %v5345_v15, %v5339_v11 }
0x274b   : > { %v5343_v18 = vpop.permute.xlu0 %5342 }
0x274c   : > { %v5347_v19 = vsel %vm1963_vm6, %v5346_v16, %v5343_v18 }
0x274d   : > { %v5348_v60 = vpack.c.bf16 %v5347_v19, %v5347_v19 }
0x274f   : > { %7463 = vmatmul.mubr.msk.bf16.vlgmr.msra.gmra.mrb[120].mxu1 %vm1395_vm1, %v5348_v60 }
0x2750   : > { %7475 = vmatpush3.bf16.msra.mxu1 %v7708_v28  ;;  %7478 = vmatprep.mubr.msk.bf16.mxu1 %vm7966_vm0, %v7965_v1 }
0x2751   : > { %7476 = vmatprep.subr.bf16.mxu1 %v7965_v1 }
0x2754   : > { %7477 = vmatpush3.bf16.msra.mxu1 %v7709_v20 }
0x2755   : > { %7488 = vmatprep.subr.bf16.mxu1 %v7965_v1 }
0x2757   : > { %7479 = vmatmul.mubr.msk.bf16.vlgmr.msra.gmra.mrb[124].mxu1 %vm1395_vm1, %v8678_v42 }
0x2758   : > { %7490 = vmatprep.mubr.msk.bf16.mxu1 %vm7966_vm0, %v7965_v1 }
0x2822   : > { %v5404_v21 = vpop.f32.mrb[120].mxu1 }
0x2823   : > { %v5405_v5 = vadd.f32 %v6778_v31, %v5404_v21  ;;  %v7464_v22 = vpop.f32.mrb[121].mxu1 }
0x2824   : > { %v5407_v25 = vpop.f32.mrb[122].mxu1 }
0x2825   : > { %v5414_v4 = vadd.f32 %v5405_v5, %v8827_v13  ;;  %v7465_v26 = vpop.f32.mrb[123].mxu1 }
0x2827   : > { %v5415_v27 = vsel %vm1395_vm1, %v5414_v4, 0.0 }
0x2828   : > { %5416 = vadd.xlane.f32.xlu1 %v5415_v27 }
0x282a   : > { %v5584_v29 = vpop.f32.mrb[124].mxu1 }
0x282b   : > { %v7480_v14 = vpop.f32.mrb[125].mxu1  ;;  %v5585_v37 = vadd.f32 %v6805_v36, %v5584_v29 }
0x282c   : > { %v5587_v42 = vpop.f32.mrb[126].mxu1 }
0x282d   : > { %v7481_v32 = vpop.f32.mrb[127].mxu1  ;;  %v8945_v13 = vpack.c.bf16 %v5585_v37, %v5585_v37 }
0x282f   : > { %v5596_v56 = vsel %vm1499_vm2, %v8945_v13, 0 }
0x28b5   : > { %v5417_v33 = vpop.xlane.xlu1 %5416 }
0x28b6   : > { %v5418_v12 = vmul.f32 0.03125, %v5417_v33 }
0x28b8   : > { %v5419_v17 = vsub.f32 %v5414_v4, %v5418_v12 }
0x28ba   : > { %v5420_v34 = vmul.f32 %v5419_v17, %v5419_v17 }
0x28bc   : > { %v5421_v35 = vsel %vm1395_vm1, %v5420_v34, 0.0 }
0x28bd   : > { %5422 = vadd.xlane.f32.xlu0 %v5421_v35 }
0x28d3   : > { %5704 = vrot.lane.b32.xlu0 %v8945_v13, %s9263_s7 }
0x294a   : > { %v5423_v30 = vpop.xlane.xlu0 %5422 }
0x294b   : > { %v5424_v40 = vmul.f32 0.03125, %v5423_v30 }
0x294d   : > { %7830 = vrsqrt.f32 %v5424_v40  ;;  %vm5427_vm14 = vcmp.eq.f32.partialorder %v5424_v40, inf  ;;  %v5430_v43 = vand.u32 2147483648, %v5424_v40  ;;  %vm5429_vm3 = vcmp.eq.f32.partialorder %v5424_v40, 0.0 }
0x294e   : > { %v5705_v63 = vpop.permute.xlu0 %5704 }
0x294f   : > { %v5710_v3 = vsel %vm1499_vm2, %v5705_v63, 0 }
0x2957   : > { %v7831_v41 = vpop.eup %7830 }
0x2958   : > { %v5426_v48 = vmul.f32 %v7831_v41, %v5424_v40 }
0x295a   : > { %v5428_v45 = vsel %vm5427_vm14, %v5424_v40, %v5426_v48 }
0x295b   : > { %v5431_v46 = vsel %vm5429_vm3, %v5430_v43, %v5428_v45 }
0x295c   : > { %v5432_v47 = vadd.f32 1e-06, %v5431_v46 }
0x295e   : > { %7832 = vrsqrt.f32 %v5432_v47 }
0x2968   : > { %v7833_v49 = vpop.eup %7832 }
0x2969   : > { %v5434_v51 = vmul.f32 %v7833_v49, %v5419_v17 }
0x296b   : > { %v5441_v53 = vmul.f32 %v6784_v50, %v5434_v51 }
0x296d   : > { %v8955_v54 = vadd.f32 %v6785_v52, %v5441_v53 }
0x296f   : > { %v5470_v55 = vpack.c.bf16 %v8955_v54, %v8955_v54 }
0x2971   : > { %7471 = vmatmul.mubr.msk.bf16.vlgmr.msra.gmra.mrb[120].mxu0 %vm1395_vm1, %v5470_v55 }
0x2972   : > { %7483 = vmatpush3.bf16.xpose.msra.mxu0 %v5596_v56  ;;  %7484 = vmatprep.mubr.msk.bf16.mxu0 %vm7966_vm0, %v7965_v1 }
0x2973   : > { %7494 = vmatprep.subr.bf16.mxu0 %v7965_v1 }
0x2a44   : > { %v5526_v58 = vpop.f32.mrb[120].mxu0 }
0x2a45   : > { %v5527_v59 = vadd.f32 %v6801_v57, %v5526_v58  ;;  %v7472_v61 = vpop.f32.mrb[121].mxu0 }
0x2a46   : > { %v5529_v62 = vpop.f32.mrb[122].mxu0 }
0x2a47   : > { %v5590_v0 = vpack.c.bf16 %v5527_v59, %v5527_v59  ;;  %v7473_v2 = vpop.f32.mrb[123].mxu0 }
0x2a49   : > { %5814 = vrot.lane.b32.xlu0 %v5590_v0, %s9264_s3  ;;  %5702 = vrot.lane.b32.xlu1 %v5590_v0, %s9263_s7 }
0x2a4a   : > { %7485 = vmatmul.mubr.msk.bf16.vlgmr.msra.gmra.mrb[124].mxu0 %vm1499_vm2, %v5590_v0 }
0x2a4b   : > { %7495 = vmatpush3.bf16.xpose.msra.mxu0 %v5710_v3  ;;  %7496 = vmatprep.mubr.msk.bf16.mxu0 %vm7966_vm0, %v7965_v1 }
0x2a4c   : > { %7506 = vmatprep.subr.bf16.mxu0 %v7965_v1 }
0x2a4d   : > { %5926 = vrot.lane.b32.xlu0 %v5590_v0, %s9265_s5  ;;  %5816 = vrot.lane.b32.xlu1 %v8945_v13, %s9264_s3  ;;  %s9307_s3 = sld [smem:[#allocation45_spill]] }
0x2a51   : > { %5928 = vrot.lane.b32.xlu1 %v8945_v13, %s9265_s5  ;;  %s9303_s5 = sld [smem:[#allocation37_spill]] }
0x2abb   : > { %v5703_v6 = vpop.permute.xlu1 %5702  ;;  %v5815_v44 = vpop.permute.xlu0 %5814 }
0x2abc   : > { %7497 = vmatmul.mubr.msk.bf16.vlgmr.msra.gmra.mrb[128].mxu0 %vm1499_vm2, %v5703_v6 }
0x2abd   : > { %7508 = vmatprep.mubr.msk.bf16.mxu0 %vm7966_vm0, %v7965_v1 }
0x2abf   : > { %v5817_v7 = vpop.permute.xlu1 %5816  ;;  %v5927_v10 = vpop.permute.xlu0 %5926 }
0x2ac0   : > { %v5822_v8 = vsel %vm1499_vm2, %v5817_v7, 0 }
0x2ac1   : > { %7507 = vmatpush3.bf16.xpose.msra.mxu0 %v5822_v8 }
0x2ac2   : > { %7518 = vmatprep.subr.bf16.mxu0 %v7965_v1 }
0x2ac3   : > { %v5929_v9 = vpop.permute.xlu1 %5928 }
0x2ac4   : > { %v5934_v24 = vsel %vm1499_vm2, %v5929_v9, 0 }
0x2ac8   : > { %7509 = vmatmul.mubr.msk.bf16.vlgmr.msra.gmra.mrb[132].mxu0 %vm1499_vm2, %v5815_v44 }
0x2ac9   : > { %7519 = vmatpush3.bf16.xpose.msra.mxu0 %v5934_v24  ;;  %7520 = vmatprep.mubr.msk.bf16.mxu0 %vm7966_vm0, %v7965_v1 }
0x2aca   : > { %7530 = vmatprep.subr.bf16.mxu0 %v7965_v1 }
0x2ad0   : > { %7521 = vmatmul.mubr.msk.bf16.vlgmr.msra.gmra.mrb[136].mxu0 %vm1499_vm2, %v5927_v10 }
0x2ad1   : > { %7534 = vmatprep.mubr.msk.bf16.mxu0 %vm7966_vm0, %v7965_v1 }
0x2b1d   : > { %v5632_v11 = vpop.f32.mrb[124].mxu0 }
0x2b1e   : > { %v5638_v15 = vmul.f32 0.35355338, %v5632_v11  ;;  %v7486_v16 = vpop.f32.mrb[125].mxu0 }
0x2b1f   : > { %v5635_v18 = vpop.f32.mrb[126].mxu0 }
0x2b20   : > { %v5639_v19 = vsel %vm4042_vm10, -1000000.0, %v5638_v15  ;;  %v7487_v28 = vpop.f32.mrb[127].mxu0 }
0x2b21   : > { %v5640_v60 = vsel %vm1499_vm2, %v5639_v19, -inf }
0x2b22   : > { %5641 = vmax.xlane.f32.xlu1 %v5640_v60 }
0x2b8f   : > { %v5746_v20 = vpop.f32.mrb[128].mxu0 }
0x2b90   : > { %v5752_v31 = vmul.f32 0.35355338, %v5746_v20  ;;  %v7498_v21 = vpop.f32.mrb[129].mxu0 }
0x2b91   : > { %v5749_v5 = vpop.f32.mrb[130].mxu0 }
0x2b92   : > { %v5753_v22 = vsel %vm4042_vm10, -1000000.0, %v5752_v31  ;;  %v7499_v25 = vpop.f32.mrb[131].mxu0 }
0x2b93   : > { %v5754_v4 = vsel %vm1499_vm2, %v5753_v22, -inf }
0x2b94   : > { %5755 = vmax.xlane.f32.xlu0 %v5754_v4 }
0x2b9b   : > { %v5858_v26 = vpop.f32.mrb[132].mxu0 }
0x2b9c   : > { %v5864_v27 = vmul.f32 0.35355338, %v5858_v26  ;;  %v7510_v29 = vpop.f32.mrb[133].mxu0 }
0x2b9d   : > { %v5861_v14 = vpop.f32.mrb[134].mxu0 }
0x2b9e   : > { %v5865_v42 = vsel %vm4042_vm10, -1000000.0, %v5864_v27  ;;  %v7511_v32 = vpop.f32.mrb[135].mxu0 }
0x2b9f   : > { %v5866_v33 = vsel %vm1499_vm2, %v5865_v42, -inf  ;;  %v7713_v32 = vld [vmem:[%s9290_s1 + $0x18] sm:$0xff]  }
0x2ba0   : > { %5867 = vmax.xlane.f32.xlu0 %v5866_v33 }
0x2ba3   : > { %v5970_v12 = vpop.f32.mrb[136].mxu0 }
0x2ba4   : > { %v5976_v17 = vmul.f32 0.35355338, %v5970_v12  ;;  %v7522_v34 = vpop.f32.mrb[137].mxu0 }
0x2ba5   : > { %v5973_v35 = vpop.f32.mrb[138].mxu0 }
0x2ba6   : > { %v5977_v36 = vsel %vm4042_vm10, -1000000.0, %v5976_v17  ;;  %v7523_v37 = vpop.f32.mrb[139].mxu0 }
0x2ba7   : > { %v5978_v38 = vsel %vm1499_vm2, %v5977_v36, -inf }
0x2ba8   : > { %5979 = vmax.xlane.f32.xlu1 %v5978_v38 }
0x2baf   : > { %v5642_v39 = vpop.xlane.xlu1 %5641 }
0x2bb0   : > { %v5643_v30 = vsub.f32 %v5639_v19, %v5642_v39 }
0x2bb2   : > { %v5644_v40 = vmul.f32 1.442695, %v5643_v30 }
0x2bb4   : > { %7834 = vpow2.f32 %v5644_v40 }
0x2bbe   : > { %v7835_v41 = vpop.eup %7834 }
0x2bbf   : > { %v5646_v48 = vsel %vm1499_vm2, %v7835_v41, 0.0 }
0x2bc0   : > { %5647 = vadd.xlane.f32.xlu0 %v5646_v48 }
0x2c21   : > { %v5756_v43 = vpop.xlane.xlu0 %5755 }
0x2c22   : > { %v5757_v45 = vsub.f32 %v5753_v22, %v5756_v43 }
0x2c24   : > { %v5758_v46 = vmul.f32 1.442695, %v5757_v45 }
0x2c26   : > { %7836 = vpow2.f32 %v5758_v46  ;;  %v6817_v46 = vld [vmem:[%s9303_s5 + $0x1] ss:$0 sm:$0xff] }
0x2c2d   : > { %v5868_v47 = vpop.xlane.xlu0 %5867 }
0x2c2e   : > { %v5869_v49 = vsub.f32 %v5865_v42, %v5868_v47  ;;  %v7712_v42 = vld [vmem:[%s9290_s1 + $0x10] sm:$0xff]  }
0x2c2f   : > { %7531 = vmatpush3.bf16.msra.mxu0 %v7712_v42 }
0x2c30   : > { %v7837_v23 = vpop.eup %7836  ;;  %v5870_v50 = vmul.f32 1.442695, %v5869_v49  ;;  %7532 = vmatprep.subr.bf16.mxu0 %v7965_v1 }
0x2c31   : > { %v5760_v51 = vsel %vm1499_vm2, %v7837_v23, 0.0 }
0x2c32   : > { %7838 = vpow2.f32 %v5870_v50  ;;  %5761 = vadd.xlane.f32.xlu1 %v5760_v51 }
0x2c33   : > { %7533 = vmatpush3.bf16.msra.mxu0 %v7713_v32 }
0x2c34   : > { %7546 = vmatprep.subr.bf16.mxu0 %v7965_v1 }
0x2c35   : > { %v5980_v55 = vpop.xlane.xlu1 %5979 }
0x2c36   : > { %v5981_v56 = vsub.f32 %v5977_v36, %v5980_v55 }
0x2c38   : > { %v5982_v57 = vmul.f32 1.442695, %v5981_v56 }
0x2c3a   : > { %7840 = vpow2.f32 %v5982_v57 }
0x2c3c   : > { %v7839_v52 = vpop.eup %7838 }
0x2c3d   : > { %v5872_v53 = vsel %vm1499_vm2, %v7839_v52, 0.0 }
0x2c3e   : > { %5873 = vadd.xlane.f32.xlu0 %v5872_v53 }
0x2c43   : > { %5766 = vrot.lane.b32.xlu1 %v8945_v13, %s9266_s8  ;;  %s9308_s8 = sld [smem:[#allocation49_spill]] }
0x2c44   : > { %v7841_v58 = vpop.eup %7840 }
0x2c45   : > { %v5984_v59 = vsel %vm1499_vm2, %v7841_v58, 0.0 }
0x2c49   : > { %s1335_s7 = sand.u32 1, %s9308_s8  }
0x2c4a   : > { %s6584_s22 = sshll.u32 %s1335_s7, 3  ;;  %s6417_s8 = scalar_lea.sflag [#allocation3], %s1335_s7 }
0x2c4b   : > { %s1337_s5 = scalar_lea.vmem [#allocation2], %s6584_s22 }
0x2c4d   : > { %v5648_v61 = vpop.xlane.xlu0 %5647 }
0x2c4e   : > { %7842 = vrcp.f32 %v5648_v61 }
0x2c54   : > { %5653 = vrot.lane.b32.xlu0 %v8945_v13, %s9267_s13  ;;  %s9304_s13 = sld [smem:[#allocation40_spill]] }
0x2c58   : > { %5990 = vrot.lane.b32.xlu0 %v8945_v13, %s9268_s25  ;;  %v7843_v63 = vpop.eup %7842  ;;  %s9305_s25 = sld [smem:[#allocation39_spill]] }
0x2c59   : > { %v5650_v2 = vmul.f32 %v7843_v63, %v7835_v41  ;;  %v7717_v63 = vld [vmem:[%s9294_s21 + $0x28] sm:$0xff]  }
0x2c5a   : > { %v7714_v61 = vld [vmem:[%s9304_s13 + $0x10] sm:$0xff]  }
0x2c5b   : > { %v5651_v8 = vpack.c.bf16 %v5650_v2, %v5650_v2 }
0x2c67   : > { %5985 = vadd.xlane.f32.xlu1 %v5984_v59 }
0x2c78   : > { %5878 = vrot.lane.b32.xlu1 %v8945_v13, %s9269_s29  ;;  %s9306_s29 = sld [smem:[#allocation43_spill]] }
0x2cbf   : > { %v5762_v62 = vpop.xlane.xlu1 %5761 }
0x2cc0   : > { %7844 = vrcp.f32 %v5762_v62  ;;  %v7715_v62 = vld [vmem:[%s9304_s13 + $0x18] sm:$0xff]  }
0x2cc3   : > { %v5767_v7 = vpop.permute.xlu1 %5766 }
0x2cc4   : > { %v5772_v44 = vsel %vm1567_vm4, %v5767_v7, 0 }
0x2cca   : > { %v7845_v9 = vpop.eup %7844 }
0x2ccb   : > { %v5874_v0 = vpop.xlane.xlu0 %5873  ;;  %v5764_v13 = vmul.f32 %v7845_v9, %v7837_v23 }
0x2ccc   : > { %7846 = vrcp.f32 %v5874_v0 }
0x2ccd   : > { %v5765_v24 = vpack.c.bf16 %v5764_v13, %v5764_v13 }
0x2ccf   : > { %v5654_v3 = vpop.permute.xlu0 %5653 }
0x2cd0   : > { %v5659_v6 = vsel %vm1567_vm4, %v5654_v3, 0 }
0x2cd1   : > { %7489 = vmatpush3.bf16.msra.mxu1 %v5659_v6 }
0x2cd2   : > { %7500 = vmatprep.subr.bf16.mxu1 %v7965_v1 }
0x2cd3   : > { %v5991_v19 = vpop.permute.xlu0 %5990 }
0x2cd4   : > { %7491 = vmatmul.mubr.msk.bf16.vlgmr.msra.gmra.mrb[128].mxu1 %vm1499_vm2, %v5651_v8  ;;  %v5996_v60 = vsel %vm1567_vm4, %v5991_v19, 0  ;;  %v7718_v19 = vld [vmem:[%s9294_s21 + $0x30] sm:$0xff]  }
0x2cd5   : > { %7501 = vmatpush3.bf16.msra.mxu1 %v5772_v44  ;;  %7502 = vmatprep.mubr.msk.bf16.mxu1 %vm7966_vm0, %v7965_v1 }
0x2cd6   : > { %7512 = vmatprep.subr.bf16.mxu1 %v7965_v1  ;;  %v7847_v10 = vpop.eup %7846 }
0x2cd7   : > { %v5876_v15 = vmul.f32 %v7847_v10, %v7839_v52 }
0x2cd9   : > { %v5877_v28 = vpack.c.bf16 %v5876_v15, %v5876_v15 }
0x2cdc   : > { %7503 = vmatmul.mubr.msk.bf16.vlgmr.msra.gmra.mrb[132].mxu1 %vm1499_vm2, %v5765_v24  ;;  %v6823_v24 = vld [vmem:[%s9296_s4 + $0x1] ss:$0 sm:$0xff] }
0x2cdd   : > { %7514 = vmatprep.mubr.msk.bf16.mxu1 %vm7966_vm0, %v7965_v1 }
0x2cf4   : > { %v5986_v11 = vpop.xlane.xlu1 %5985 }
0x2cf5   : > { %7848 = vrcp.f32 %v5986_v11  ;;  %v6824_v11 = vld [vmem:[%s9305_s25 + $0x1] ss:$0 sm:$0xff]  ;;  %s6430_s25 = sshll.u32 %s1337_s5, 4  ;;  %s9085_s25 = int_to_ptr.vmem [resolvable:$true] %s6430_s25 }
0x2cf8   : > { %v5879_v16 = vpop.permute.xlu1 %5878 }
0x2cf9   : > { %v5884_v18 = vsel %vm1567_vm4, %v5879_v16, 0 }
0x2cfa   : > { %7513 = vmatpush3.bf16.msra.mxu1 %v5884_v18 }
0x2cfb   : > { %7524 = vmatprep.subr.bf16.mxu1 %v7965_v1 }
0x2cfd   : > { %7515 = vmatmul.mubr.msk.bf16.vlgmr.msra.gmra.mrb[136].mxu1 %vm1499_vm2, %v5877_v28  ;;  %v7719_v28 = vld [vmem:[%s9294_s21 + $0x38] sm:$0xff]  }
0x2cfe   : > { %7525 = vmatpush3.bf16.msra.mxu1 %v5996_v60  ;;  %7526 = vmatprep.mubr.msk.bf16.mxu1 %vm7966_vm0, %v7965_v1  ;;  %v6839_v60 = vld [vmem:[%s9299_s0 + $0x1] ss:$0 sm:$0xff]  ;;  %s7858_s0 = scalar_lea.vmem %s9085_s25, 128 }
0x2cff   : > { %v7849_v20 = vpop.eup %7848  ;;  %7538 = vmatprep.subr.bf16.mxu1 %v7965_v1  ;;  %p7859_p11 = scmp.ne.s32.totalorder %s9085_s25, %s7858_s0 }
0x2d00   : > { %v5988_v31 = vmul.f32 %v7849_v20, %v7841_v58 }
0x2d01   : > { %p7860_p12 = pnand %p7859_p11, %p8241_p5 }
0x2d02   : > { %v5989_v21 = vpack.c.bf16 %v5988_v31, %v5988_v31 }
0x2d03   : > { %p7861_p13 = pneg %p7860_p12 }
0x2d05   : > { %7527 = vmatmul.mubr.msk.bf16.vlgmr.msra.gmra.mrb[140].mxu1 %vm1499_vm2, %v5989_v21 }
0x2d06   : > { %7542 = vmatprep.mubr.msk.bf16.mxu1 %vm7966_vm0, %v7965_v1  ;;  %7539 = vmatpush3.bf16.msra.mxu1 %v7714_v61 }
0x2d07   : > { %7540 = vmatprep.subr.bf16.mxu1 %v7965_v1 }
0x2d0a   : > { %7541 = vmatpush3.bf16.msra.mxu1 %v7715_v62 }
0x2d0b   : > { %7558 = vmatprep.subr.bf16.mxu1 %v7965_v1 }
0x2da7   : > { %v5695_v5 = vpop.f32.mrb[128].mxu1 }
0x2da8   : > { %v7492_v22 = vpop.f32.mrb[129].mxu1 }
0x2da9   : > { %v5698_v25 = vpop.f32.mrb[130].mxu1 }
0x2daa   : > { %v7493_v4 = vpop.f32.mrb[131].mxu1 }
0x2daf   : > { %v5808_v26 = vpop.f32.mrb[132].mxu1 }
0x2db0   : > { %6039 = vrot.lane.b32.xlu1 %v5808_v26, %s9270_s11  ;;  %v7504_v27 = vpop.f32.mrb[133].mxu1  ;;  %v6843_v26 = vld [vmem:[%s9306_s29 + $0x1] ss:$0 sm:$0xff]  ;;  %s9311_s11 = sld [smem:[#allocation47_spill]] }
0x2db1   : > { %v5811_v29 = vpop.f32.mrb[134].mxu1 }
0x2db2   : > { %v7505_v14 = vpop.f32.mrb[135].mxu1 }
0x2dd0   : > { %v5920_v33 = vpop.f32.mrb[136].mxu1 }
0x2dd1   : > { %6043 = vrot.lane.b32.xlu0 %v5920_v33, %s9271_s26  ;;  %v7516_v12 = vpop.f32.mrb[137].mxu1  ;;  %s9309_s26 = sld [smem:[#allocation46_spill]] }
0x2dd2   : > { %v5923_v17 = vpop.f32.mrb[138].mxu1 }
0x2dd3   : > { %v7517_v34 = vpop.f32.mrb[139].mxu1 }
0x2dd8   : > { %v6032_v35 = vpop.f32.mrb[140].mxu1 }
0x2dd9   : > { %6047 = vrot.lane.b32.xlu1 %v6032_v35, %s9272_s2  ;;  %v7528_v36 = vpop.f32.mrb[141].mxu1  ;;  %s9310_s2 = sld [smem:[#allocation52_spill]] }
0x2dda   : > { %v6035_v37 = vpop.f32.mrb[142].mxu1 }
0x2ddb   : > { %v7529_v38 = vpop.f32.mrb[143].mxu1 }
0x2ddc   : > { %v7720_v38 = vld [vmem:[%s9307_s3] sm:$0xff]  }
0x2ddf   : > { %s6858_s23 = sshll.u32 %s9310_s2, 7 }
0x2de0   : > { %s9083_s29 = scalar_lea.hbm %s9311_s11, %s6858_s23 }
0x2e22   : > { %v6040_v39 = vpop.permute.xlu1 %6039 }
0x2e23   : > { %v6050_v40 = vsel %vm1499_vm2, %v5695_v5, %v6040_v39  ;;  %v7721_v39 = vld [vmem:[%s9307_s3 + $0x8] sm:$0xff]  }
0x2e43   : > { %v6044_v30 = vpop.permute.xlu0 %6043 }
0x2e44   : > { %v6051_v41 = vsel %vm1961_vm5, %v6050_v40, %v6044_v30 }
0x2e4b   : > { %v6048_v48 = vpop.permute.xlu1 %6047 }
0x2e4c   : > { %v6052_v43 = vsel %vm1963_vm6, %v6051_v41, %v6048_v48 }
0x2e4d   : > { %v6053_v45 = vpack.c.bf16 %v6052_v43, %v6052_v43 }
0x2e4f   : > { %7535 = vmatmul.mubr.msk.bf16.vlgmr.msra.gmra.mrb[140].mxu0 %vm1395_vm1, %v6053_v45 }
0x2e50   : > { %7554 = vmatprep.mubr.msk.bf16.mxu0 %vm7966_vm0, %v7965_v1 }
0x2f22   : > { %v6109_v47 = vpop.f32.mrb[140].mxu0 }
0x2f23   : > { %v6110_v49 = vadd.f32 %v6817_v46, %v6109_v47  ;;  %v7536_v23 = vpop.f32.mrb[141].mxu0 }
0x2f24   : > { %v6112_v50 = vpop.f32.mrb[142].mxu0  ;;  %v6851_v23 = vld [vmem:[%s9302_s17 + $0x1] ss:$0 sm:$0xff] }
0x2f25   : > { %v6119_v51 = vadd.f32 %v6110_v49, %v8955_v54  ;;  %v7537_v52 = vpop.f32.mrb[143].mxu0  ;;  %v7716_v54 = vld [vmem:[%s9294_s21 + $0x20] sm:$0xff]  }
0x2f26   : > { %7547 = vmatpush3.bf16.msra.mxu0 %v7716_v54  ;;  %v6852_v50 = vld [vmem:[%s8186_s9 + $0x1] ss:$0 sm:$0xff] }
0x2f27   : > { %v6120_v53 = vsel %vm1395_vm1, %v6119_v51, 0.0  ;;  %7548 = vmatprep.subr.bf16.mxu0 %v7965_v1 }
0x2f28   : > { %6121 = vadd.xlane.f32.xlu0 %v6120_v53 }
0x2f2a   : > { %7549 = vmatpush3.bf16.msra.mxu0 %v7717_v63 }
0x2f2b   : > { %7550 = vmatprep.subr.bf16.mxu0 %v7965_v1 }
0x2f2e   : > { %7551 = vmatpush3.bf16.msra.mxu0 %v7718_v19 }
0x2f2f   : > { %7552 = vmatprep.subr.bf16.mxu0 %v7965_v1 }
0x2f32   : > { %7553 = vmatpush3.bf16.msra.mxu0 %v7719_v28 }
0x2fb5   : > { %v6122_v55 = vpop.xlane.xlu0 %6121 }
0x2fb6   : > { %v6123_v56 = vmul.f32 0.03125, %v6122_v55  ;;  %v6853_v55 = vld [vmem:[%s9309_s26] ss:$0 sm:$0xff]  ;;  %s7977_s26 = smov [#allocation2]  }
0x2fb7   : > { %s7862_s2 = sshll.u32 %s7977_s26, 4  ;;  %s7863_s2 = int_to_ptr.vmem [resolvable:$false] %s7862_s2 }
0x2fb8   : > { %v6124_v57 = vsub.f32 %v6119_v51, %v6123_v56  ;;  %s7864_s22 = scalar_lea.vmem %s7863_s2, 256  ;;  %p7865_p0 = scmp.lt.s32.totalorder %s9085_s25, %s7863_s2 }
0x2fb9   : > { %p7866_p1 = scmp.lt.s32.totalorder %s7864_s22, %s7858_s0 }
0x2fba   : > { %v6125_v58 = vmul.f32 %v6124_v57, %v6124_v57 }
0x2fbb   : > { %p7867_p2 = por %p7866_p1, %p7865_p0 }
0x2fbc   : > { %v6126_v59 = vsel %vm1395_vm1, %v6125_v58, 0.0 }
0x2fbd   : > { %6127 = vadd.xlane.f32.xlu1 %v6126_v59  ;;  %p7868_p3 = pnand %p7867_p2, %p7861_p13 }
0x304a   : > { %v6128_v0 = vpop.xlane.xlu1 %6127 }
0x304b   : > { %v6129_v2 = vmul.f32 0.03125, %v6128_v0 }
0x304d   : > { %7850 = vrsqrt.f32 %v6129_v2  ;;  %vm6132_vm2 = vcmp.eq.f32.partialorder %v6129_v2, inf  ;;  %v6135_v7 = vand.u32 2147483648, %v6129_v2  ;;  %vm6134_vm4 = vcmp.eq.f32.partialorder %v6129_v2, 0.0 }
0x3057   : > { %v7851_v3 = vpop.eup %7850 }
0x3058   : > { %v6131_v6 = vmul.f32 %v7851_v3, %v6129_v2 }
0x305a   : > { %v6133_v8 = vsel %vm6132_vm2, %v6129_v2, %v6131_v6 }
0x305b   : > { %v6136_v9 = vsel %vm6134_vm4, %v6135_v7, %v6133_v8 }
0x305c   : > { %v6137_v44 = vadd.f32 1e-06, %v6136_v9 }
0x305e   : > { %7852 = vrsqrt.f32 %v6137_v44 }
0x3068   : > { %v7853_v13 = vpop.eup %7852 }
0x3069   : > { %v6139_v10 = vmul.f32 %v7853_v13, %v6124_v57 }
0x306b   : > { %v6146_v15 = vmul.f32 %v6823_v24, %v6139_v10 }
0x306d   : > { %v6153_v16 = vadd.f32 %v6824_v11, %v6146_v15 }
0x306f   : > { %v6172_v18 = vpack.c.bf16 %v6153_v16, %v6153_v16 }
0x3071   : > { %7543 = vmatmul.mubr.msk.bf16.vlgmr.msra.gmra.mrb[144].mxu1 %vm1395_vm1, %v6172_v18 }
0x3072   : > { %7562 = vmatprep.mubr.msk.bf16.mxu1 %vm7966_vm0, %v7965_v1  ;;  %7559 = vmatpush3.bf16.msra.mxu1 %v7720_v38 }
0x3073   : > { %7560 = vmatprep.subr.bf16.mxu1 %v7965_v1 }
0x3076   : > { %7561 = vmatpush3.bf16.msra.mxu1 %v7721_v39 }
0x3144   : > { %v6228_v20 = vpop.f32.mrb[144].mxu1 }
0x3145   : > { %v6229_v31 = vadd.f32 %v6839_v60, %v6228_v20  ;;  %v7544_v21 = vpop.f32.mrb[145].mxu1 }
0x3146   : > { %v6231_v5 = vpop.f32.mrb[146].mxu1 }
0x3147   : > { %v6234_v22 = vmax.f32 %v6229_v31, 0.0  ;;  %v7545_v25 = vpop.f32.mrb[147].mxu1 }
0x3149   : > { %v6235_v4 = vpack.c.bf16 %v6234_v22, %v6234_v22 }
0x314b   : > { %7555 = vmatmul.mubr.msk.bf16.vlgmr.msra.gmra.mrb[144].mxu0 %vm2173_vm9, %v6235_v4 }
0x321e   : > { %v6303_v27 = vpop.f32.mrb[144].mxu0 }
0x321f   : > { %v6304_v29 = vadd.f32 %v6843_v26, %v6303_v27  ;;  %v7556_v14 = vpop.f32.mrb[145].mxu0 }
0x3220   : > { %v6306_v42 = vpop.f32.mrb[146].mxu0 }
0x3221   : > { %v6313_v32 = vadd.f32 %v6304_v29, %v6153_v16  ;;  %v7557_v33 = vpop.f32.mrb[147].mxu0 }
0x3223   : > { %v6314_v12 = vsel %vm1395_vm1, %v6313_v32, 0.0 }
0x3224   : > { %6315 = vadd.xlane.f32.xlu0 %v6314_v12 }
0x32b1   : > { %v6316_v17 = vpop.xlane.xlu0 %6315 }
0x32b2   : > { %v6317_v34 = vmul.f32 0.03125, %v6316_v17 }
0x32b4   : > { %v6318_v35 = vsub.f32 %v6313_v32, %v6317_v34 }
0x32b6   : > { %v6319_v36 = vmul.f32 %v6318_v35, %v6318_v35 }
0x32b8   : > { %v6320_v37 = vsel %vm1395_vm1, %v6319_v36, 0.0 }
0x32b9   : > { %6321 = vadd.xlane.f32.xlu0 %v6320_v37 }
0x3346   : > { %v6322_v30 = vpop.xlane.xlu0 %6321 }
0x3347   : > { %v6323_v40 = vmul.f32 0.03125, %v6322_v30 }
0x3349   : > { %7854 = vrsqrt.f32 %v6323_v40  ;;  %vm6326_vm0 = vcmp.eq.f32.partialorder %v6323_v40, inf  ;;  %v6329_v43 = vand.u32 2147483648, %v6323_v40  ;;  %vm6328_vm5 = vcmp.eq.f32.partialorder %v6323_v40, 0.0 }
0x3353   : > { %v7855_v41 = vpop.eup %7854 }
0x3354   : > { %v6325_v48 = vmul.f32 %v7855_v41, %v6323_v40 }
0x3356   : > { %v6327_v45 = vsel %vm6326_vm0, %v6323_v40, %v6325_v48 }
0x3357   : > { %v6330_v46 = vsel %vm6328_vm5, %v6329_v43, %v6327_v45 }
0x3358   : > { %v6331_v47 = vadd.f32 1e-06, %v6330_v46 }
0x335a   : > { %7856 = vrsqrt.f32 %v6331_v47 }
0x3364   : > { %v7857_v49 = vpop.eup %7856 }
0x3365   : > { %v6333_v1 = vmul.f32 %v7857_v49, %v6318_v35 }
0x3367   : > { %v6340_v51 = vmul.f32 %v6851_v23, %v6333_v1 }
0x3369   : > { %v6347_v52 = vadd.f32 %v6852_v50, %v6340_v51 }
0x336b   : > { %v6353_v53 = vpack.c.bf16 %v6347_v52, %v6347_v52 }
0x336d   : > { %7563 = vmatmul.mubr.msk.bf16.vlgmr.msra.gmra.mrb[148].mxu1 %vm1395_vm1, %v6353_v53 }
0x3440   : > { %v6409_v56 = vpop.f32.mrb[148].mxu1 }
0x3441   : > { %v6410_v57 = vadd.f32 %v6853_v55, %v6409_v56  ;;  %v7564_v58 = vpop.f32.mrb[149].mxu1 }
0x3442   : > { %v6412_v59 = vpop.f32.mrb[150].mxu1 }
0x3443   : > { %6415 = vst [vmem:[%s1337_s5] sm:$0xff] %v6410_v57  ;;  %v7565_v61 = vpop.f32.mrb[151].mxu1 }
0x3444   : > { %7871 = shalt.err (!%p7868_p3)
}
0x3445   : > { %s7872_s7 = scalar_lea.hbm %s9083_s29, 128  ;;  %s7876_s23 = scalar_lea.hbm %s9311_s11, 256 }
0x3446   : > { %p7873_p4 = scmp.ne.s32.totalorder %s9083_s29, %s7872_s7  ;;  %p7877_p9 = scmp.lt.u32.totalorder %s9083_s29, %s9311_s11 }
0x3447   : > { %p7878_p10 = scmp.lt.u32.totalorder %s7876_s23, %s7872_s7  ;;  %p7880_p12 = scmp.lt.u32.totalorder %s7872_s7, %s9083_s29 }
0x3448   : > { %p7874_p7 = pnand %p7873_p4, %p8241_p5 }
0x3449   : > { %p7879_p11 = por %p7878_p10, %p7877_p9 }
0x344a   : > { %p7875_p8 = pneg %p7874_p7 }
0x344b   : > { %p7881_p0 = por %p7880_p12, %p7879_p11 }
0x344d   : > { %p7882_p13 = pnand %p7881_p0, %p7875_p8 }
0x344f   : > { %7885 = shalt.err (!%p7882_p13)
}
0x3450   : > { %7566 = dma.vmem_to_hbm [thread:$0]  (%p8241_p5), %s9085_s25, 128, %s9083_s29, %s6417_s8  }
0x3451 PF: > { %s9313_s0 = sld [smem:[#allocation51_spill]]  ;;  %s9314_s5 = sld [smem:[#allocation48_spill]] }
0x3457   : > { %p7572_p1 = scmp.ge.s32.totalorder %s9313_s0, 2  ;;  %s6442_s2 = sand.u32 1, %s9314_s5  }
0x3458   : > { %s6443_s22 = scalar_lea.sflag [#allocation3], %s6442_s2 }
0x3459   : > { %p7569_p2 = pnand %p7572_p1, %p8245_p6 }
0x345b   : > { %7903 = dma.done.wait (!%p7569_p2), %s6443_s22, 128  }
0x345c   : > { %7905 = vsyncadd (!%p7569_p2), %s6443_s22, 4294967168  ;;  %s9316_s28 = sld [smem:[#allocation53_spill]]  ;;  %s9317_s22 = sld [smem:[#allocation49_spill]] }
0x345d   : > { %s9318_s23 = sld [smem:[#allocation50_spill]]  ;;  %s9319_s26 = sld [smem:[#allocation54_spill]] }
0x3462   : > { %p97_p3 = scmp.ge.s32.totalorder %s9316_s28, 4  }
0x3464   :  { %99 = sbr.rel (!%p97_p3) target bundleno = 107 (0x6b), region = 318 }
0x346b   :  { %6448 = vsyncpa [#allocation3], 1 }
0x346c   :  { %6450 = vsyncpa [#allocation3 + $0x1], 1 }

</bundles_post_ra>
